<compile_context>
chip_gen: v7x
topology: tpu7x:2x2x1
jax: 0.10.0
libtpu: 0.0.40
codegen_flags: <defaults>
</compile_context>

<pallas_src>
import functools

import numpy as np
import jax
import jax.numpy as jnp
from jax.experimental import pallas as pl
from jax.experimental.pallas import tpu as pltpu


# ----------------------------- host-side prep ------------------------------ #

def _round_up(v, m):
    return (v + m - 1) // m * m


def _num_tensorcores():
    """2 on v7x (2 TCs/chip), 1 otherwise.  Detection is best-effort."""
    try:
        kind = jax.devices()[0].device_kind.lower()
    except Exception:
        return 1
    return 2 if ("v7" in kind or "tpu7" in kind) else 1


def _shift_table(H, W, K, pad, n_rep):
    """Per-tap lane roll amounts and 0/1 validity masks for 'same' conv.

    Masks are tiled `n_rep` times along the lane axis (one copy per batch
    element folded into the lanes); because every out-of-image position is
    masked to zero, pltpu.roll wrapping between batch elements is harmless.
    """
    L = H * W
    LB = n_rep * L
    hh, ww = np.meshgrid(np.arange(H), np.arange(W), indexing="ij")
    masks, shifts = [], []
    for kh in range(K):
        for kw in range(K):
            dh, dw = kh - pad, kw - pad
            valid = (hh + dh >= 0) & (hh + dh < H) & (ww + dw >= 0) & (ww + dw < W)
            masks.append(np.tile(valid.reshape(-1), n_rep).astype(np.float32))
            # rolled[i] = x[(i - shift) mod LB]; we want x[i + dh*W + dw]
            shifts.append(int((-(dh * W + dw)) % LB))
    return jnp.asarray(np.stack(masks)), tuple(shifts)


def _pack_conv_weight(w, cin_slot, cout_pad=None):
    """OIHW (Cout, Cin, K, K) -> (Cout[_pad], K*K*cin_slot) matching im2col rows."""
    cout, cin, K, _ = w.shape
    wt = jnp.transpose(w, (0, 2, 3, 1))                            # (Cout, K, K, Cin)
    wt = jnp.pad(wt, ((0, 0), (0, 0), (0, 0), (0, cin_slot - cin)))
    wm = wt.reshape(cout, K * K * cin_slot)
    if cout_pad is not None and cout_pad > cout:
        wm = jnp.pad(wm, ((0, cout_pad - cout), (0, 0)))
    return wm


# ------------------------------ Pallas kernel ------------------------------ #

def _residual_kernel(x_ref, m1_ref, w1_ref, b1_ref, m2_ref, w2_ref, b2_ref,
                     w3_ref, b3_ref, o_ref, col2_ref, *,
                     shifts1, shifts2, c_out, c2_slot):
    # x_ref: (C_pad, LB); rows >= c_out are zero padding.  o_ref: (c_out, LB).
    x = x_ref[...].astype(jnp.float32)

    # --- conv1 (3x3, pad 1): im2col built entirely in vregs (no scratch) ----
    pieces = []
    for t, s in enumerate(shifts1):
        shifted = x if s == 0 else pltpu.roll(x, s, 1)             # XLU lane rotate
        pieces.append(shifted * m1_ref[t:t + 1, :])                # zero-pad mask
    col1 = jnp.concatenate(pieces, axis=0)                         # (9*C_pad, LB), 8-aligned
    x1 = jnp.maximum(
        jnp.dot(w1_ref[...], col1, preferred_element_type=jnp.float32) + b1_ref[...],
        0.0)                                                       # (32, LB); rows 30..31 == 0

    # --- conv2 (5x5, pad 2): im2col into VMEM scratch ------------------------
    # Every tap writes a full, 8-aligned 32-row tile, so the scratch never needs
    # zero-initialization and there are no masked (partial-sublane) stores.
    for t, s in enumerate(shifts2):
        shifted = x1 if s == 0 else pltpu.roll(x1, s, 1)
        col2_ref[t * c2_slot:(t + 1) * c2_slot, :] = shifted * m2_ref[t:t + 1, :]
    x2 = jnp.maximum(
        jnp.dot(w2_ref[...], col2_ref[...], preferred_element_type=jnp.float32) + b2_ref[...],
        0.0)                                                       # (15, LB)

    # --- conv3 (1x1): plain dot ----------------------------------------------
    x3 = jnp.maximum(
        jnp.dot(w3_ref[...], x2, preferred_element_type=jnp.float32) + b3_ref[...],
        0.0)                                                       # (c_out, LB)

    # --- residual add + final ReLU -------------------------------------------
    o_ref[...] = jnp.maximum(x[:c_out, :] + x3, 0.0).astype(o_ref.dtype)


# ------------------------------ host wrapper ------------------------------- #

def build_residual_fn(params, x_shape):
    """Pre-pack weights/masks once and return a jitted forward fn for `x_shape`."""
    N, C, H, W = x_shape
    L = H * W

    # Grid strategy: fold batch into lanes; on v7x keep one group per TensorCore.
    G = _num_tensorcores()
    if N % G != 0 or ((N // G) * L) % 128 != 0:
        G = 1
    NB = N // G                      # batch elements folded per grid step
    LB = NB * L                      # lane width per grid step

    C_pad = _round_up(C, 8)          # conv1 input channels padded -> aligned concat
    C1_OUT, C2_OUT = 30, 15
    C1_PAD = _round_up(C1_OUT, 8)    # 32: conv1 output padded -> aligned conv2 stores

    # Shift / mask tables (masks tiled NB x along lanes).
    m1, s1 = _shift_table(H, W, 3, 1, NB)            # conv1: 3x3, pad 1
    m2, s2 = _shift_table(H, W, 5, 2, NB)            # conv2: 5x5, pad 2

    # Packed weights (zero rows/columns for all padding).
    w1m = _pack_conv_weight(params["w1"], C_pad, cout_pad=C1_PAD)   # (32, 9*C_pad)
    w2m = _pack_conv_weight(params["w2"], C1_PAD)                   # (15, 25*32)
    w3m = params["w3"].reshape(C, C2_OUT)                           # (C, 15), 1x1 conv
    b1 = jnp.pad(params["b1"], (0, C1_PAD - C1_OUT)).reshape(-1, 1)  # (32, 1)
    b2 = params["b2"].reshape(-1, 1)                                 # (15, 1)
    b3 = params["b3"].reshape(-1, 1)                                 # (C, 1)

    kern = functools.partial(_residual_kernel, shifts1=s1, shifts2=s2,
                             c_out=C, c2_slot=C1_PAD)

    call = pl.pallas_call(
        kern,
        out_shape=jax.ShapeDtypeStruct((C, N * L), jnp.float32),
        grid=(G,),
        in_specs=[
            pl.BlockSpec((C_pad, LB), lambda g: (0, g)),  # x (channel-padded, batch-folded)
            pl.BlockSpec(m1.shape, lambda g: (0, 0)),
            pl.BlockSpec(w1m.shape, lambda g: (0, 0)),
            pl.BlockSpec(b1.shape, lambda g: (0, 0)),
            pl.BlockSpec(m2.shape, lambda g: (0, 0)),
            pl.BlockSpec(w2m.shape, lambda g: (0, 0)),
            pl.BlockSpec(b2.shape, lambda g: (0, 0)),
            pl.BlockSpec(w3m.shape, lambda g: (0, 0)),
            pl.BlockSpec(b3.shape, lambda g: (0, 0)),
        ],
        out_specs=pl.BlockSpec((C, LB), lambda g: (0, g)),
        scratch_shapes=[
            pltpu.VMEM((len(s2) * C1_PAD, LB), jnp.float32),  # conv2 im2col
        ],
        compiler_params=pltpu.CompilerParams(
            dimension_semantics=("parallel",)),               # megacore over batch groups
        # TODO(synk): at much larger H*W, tile the lane axis / raise vmem_limit_bytes
        # (conv2 scratch = 25*32*H*W*4 B) to stay under v7x's 64 MiB VMEM.
    )

    def forward(x_nchw):
        # Fold batch into lanes: (N, C, H, W) -> (C, N*L), channel-pad to C_pad.
        xf = jnp.transpose(x_nchw.reshape(N, C, L), (1, 0, 2)).reshape(C, N * L)
        xf = jnp.pad(xf.astype(jnp.float32), ((0, C_pad - C), (0, 0)))
        of = call(xf, m1, w1m, b1, m2, w2m, b2, w3m, b3)
        out = jnp.transpose(of.reshape(C, N, L), (1, 0, 2)).reshape(N, C, H, W)
        return out.astype(x_nchw.dtype)

    return jax.jit(forward)


# -------------------------- params / reference ----------------------------- #

def init_params(key, in_channels):
    """Deterministic init matching PyTorch Conv2d default (uniform +-1/sqrt(fan_in))."""
    def conv_init(k, cout, cin, ksz):
        kw_, kb_ = jax.random.split(k)
        bound = 1.0 / (cin * ksz * ksz) ** 0.5
        w = jax.random.uniform(kw_, (cout, cin, ksz, ksz), jnp.float32, -bound, bound)
        b = jax.random.uniform(kb_, (cout,), jnp.float32, -bound, bound)
        return w, b

    k1, k2, k3 = jax.random.split(key, 3)
    w1, b1 = conv_init(k1, 30, in_channels, 3)
    w2, b2 = conv_init(k2, 15, 30, 5)
    w3, b3 = conv_init(k3, in_channels, 15, 1)
    return dict(w1=w1, b1=b1, w2=w2, b2=b2, w3=w3, b3=b3)


def reference_forward(x, params):
    def conv(x, w, b, pad):
        y = jax.lax.conv_general_dilated(
            x, w, window_strides=(1, 1), padding=[(pad, pad), (pad, pad)],
            dimension_numbers=("NCHW", "OIHW", "NCHW"))
        return jax.nn.relu(y + b[None, :, None, None])

    x1 = conv(x, params["w1"], params["b1"], 1)
    x1 = conv(x1, params["w2"], params["b2"], 2)
    x1 = conv(x1, params["w3"], params["b3"], 0)
    return jax.nn.relu(x + x1)


# ---------------------------------- main ------------------------------------ #

if __name__ == "__main__":
    key = jax.random.PRNGKey(0)
    k_x, k_p = jax.random.split(key)

    N, C, H, W = 2, 4, 16, 16                      # small NCHW input
    x = jax.random.normal(k_x, (N, C, H, W), jnp.float32)
    params = init_params(k_p, C)

    fwd = build_residual_fn(params, (N, C, H, W))  # one-time prep + jit
    out = jax.block_until_ready(fwd(x))

    ref = reference_forward(x, params)
    assert out.shape == (N, C, H, W)
    assert jnp.allclose(out, ref, atol=1e-4, rtol=1e-4), "mismatch vs reference"

    print("KERNEL_OK")
</pallas_src>

<mosaic_0001>
module attributes {stable_mosaic.version = 11 : i64} {
  func.func @_residual_kernel(%arg0: i32, %arg1: memref<8x512xf32, #tpu.memory_space<vmem>>, %arg2: memref<9x512xf32, #tpu.memory_space<vmem>>, %arg3: memref<32x72xf32, #tpu.memory_space<vmem>>, %arg4: memref<32x1xf32, #tpu.memory_space<vmem>>, %arg5: memref<25x512xf32, #tpu.memory_space<vmem>>, %arg6: memref<15x800xf32, #tpu.memory_space<vmem>>, %arg7: memref<15x1xf32, #tpu.memory_space<vmem>>, %arg8: memref<4x15xf32, #tpu.memory_space<vmem>>, %arg9: memref<4x1xf32, #tpu.memory_space<vmem>>, %arg10: memref<4x512xf32, #tpu.memory_space<vmem>>, %arg11: memref<800x512xf32, #tpu.memory_space<vmem>>) attributes {dimension_semantics = [#tpu.dimension_semantics<parallel>], iteration_bounds = array<i64: 1>, scalar_prefetch = 0 : i64, scratch_operands = 1 : i64, tpu.core_type = #tpu.core_type<tc>, window_params = [{transform_indices = @transform_0, window_bounds = array<i64: 8, 512>}, {pipeline_mode = #tpu.pipeline_mode<synchronous>, transform_indices = @transform_1, window_bounds = array<i64: 9, 512>}, {pipeline_mode = #tpu.pipeline_mode<synchronous>, transform_indices = @transform_2, window_bounds = array<i64: 32, 72>}, {pipeline_mode = #tpu.pipeline_mode<synchronous>, transform_indices = @transform_3, window_bounds = array<i64: 32, 1>}, {pipeline_mode = #tpu.pipeline_mode<synchronous>, transform_indices = @transform_4, window_bounds = array<i64: 25, 512>}, {pipeline_mode = #tpu.pipeline_mode<synchronous>, transform_indices = @transform_5, window_bounds = array<i64: 15, 800>}, {pipeline_mode = #tpu.pipeline_mode<synchronous>, transform_indices = @transform_6, window_bounds = array<i64: 15, 1>}, {pipeline_mode = #tpu.pipeline_mode<synchronous>, transform_indices = @transform_7, window_bounds = array<i64: 4, 15>}, {pipeline_mode = #tpu.pipeline_mode<synchronous>, transform_indices = @transform_8, window_bounds = array<i64: 4, 1>}, {transform_indices = @transform_9, window_bounds = array<i64: 4, 512>}]} {
    %c0 = arith.constant 0 : index
    %c0_0 = arith.constant 0 : index
    %0 = vector.load %arg1[%c0, %c0_0] : memref<8x512xf32, #tpu.memory_space<vmem>>, vector<8x512xf32>
    %c17_i32 = arith.constant 17 : i32
    %1 = tpu.dynamic_rotate %0 by %c17_i32 dim 1 : vector<8x512xf32>, i32 -> vector<8x512xf32>
    %c0_1 = arith.constant 0 : index
    %c0_2 = arith.constant 0 : index
    %2 = vector.load %arg2[%c0_1, %c0_2] : memref<9x512xf32, #tpu.memory_space<vmem>>, vector<1x512xf32>
    %3 = vector.broadcast %2 : vector<1x512xf32> to vector<8x512xf32>
    %4 = arith.mulf %1, %3 : vector<8x512xf32>
    %c16_i32 = arith.constant 16 : i32
    %5 = tpu.dynamic_rotate %0 by %c16_i32 dim 1 : vector<8x512xf32>, i32 -> vector<8x512xf32>
    %c1 = arith.constant 1 : index
    %c0_3 = arith.constant 0 : index
    %6 = vector.load %arg2[%c1, %c0_3] : memref<9x512xf32, #tpu.memory_space<vmem>>, vector<1x512xf32>
    %7 = vector.broadcast %6 : vector<1x512xf32> to vector<8x512xf32>
    %8 = arith.mulf %5, %7 : vector<8x512xf32>
    %c15_i32 = arith.constant 15 : i32
    %9 = tpu.dynamic_rotate %0 by %c15_i32 dim 1 : vector<8x512xf32>, i32 -> vector<8x512xf32>
    %c2 = arith.constant 2 : index
    %c0_4 = arith.constant 0 : index
    %10 = vector.load %arg2[%c2, %c0_4] : memref<9x512xf32, #tpu.memory_space<vmem>>, vector<1x512xf32>
    %11 = vector.broadcast %10 : vector<1x512xf32> to vector<8x512xf32>
    %12 = arith.mulf %9, %11 : vector<8x512xf32>
    %c1_i32 = arith.constant 1 : i32
    %13 = tpu.dynamic_rotate %0 by %c1_i32 dim 1 : vector<8x512xf32>, i32 -> vector<8x512xf32>
    %c3 = arith.constant 3 : index
    %c0_5 = arith.constant 0 : index
    %14 = vector.load %arg2[%c3, %c0_5] : memref<9x512xf32, #tpu.memory_space<vmem>>, vector<1x512xf32>
    %15 = vector.broadcast %14 : vector<1x512xf32> to vector<8x512xf32>
    %16 = arith.mulf %13, %15 : vector<8x512xf32>
    %c4 = arith.constant 4 : index
    %c0_6 = arith.constant 0 : index
    %17 = vector.load %arg2[%c4, %c0_6] : memref<9x512xf32, #tpu.memory_space<vmem>>, vector<1x512xf32>
    %18 = vector.broadcast %17 : vector<1x512xf32> to vector<8x512xf32>
    %19 = arith.mulf %0, %18 : vector<8x512xf32>
    %c511_i32 = arith.constant 511 : i32
    %20 = tpu.dynamic_rotate %0 by %c511_i32 dim 1 : vector<8x512xf32>, i32 -> vector<8x512xf32>
    %c5 = arith.constant 5 : index
    %c0_7 = arith.constant 0 : index
    %21 = vector.load %arg2[%c5, %c0_7] : memref<9x512xf32, #tpu.memory_space<vmem>>, vector<1x512xf32>
    %22 = vector.broadcast %21 : vector<1x512xf32> to vector<8x512xf32>
    %23 = arith.mulf %20, %22 : vector<8x512xf32>
    %c497_i32 = arith.constant 497 : i32
    %24 = tpu.dynamic_rotate %0 by %c497_i32 dim 1 : vector<8x512xf32>, i32 -> vector<8x512xf32>
    %c6 = arith.constant 6 : index
    %c0_8 = arith.constant 0 : index
    %25 = vector.load %arg2[%c6, %c0_8] : memref<9x512xf32, #tpu.memory_space<vmem>>, vector<1x512xf32>
    %26 = vector.broadcast %25 : vector<1x512xf32> to vector<8x512xf32>
    %27 = arith.mulf %24, %26 : vector<8x512xf32>
    %c496_i32 = arith.constant 496 : i32
    %28 = tpu.dynamic_rotate %0 by %c496_i32 dim 1 : vector<8x512xf32>, i32 -> vector<8x512xf32>
    %c7 = arith.constant 7 : index
    %c0_9 = arith.constant 0 : index
    %29 = vector.load %arg2[%c7, %c0_9] : memref<9x512xf32, #tpu.memory_space<vmem>>, vector<1x512xf32>
    %30 = vector.broadcast %29 : vector<1x512xf32> to vector<8x512xf32>
    %31 = arith.mulf %28, %30 : vector<8x512xf32>
    %c495_i32 = arith.constant 495 : i32
    %32 = tpu.dynamic_rotate %0 by %c495_i32 dim 1 : vector<8x512xf32>, i32 -> vector<8x512xf32>
    %c8 = arith.constant 8 : index
    %c0_10 = arith.constant 0 : index
    %33 = vector.load %arg2[%c8, %c0_10] : memref<9x512xf32, #tpu.memory_space<vmem>>, vector<1x512xf32>
    %34 = vector.broadcast %33 : vector<1x512xf32> to vector<8x512xf32>
    %35 = arith.mulf %32, %34 : vector<8x512xf32>
    %36 = tpu.concatenate %4, %8, %12, %16, %19, %23, %27, %31, %35 in 0 : vector<8x512xf32>, vector<8x512xf32>, vector<8x512xf32>, vector<8x512xf32>, vector<8x512xf32>, vector<8x512xf32>, vector<8x512xf32>, vector<8x512xf32>, vector<8x512xf32> -> vector<72x512xf32>
    %c0_11 = arith.constant 0 : index
    %c0_12 = arith.constant 0 : index
    %37 = vector.load %arg3[%c0_11, %c0_12] : memref<32x72xf32, #tpu.memory_space<vmem>>, vector<32x72xf32>
    %cst = arith.constant dense<0.000000e+00> : vector<32x512xf32>
    %38 = tpu.matmul %37, %36, %cst {dimension_numbers = #tpu.dot_dimension_numbers<[1], [0], [0], [1], [0, 0, 1, 1], [], []>} : vector<32x72xf32>, vector<72x512xf32>, vector<32x512xf32> -> vector<32x512xf32>
    %c0_13 = arith.constant 0 : index
    %c0_14 = arith.constant 0 : index
    %39 = vector.load %arg4[%c0_13, %c0_14] : memref<32x1xf32, #tpu.memory_space<vmem>>, vector<32x1xf32>
    %40 = vector.broadcast %39 : vector<32x1xf32> to vector<32x512xf32>
    %41 = arith.addf %38, %40 : vector<32x512xf32>
    %cst_15 = arith.constant 0.000000e+00 : f32
    %42 = vector.broadcast %cst_15 : f32 to vector<32x512xf32>
    %43 = arith.maximumf %41, %42 : vector<32x512xf32>
    %c34_i32 = arith.constant 34 : i32
    %44 = tpu.dynamic_rotate %43 by %c34_i32 dim 1 : vector<32x512xf32>, i32 -> vector<32x512xf32>
    %c0_16 = arith.constant 0 : index
    %c0_17 = arith.constant 0 : index
    %45 = vector.load %arg5[%c0_16, %c0_17] : memref<25x512xf32, #tpu.memory_space<vmem>>, vector<1x512xf32>
    %46 = vector.broadcast %45 : vector<1x512xf32> to vector<32x512xf32>
    %47 = arith.mulf %44, %46 : vector<32x512xf32>
    %c0_18 = arith.constant 0 : index
    %c0_19 = arith.constant 0 : index
    %48 = vector.load %arg11[%c0_18, %c0_19] : memref<800x512xf32, #tpu.memory_space<vmem>>, vector<32x512xf32>
    tpu.vector_store %arg11[%c0_18, %c0_19], %47 {strides = array<i32>} : memref<800x512xf32, #tpu.memory_space<vmem>>, vector<32x512xf32>,
    %c33_i32 = arith.constant 33 : i32
    %49 = tpu.dynamic_rotate %43 by %c33_i32 dim 1 : vector<32x512xf32>, i32 -> vector<32x512xf32>
    %c1_20 = arith.constant 1 : index
    %c0_21 = arith.constant 0 : index
    %50 = vector.load %arg5[%c1_20, %c0_21] : memref<25x512xf32, #tpu.memory_space<vmem>>, vector<1x512xf32>
    %51 = vector.broadcast %50 : vector<1x512xf32> to vector<32x512xf32>
    %52 = arith.mulf %49, %51 : vector<32x512xf32>
    %c32 = arith.constant 32 : index
    %c0_22 = arith.constant 0 : index
    %53 = vector.load %arg11[%c32, %c0_22] : memref<800x512xf32, #tpu.memory_space<vmem>>, vector<32x512xf32>
    tpu.vector_store %arg11[%c32, %c0_22], %52 {strides = array<i32>} : memref<800x512xf32, #tpu.memory_space<vmem>>, vector<32x512xf32>,
    %c32_i32 = arith.constant 32 : i32
    %54 = tpu.dynamic_rotate %43 by %c32_i32 dim 1 : vector<32x512xf32>, i32 -> vector<32x512xf32>
    %c2_23 = arith.constant 2 : index
    %c0_24 = arith.constant 0 : index
    %55 = vector.load %arg5[%c2_23, %c0_24] : memref<25x512xf32, #tpu.memory_space<vmem>>, vector<1x512xf32>
    %56 = vector.broadcast %55 : vector<1x512xf32> to vector<32x512xf32>
    %57 = arith.mulf %54, %56 : vector<32x512xf32>
    %c64 = arith.constant 64 : index
    %c0_25 = arith.constant 0 : index
    %58 = vector.load %arg11[%c64, %c0_25] : memref<800x512xf32, #tpu.memory_space<vmem>>, vector<32x512xf32>
    tpu.vector_store %arg11[%c64, %c0_25], %57 {strides = array<i32>} : memref<800x512xf32, #tpu.memory_space<vmem>>, vector<32x512xf32>,
    %c31_i32 = arith.constant 31 : i32
    %59 = tpu.dynamic_rotate %43 by %c31_i32 dim 1 : vector<32x512xf32>, i32 -> vector<32x512xf32>
    %c3_26 = arith.constant 3 : index
    %c0_27 = arith.constant 0 : index
    %60 = vector.load %arg5[%c3_26, %c0_27] : memref<25x512xf32, #tpu.memory_space<vmem>>, vector<1x512xf32>
    %61 = vector.broadcast %60 : vector<1x512xf32> to vector<32x512xf32>
    %62 = arith.mulf %59, %61 : vector<32x512xf32>
    %c96 = arith.constant 96 : index
    %c0_28 = arith.constant 0 : index
    %63 = vector.load %arg11[%c96, %c0_28] : memref<800x512xf32, #tpu.memory_space<vmem>>, vector<32x512xf32>
    tpu.vector_store %arg11[%c96, %c0_28], %62 {strides = array<i32>} : memref<800x512xf32, #tpu.memory_space<vmem>>, vector<32x512xf32>,
    %c30_i32 = arith.constant 30 : i32
    %64 = tpu.dynamic_rotate %43 by %c30_i32 dim 1 : vector<32x512xf32>, i32 -> vector<32x512xf32>
    %c4_29 = arith.constant 4 : index
    %c0_30 = arith.constant 0 : index
    %65 = vector.load %arg5[%c4_29, %c0_30] : memref<25x512xf32, #tpu.memory_space<vmem>>, vector<1x512xf32>
    %66 = vector.broadcast %65 : vector<1x512xf32> to vector<32x512xf32>
    %67 = arith.mulf %64, %66 : vector<32x512xf32>
    %c128 = arith.constant 128 : index
    %c0_31 = arith.constant 0 : index
    %68 = vector.load %arg11[%c128, %c0_31] : memref<800x512xf32, #tpu.memory_space<vmem>>, vector<32x512xf32>
    tpu.vector_store %arg11[%c128, %c0_31], %67 {strides = array<i32>} : memref<800x512xf32, #tpu.memory_space<vmem>>, vector<32x512xf32>,
    %c18_i32 = arith.constant 18 : i32
    %69 = tpu.dynamic_rotate %43 by %c18_i32 dim 1 : vector<32x512xf32>, i32 -> vector<32x512xf32>
    %c5_32 = arith.constant 5 : index
    %c0_33 = arith.constant 0 : index
    %70 = vector.load %arg5[%c5_32, %c0_33] : memref<25x512xf32, #tpu.memory_space<vmem>>, vector<1x512xf32>
    %71 = vector.broadcast %70 : vector<1x512xf32> to vector<32x512xf32>
    %72 = arith.mulf %69, %71 : vector<32x512xf32>
    %c160 = arith.constant 160 : index
    %c0_34 = arith.constant 0 : index
    %73 = vector.load %arg11[%c160, %c0_34] : memref<800x512xf32, #tpu.memory_space<vmem>>, vector<32x512xf32>
    tpu.vector_store %arg11[%c160, %c0_34], %72 {strides = array<i32>} : memref<800x512xf32, #tpu.memory_space<vmem>>, vector<32x512xf32>,
    %c17_i32_35 = arith.constant 17 : i32
    %74 = tpu.dynamic_rotate %43 by %c17_i32_35 dim 1 : vector<32x512xf32>, i32 -> vector<32x512xf32>
    %c6_36 = arith.constant 6 : index
    %c0_37 = arith.constant 0 : index
    %75 = vector.load %arg5[%c6_36, %c0_37] : memref<25x512xf32, #tpu.memory_space<vmem>>, vector<1x512xf32>
    %76 = vector.broadcast %75 : vector<1x512xf32> to vector<32x512xf32>
    %77 = arith.mulf %74, %76 : vector<32x512xf32>
    %c192 = arith.constant 192 : index
    %c0_38 = arith.constant 0 : index
    %78 = vector.load %arg11[%c192, %c0_38] : memref<800x512xf32, #tpu.memory_space<vmem>>, vector<32x512xf32>
    tpu.vector_store %arg11[%c192, %c0_38], %77 {strides = array<i32>} : memref<800x512xf32, #tpu.memory_space<vmem>>, vector<32x512xf32>,
    %c16_i32_39 = arith.constant 16 : i32
    %79 = tpu.dynamic_rotate %43 by %c16_i32_39 dim 1 : vector<32x512xf32>, i32 -> vector<32x512xf32>
    %c7_40 = arith.constant 7 : index
    %c0_41 = arith.constant 0 : index
    %80 = vector.load %arg5[%c7_40, %c0_41] : memref<25x512xf32, #tpu.memory_space<vmem>>, vector<1x512xf32>
    %81 = vector.broadcast %80 : vector<1x512xf32> to vector<32x512xf32>
    %82 = arith.mulf %79, %81 : vector<32x512xf32>
    %c224 = arith.constant 224 : index
    %c0_42 = arith.constant 0 : index
    %83 = vector.load %arg11[%c224, %c0_42] : memref<800x512xf32, #tpu.memory_space<vmem>>, vector<32x512xf32>
    tpu.vector_store %arg11[%c224, %c0_42], %82 {strides = array<i32>} : memref<800x512xf32, #tpu.memory_space<vmem>>, vector<32x512xf32>,
    %c15_i32_43 = arith.constant 15 : i32
    %84 = tpu.dynamic_rotate %43 by %c15_i32_43 dim 1 : vector<32x512xf32>, i32 -> vector<32x512xf32>
    %c8_44 = arith.constant 8 : index
    %c0_45 = arith.constant 0 : index
    %85 = vector.load %arg5[%c8_44, %c0_45] : memref<25x512xf32, #tpu.memory_space<vmem>>, vector<1x512xf32>
    %86 = vector.broadcast %85 : vector<1x512xf32> to vector<32x512xf32>
    %87 = arith.mulf %84, %86 : vector<32x512xf32>
    %c256 = arith.constant 256 : index
    %c0_46 = arith.constant 0 : index
    %88 = vector.load %arg11[%c256, %c0_46] : memref<800x512xf32, #tpu.memory_space<vmem>>, vector<32x512xf32>
    tpu.vector_store %arg11[%c256, %c0_46], %87 {strides = array<i32>} : memref<800x512xf32, #tpu.memory_space<vmem>>, vector<32x512xf32>,
    %c14_i32 = arith.constant 14 : i32
    %89 = tpu.dynamic_rotate %43 by %c14_i32 dim 1 : vector<32x512xf32>, i32 -> vector<32x512xf32>
    %c9 = arith.constant 9 : index
    %c0_47 = arith.constant 0 : index
    %90 = vector.load %arg5[%c9, %c0_47] : memref<25x512xf32, #tpu.memory_space<vmem>>, vector<1x512xf32>
    %91 = vector.broadcast %90 : vector<1x512xf32> to vector<32x512xf32>
    %92 = arith.mulf %89, %91 : vector<32x512xf32>
    %c288 = arith.constant 288 : index
    %c0_48 = arith.constant 0 : index
    %93 = vector.load %arg11[%c288, %c0_48] : memref<800x512xf32, #tpu.memory_space<vmem>>, vector<32x512xf32>
    tpu.vector_store %arg11[%c288, %c0_48], %92 {strides = array<i32>} : memref<800x512xf32, #tpu.memory_space<vmem>>, vector<32x512xf32>,
    %c2_i32 = arith.constant 2 : i32
    %94 = tpu.dynamic_rotate %43 by %c2_i32 dim 1 : vector<32x512xf32>, i32 -> vector<32x512xf32>
    %c10 = arith.constant 10 : index
    %c0_49 = arith.constant 0 : index
    %95 = vector.load %arg5[%c10, %c0_49] : memref<25x512xf32, #tpu.memory_space<vmem>>, vector<1x512xf32>
    %96 = vector.broadcast %95 : vector<1x512xf32> to vector<32x512xf32>
    %97 = arith.mulf %94, %96 : vector<32x512xf32>
    %c320 = arith.constant 320 : index
    %c0_50 = arith.constant 0 : index
    %98 = vector.load %arg11[%c320, %c0_50] : memref<800x512xf32, #tpu.memory_space<vmem>>, vector<32x512xf32>
    tpu.vector_store %arg11[%c320, %c0_50], %97 {strides = array<i32>} : memref<800x512xf32, #tpu.memory_space<vmem>>, vector<32x512xf32>,
    %c1_i32_51 = arith.constant 1 : i32
    %99 = tpu.dynamic_rotate %43 by %c1_i32_51 dim 1 : vector<32x512xf32>, i32 -> vector<32x512xf32>
    %c11 = arith.constant 11 : index
    %c0_52 = arith.constant 0 : index
    %100 = vector.load %arg5[%c11, %c0_52] : memref<25x512xf32, #tpu.memory_space<vmem>>, vector<1x512xf32>
    %101 = vector.broadcast %100 : vector<1x512xf32> to vector<32x512xf32>
    %102 = arith.mulf %99, %101 : vector<32x512xf32>
    %c352 = arith.constant 352 : index
    %c0_53 = arith.constant 0 : index
    %103 = vector.load %arg11[%c352, %c0_53] : memref<800x512xf32, #tpu.memory_space<vmem>>, vector<32x512xf32>
    tpu.vector_store %arg11[%c352, %c0_53], %102 {strides = array<i32>} : memref<800x512xf32, #tpu.memory_space<vmem>>, vector<32x512xf32>,
    %c12 = arith.constant 12 : index
    %c0_54 = arith.constant 0 : index
    %104 = vector.load %arg5[%c12, %c0_54] : memref<25x512xf32, #tpu.memory_space<vmem>>, vector<1x512xf32>
    %105 = vector.broadcast %104 : vector<1x512xf32> to vector<32x512xf32>
    %106 = arith.mulf %43, %105 : vector<32x512xf32>
    %c384 = arith.constant 384 : index
    %c0_55 = arith.constant 0 : index
    %107 = vector.load %arg11[%c384, %c0_55] : memref<800x512xf32, #tpu.memory_space<vmem>>, vector<32x512xf32>
    tpu.vector_store %arg11[%c384, %c0_55], %106 {strides = array<i32>} : memref<800x512xf32, #tpu.memory_space<vmem>>, vector<32x512xf32>,
    %c511_i32_56 = arith.constant 511 : i32
    %108 = tpu.dynamic_rotate %43 by %c511_i32_56 dim 1 : vector<32x512xf32>, i32 -> vector<32x512xf32>
    %c13 = arith.constant 13 : index
    %c0_57 = arith.constant 0 : index
    %109 = vector.load %arg5[%c13, %c0_57] : memref<25x512xf32, #tpu.memory_space<vmem>>, vector<1x512xf32>
    %110 = vector.broadcast %109 : vector<1x512xf32> to vector<32x512xf32>
    %111 = arith.mulf %108, %110 : vector<32x512xf32>
    %c416 = arith.constant 416 : index
    %c0_58 = arith.constant 0 : index
    %112 = vector.load %arg11[%c416, %c0_58] : memref<800x512xf32, #tpu.memory_space<vmem>>, vector<32x512xf32>
    tpu.vector_store %arg11[%c416, %c0_58], %111 {strides = array<i32>} : memref<800x512xf32, #tpu.memory_space<vmem>>, vector<32x512xf32>,
    %c510_i32 = arith.constant 510 : i32
    %113 = tpu.dynamic_rotate %43 by %c510_i32 dim 1 : vector<32x512xf32>, i32 -> vector<32x512xf32>
    %c14 = arith.constant 14 : index
    %c0_59 = arith.constant 0 : index
    %114 = vector.load %arg5[%c14, %c0_59] : memref<25x512xf32, #tpu.memory_space<vmem>>, vector<1x512xf32>
    %115 = vector.broadcast %114 : vector<1x512xf32> to vector<32x512xf32>
    %116 = arith.mulf %113, %115 : vector<32x512xf32>
    %c448 = arith.constant 448 : index
    %c0_60 = arith.constant 0 : index
    %117 = vector.load %arg11[%c448, %c0_60] : memref<800x512xf32, #tpu.memory_space<vmem>>, vector<32x512xf32>
    tpu.vector_store %arg11[%c448, %c0_60], %116 {strides = array<i32>} : memref<800x512xf32, #tpu.memory_space<vmem>>, vector<32x512xf32>,
    %c498_i32 = arith.constant 498 : i32
    %118 = tpu.dynamic_rotate %43 by %c498_i32 dim 1 : vector<32x512xf32>, i32 -> vector<32x512xf32>
    %c15 = arith.constant 15 : index
    %c0_61 = arith.constant 0 : index
    %119 = vector.load %arg5[%c15, %c0_61] : memref<25x512xf32, #tpu.memory_space<vmem>>, vector<1x512xf32>
    %120 = vector.broadcast %119 : vector<1x512xf32> to vector<32x512xf32>
    %121 = arith.mulf %118, %120 : vector<32x512xf32>
    %c480 = arith.constant 480 : index
    %c0_62 = arith.constant 0 : index
    %122 = vector.load %arg11[%c480, %c0_62] : memref<800x512xf32, #tpu.memory_space<vmem>>, vector<32x512xf32>
    tpu.vector_store %arg11[%c480, %c0_62], %121 {strides = array<i32>} : memref<800x512xf32, #tpu.memory_space<vmem>>, vector<32x512xf32>,
    %c497_i32_63 = arith.constant 497 : i32
    %123 = tpu.dynamic_rotate %43 by %c497_i32_63 dim 1 : vector<32x512xf32>, i32 -> vector<32x512xf32>
    %c16 = arith.constant 16 : index
    %c0_64 = arith.constant 0 : index
    %124 = vector.load %arg5[%c16, %c0_64] : memref<25x512xf32, #tpu.memory_space<vmem>>, vector<1x512xf32>
    %125 = vector.broadcast %124 : vector<1x512xf32> to vector<32x512xf32>
    %126 = arith.mulf %123, %125 : vector<32x512xf32>
    %c512 = arith.constant 512 : index
    %c0_65 = arith.constant 0 : index
    %127 = vector.load %arg11[%c512, %c0_65] : memref<800x512xf32, #tpu.memory_space<vmem>>, vector<32x512xf32>
    tpu.vector_store %arg11[%c512, %c0_65], %126 {strides = array<i32>} : memref<800x512xf32, #tpu.memory_space<vmem>>, vector<32x512xf32>,
    %c496_i32_66 = arith.constant 496 : i32
    %128 = tpu.dynamic_rotate %43 by %c496_i32_66 dim 1 : vector<32x512xf32>, i32 -> vector<32x512xf32>
    %c17 = arith.constant 17 : index
    %c0_67 = arith.constant 0 : index
    %129 = vector.load %arg5[%c17, %c0_67] : memref<25x512xf32, #tpu.memory_space<vmem>>, vector<1x512xf32>
    %130 = vector.broadcast %129 : vector<1x512xf32> to vector<32x512xf32>
    %131 = arith.mulf %128, %130 : vector<32x512xf32>
    %c544 = arith.constant 544 : index
    %c0_68 = arith.constant 0 : index
    %132 = vector.load %arg11[%c544, %c0_68] : memref<800x512xf32, #tpu.memory_space<vmem>>, vector<32x512xf32>
    tpu.vector_store %arg11[%c544, %c0_68], %131 {strides = array<i32>} : memref<800x512xf32, #tpu.memory_space<vmem>>, vector<32x512xf32>,
    %c495_i32_69 = arith.constant 495 : i32
    %133 = tpu.dynamic_rotate %43 by %c495_i32_69 dim 1 : vector<32x512xf32>, i32 -> vector<32x512xf32>
    %c18 = arith.constant 18 : index
    %c0_70 = arith.constant 0 : index
    %134 = vector.load %arg5[%c18, %c0_70] : memref<25x512xf32, #tpu.memory_space<vmem>>, vector<1x512xf32>
    %135 = vector.broadcast %134 : vector<1x512xf32> to vector<32x512xf32>
    %136 = arith.mulf %133, %135 : vector<32x512xf32>
    %c576 = arith.constant 576 : index
    %c0_71 = arith.constant 0 : index
    %137 = vector.load %arg11[%c576, %c0_71] : memref<800x512xf32, #tpu.memory_space<vmem>>, vector<32x512xf32>
    tpu.vector_store %arg11[%c576, %c0_71], %136 {strides = array<i32>} : memref<800x512xf32, #tpu.memory_space<vmem>>, vector<32x512xf32>,
    %c494_i32 = arith.constant 494 : i32
    %138 = tpu.dynamic_rotate %43 by %c494_i32 dim 1 : vector<32x512xf32>, i32 -> vector<32x512xf32>
    %c19 = arith.constant 19 : index
    %c0_72 = arith.constant 0 : index
    %139 = vector.load %arg5[%c19, %c0_72] : memref<25x512xf32, #tpu.memory_space<vmem>>, vector<1x512xf32>
    %140 = vector.broadcast %139 : vector<1x512xf32> to vector<32x512xf32>
    %141 = arith.mulf %138, %140 : vector<32x512xf32>
    %c608 = arith.constant 608 : index
    %c0_73 = arith.constant 0 : index
    %142 = vector.load %arg11[%c608, %c0_73] : memref<800x512xf32, #tpu.memory_space<vmem>>, vector<32x512xf32>
    tpu.vector_store %arg11[%c608, %c0_73], %141 {strides = array<i32>} : memref<800x512xf32, #tpu.memory_space<vmem>>, vector<32x512xf32>,
    %c482_i32 = arith.constant 482 : i32
    %143 = tpu.dynamic_rotate %43 by %c482_i32 dim 1 : vector<32x512xf32>, i32 -> vector<32x512xf32>
    %c20 = arith.constant 20 : index
    %c0_74 = arith.constant 0 : index
    %144 = vector.load %arg5[%c20, %c0_74] : memref<25x512xf32, #tpu.memory_space<vmem>>, vector<1x512xf32>
    %145 = vector.broadcast %144 : vector<1x512xf32> to vector<32x512xf32>
    %146 = arith.mulf %143, %145 : vector<32x512xf32>
    %c640 = arith.constant 640 : index
    %c0_75 = arith.constant 0 : index
    %147 = vector.load %arg11[%c640, %c0_75] : memref<800x512xf32, #tpu.memory_space<vmem>>, vector<32x512xf32>
    tpu.vector_store %arg11[%c640, %c0_75], %146 {strides = array<i32>} : memref<800x512xf32, #tpu.memory_space<vmem>>, vector<32x512xf32>,
    %c481_i32 = arith.constant 481 : i32
    %148 = tpu.dynamic_rotate %43 by %c481_i32 dim 1 : vector<32x512xf32>, i32 -> vector<32x512xf32>
    %c21 = arith.constant 21 : index
    %c0_76 = arith.constant 0 : index
    %149 = vector.load %arg5[%c21, %c0_76] : memref<25x512xf32, #tpu.memory_space<vmem>>, vector<1x512xf32>
    %150 = vector.broadcast %149 : vector<1x512xf32> to vector<32x512xf32>
    %151 = arith.mulf %148, %150 : vector<32x512xf32>
    %c672 = arith.constant 672 : index
    %c0_77 = arith.constant 0 : index
    %152 = vector.load %arg11[%c672, %c0_77] : memref<800x512xf32, #tpu.memory_space<vmem>>, vector<32x512xf32>
    tpu.vector_store %arg11[%c672, %c0_77], %151 {strides = array<i32>} : memref<800x512xf32, #tpu.memory_space<vmem>>, vector<32x512xf32>,
    %c480_i32 = arith.constant 480 : i32
    %153 = tpu.dynamic_rotate %43 by %c480_i32 dim 1 : vector<32x512xf32>, i32 -> vector<32x512xf32>
    %c22 = arith.constant 22 : index
    %c0_78 = arith.constant 0 : index
    %154 = vector.load %arg5[%c22, %c0_78] : memref<25x512xf32, #tpu.memory_space<vmem>>, vector<1x512xf32>
    %155 = vector.broadcast %154 : vector<1x512xf32> to vector<32x512xf32>
    %156 = arith.mulf %153, %155 : vector<32x512xf32>
    %c704 = arith.constant 704 : index
    %c0_79 = arith.constant 0 : index
    %157 = vector.load %arg11[%c704, %c0_79] : memref<800x512xf32, #tpu.memory_space<vmem>>, vector<32x512xf32>
    tpu.vector_store %arg11[%c704, %c0_79], %156 {strides = array<i32>} : memref<800x512xf32, #tpu.memory_space<vmem>>, vector<32x512xf32>,
    %c479_i32 = arith.constant 479 : i32
    %158 = tpu.dynamic_rotate %43 by %c479_i32 dim 1 : vector<32x512xf32>, i32 -> vector<32x512xf32>
    %c23 = arith.constant 23 : index
    %c0_80 = arith.constant 0 : index
    %159 = vector.load %arg5[%c23, %c0_80] : memref<25x512xf32, #tpu.memory_space<vmem>>, vector<1x512xf32>
    %160 = vector.broadcast %159 : vector<1x512xf32> to vector<32x512xf32>
    %161 = arith.mulf %158, %160 : vector<32x512xf32>
    %c736 = arith.constant 736 : index
    %c0_81 = arith.constant 0 : index
    %162 = vector.load %arg11[%c736, %c0_81] : memref<800x512xf32, #tpu.memory_space<vmem>>, vector<32x512xf32>
    tpu.vector_store %arg11[%c736, %c0_81], %161 {strides = array<i32>} : memref<800x512xf32, #tpu.memory_space<vmem>>, vector<32x512xf32>,
    %c478_i32 = arith.constant 478 : i32
    %163 = tpu.dynamic_rotate %43 by %c478_i32 dim 1 : vector<32x512xf32>, i32 -> vector<32x512xf32>
    %c24 = arith.constant 24 : index
    %c0_82 = arith.constant 0 : index
    %164 = vector.load %arg5[%c24, %c0_82] : memref<25x512xf32, #tpu.memory_space<vmem>>, vector<1x512xf32>
    %165 = vector.broadcast %164 : vector<1x512xf32> to vector<32x512xf32>
    %166 = arith.mulf %163, %165 : vector<32x512xf32>
    %c768 = arith.constant 768 : index
    %c0_83 = arith.constant 0 : index
    %167 = vector.load %arg11[%c768, %c0_83] : memref<800x512xf32, #tpu.memory_space<vmem>>, vector<32x512xf32>
    tpu.vector_store %arg11[%c768, %c0_83], %166 {strides = array<i32>} : memref<800x512xf32, #tpu.memory_space<vmem>>, vector<32x512xf32>,
    %c0_84 = arith.constant 0 : index
    %c0_85 = arith.constant 0 : index
    %168 = vector.load %arg6[%c0_84, %c0_85] : memref<15x800xf32, #tpu.memory_space<vmem>>, vector<15x800xf32>
    %c0_86 = arith.constant 0 : index
    %c0_87 = arith.constant 0 : index
    %169 = vector.load %arg11[%c0_86, %c0_87] : memref<800x512xf32, #tpu.memory_space<vmem>>, vector<800x512xf32>
    %cst_88 = arith.constant dense<0.000000e+00> : vector<15x512xf32>
    %170 = tpu.matmul %168, %169, %cst_88 {dimension_numbers = #tpu.dot_dimension_numbers<[1], [0], [0], [1], [0, 0, 1, 1], [], []>} : vector<15x800xf32>, vector<800x512xf32>, vector<15x512xf32> -> vector<15x512xf32>
    %c0_89 = arith.constant 0 : index
    %c0_90 = arith.constant 0 : index
    %171 = vector.load %arg7[%c0_89, %c0_90] : memref<15x1xf32, #tpu.memory_space<vmem>>, vector<15x1xf32>
    %172 = vector.broadcast %171 : vector<15x1xf32> to vector<15x512xf32>
    %173 = arith.addf %170, %172 : vector<15x512xf32>
    %cst_91 = arith.constant 0.000000e+00 : f32
    %174 = vector.broadcast %cst_91 : f32 to vector<15x512xf32>
    %175 = arith.maximumf %173, %174 : vector<15x512xf32>
    %c0_92 = arith.constant 0 : index
    %c0_93 = arith.constant 0 : index
    %176 = vector.load %arg8[%c0_92, %c0_93] : memref<4x15xf32, #tpu.memory_space<vmem>>, vector<4x15xf32>
    %cst_94 = arith.constant dense<0.000000e+00> : vector<4x512xf32>
    %177 = tpu.matmul %176, %175, %cst_94 {dimension_numbers = #tpu.dot_dimension_numbers<[1], [0], [0], [1], [0, 0, 1, 1], [], []>} : vector<4x15xf32>, vector<15x512xf32>, vector<4x512xf32> -> vector<4x512xf32>
    %c0_95 = arith.constant 0 : index
    %c0_96 = arith.constant 0 : index
    %178 = vector.load %arg9[%c0_95, %c0_96] : memref<4x1xf32, #tpu.memory_space<vmem>>, vector<4x1xf32>
    %179 = vector.broadcast %178 : vector<4x1xf32> to vector<4x512xf32>
    %180 = arith.addf %177, %179 : vector<4x512xf32>
    %cst_97 = arith.constant 0.000000e+00 : f32
    %181 = vector.broadcast %cst_97 : f32 to vector<4x512xf32>
    %182 = arith.maximumf %180, %181 : vector<4x512xf32>
    %183 = vector.extract_strided_slice %0 {offsets = [0, 0], sizes = [4, 512], strides = [1, 1]} : vector<8x512xf32> to vector<4x512xf32>
    %184 = arith.addf %183, %182 : vector<4x512xf32>
    %cst_98 = arith.constant 0.000000e+00 : f32
    %185 = vector.broadcast %cst_98 : f32 to vector<4x512xf32>
    %186 = arith.maximumf %184, %185 : vector<4x512xf32>
    %c0_99 = arith.constant 0 : index
    %c0_100 = arith.constant 0 : index
    %187 = vector.load %arg10[%c0_99, %c0_100] : memref<4x512xf32, #tpu.memory_space<vmem>>, vector<4x512xf32>
    tpu.vector_store %arg10[%c0_99, %c0_100], %186 {strides = array<i32>} : memref<4x512xf32, #tpu.memory_space<vmem>>, vector<4x512xf32>,
    return
  }
  func.func @transform_0(%arg0: i32) -> (i32, i32) {
    %c0_i32 = arith.constant 0 : i32
    %c0_i32_0 = arith.constant 0 : i32
    return %c0_i32, %arg0 : i32, i32
  }
  func.func @transform_1(%arg0: i32) -> (i32, i32) {
    %c0_i32 = arith.constant 0 : i32
    %c0_i32_0 = arith.constant 0 : i32
    %c0_i32_1 = arith.constant 0 : i32
    return %c0_i32, %c0_i32_0 : i32, i32
  }
  func.func @transform_2(%arg0: i32) -> (i32, i32) {
    %c0_i32 = arith.constant 0 : i32
    %c0_i32_0 = arith.constant 0 : i32
    %c0_i32_1 = arith.constant 0 : i32
    return %c0_i32, %c0_i32_0 : i32, i32
  }
  func.func @transform_3(%arg0: i32) -> (i32, i32) {
    %c0_i32 = arith.constant 0 : i32
    %c0_i32_0 = arith.constant 0 : i32
    %c0_i32_1 = arith.constant 0 : i32
    return %c0_i32, %c0_i32_0 : i32, i32
  }
  func.func @transform_4(%arg0: i32) -> (i32, i32) {
    %c0_i32 = arith.constant 0 : i32
    %c0_i32_0 = arith.constant 0 : i32
    %c0_i32_1 = arith.constant 0 : i32
    return %c0_i32, %c0_i32_0 : i32, i32
  }
  func.func @transform_5(%arg0: i32) -> (i32, i32) {
    %c0_i32 = arith.constant 0 : i32
    %c0_i32_0 = arith.constant 0 : i32
    %c0_i32_1 = arith.constant 0 : i32
    return %c0_i32, %c0_i32_0 : i32, i32
  }
  func.func @transform_6(%arg0: i32) -> (i32, i32) {
    %c0_i32 = arith.constant 0 : i32
    %c0_i32_0 = arith.constant 0 : i32
    %c0_i32_1 = arith.constant 0 : i32
    return %c0_i32, %c0_i32_0 : i32, i32
  }
  func.func @transform_7(%arg0: i32) -> (i32, i32) {
    %c0_i32 = arith.constant 0 : i32
    %c0_i32_0 = arith.constant 0 : i32
    %c0_i32_1 = arith.constant 0 : i32
    return %c0_i32, %c0_i32_0 : i32, i32
  }
  func.func @transform_8(%arg0: i32) -> (i32, i32) {
    %c0_i32 = arith.constant 0 : i32
    %c0_i32_0 = arith.constant 0 : i32
    %c0_i32_1 = arith.constant 0 : i32
    return %c0_i32, %c0_i32_0 : i32, i32
  }
  func.func @transform_9(%arg0: i32) -> (i32, i32) {
    %c0_i32 = arith.constant 0 : i32
    %c0_i32_0 = arith.constant 0 : i32
    return %c0_i32, %arg0 : i32, i32
  }
}

</mosaic_0001>

<bundles_post_ra>
// kernel: forward.1
= control target key start
LH: loop header
LB: loop body
LE: loop exit
PB: predicated region body
PF: predicated region fallthrough
CT: control target
= control target key end

     0   :  { %14 = vsyncpa [#allocation4], 0  ;;  %s8377_s0 = inlined_call_operand.vmem [shape: f32[8,512], index: 0, kind: input, shape index: {}]   ;;  %s8378_s1 = inlined_call_operand.hbm [shape: f32[9,512], index: 1, kind: input, shape index: {}]   ;;  %s8379_s2 = inlined_call_operand.hbm [shape: f32[32,72], index: 2, kind: input, shape index: {}]   ;;  %s8380_s3 = inlined_call_operand.vmem [shape: f32[32,1], index: 3, kind: input, shape index: {}]   ;;  %s8381_s4 = inlined_call_operand.vmem [shape: f32[25,512], index: 4, kind: input, shape index: {}]   ;;  %s8382_s5 = inlined_call_operand.vmem [shape: f32[15,800], index: 5, kind: input, shape index: {}]   ;;  %s8383_s6 = inlined_call_operand.hbm [shape: f32[15,1], index: 6, kind: input, shape index: {}]   ;;  %s8384_s7 = inlined_call_operand.vmem [shape: f32[4,15], index: 7, kind: input, shape index: {}]   ;;  %s8385_s8 = inlined_call_operand.vmem [shape: f32[4,1], index: 8, kind: input, shape index: {}]   ;;  %s8386_s9 = inlined_call_operand.vmem [shape: f32[4,512], index: 9, kind: output, shape index: {}]  }
   0x1   :  { %15 = vsyncpa [#allocation6], 0  ;;  %s5080_s30 = smov [#allocation5]   ;;  %s5010_s13 = scalar_lea.hbm %s8379_s2, 512 }
   0x2   :  { %s35_s10 = sshll.u32 %s5080_s30, 4  ;;  %p5011_p0 = scmp.ne.s32.totalorder %s8379_s2, %s5010_s13  ;;  %s36_s10 = int_to_ptr.vmem [resolvable:$true] %s35_s10 }
   0x3   :  { %p5014_p1 = scmp.lt.u32.totalorder %s5010_s13, %s8379_s2 }
   0x5   :  { %p5016_p2 = pnand %p5014_p1, %p5011_p0 }
   0x7   :  { %5019 = shalt.err (!%p5016_p2)
}
   0x8   :  { %s5020_s18 = scalar_lea.vmem %s36_s10, 512  ;;  %p5025_p4 = scmp.lt.s32.totalorder %s36_s10, %s36_s10 }
   0x9   :  { %p5021_p3 = scmp.ne.s32.totalorder %s36_s10, %s5020_s18  ;;  %p5026_p5 = scmp.lt.s32.totalorder %s5020_s18, %s5020_s18 }
   0xb   :  { %p5027_p6 = por %p5026_p5, %p5025_p4 }
   0xd   :  { %p5028_p7 = pnand %p5027_p6, %p5021_p3 }
   0xf   :  { %5031 = shalt.err (!%p5028_p7)
}
  0x10   :  { %s5081_s19 = smov 128   ;;  %s5082_s20 = smov 8  }
  0x11   :  { %41 = dma.hbm_to_vmem [thread:$0]  %s8379_s2, 512, %s36_s10, [#allocation6], %s5081_s19, %s5081_s19, %s5082_s20  }
  0x12   :  { %s5083_s23 = smov [#allocation3]   ;;  %s5032_s27 = scalar_lea.hbm %s8378_s1, 1024 }
  0x13   :  { %s23_s24 = sshll.u32 %s5083_s23, 4  ;;  %p5033_p8 = scmp.ne.s32.totalorder %s8378_s1, %s5032_s27  ;;  %s24_s24 = int_to_ptr.vmem [resolvable:$true] %s23_s24 }
  0x14   :  { %p5036_p9 = scmp.lt.u32.totalorder %s5032_s27, %s8378_s1 }
  0x16   :  { %p5038_p10 = pnand %p5036_p9, %p5033_p8 }
  0x18   :  { %5041 = shalt.err (!%p5038_p10)
}
  0x19   :  { %s5042_s12 = scalar_lea.vmem %s24_s24, 1024  ;;  %p5047_p12 = scmp.lt.s32.totalorder %s24_s24, %s24_s24 }
  0x1a   :  { %p5043_p11 = scmp.ne.s32.totalorder %s24_s24, %s5042_s12  ;;  %p5048_p13 = scmp.lt.s32.totalorder %s5042_s12, %s5042_s12 }
  0x1c   :  { %p5049_p0 = por %p5048_p13, %p5047_p12 }
  0x1e   :  { %p5050_p1 = pnand %p5049_p0, %p5043_p11 }
  0x20   :  { %5053 = shalt.err (!%p5050_p1)
}
  0x21   :  { %s5084_s2 = smov 512   ;;  %s5085_s10 = smov 32  }
  0x22   :  { %29 = dma.hbm_to_vmem [thread:$0]  %s8378_s1, 1024, %s24_s24, [#allocation4], %s5084_s2, %s5084_s2, %s5085_s10  }
  0x23   :  { %s5086_s15 = smov [#allocation7]   ;;  %s5054_s21 = scalar_lea.hbm %s8383_s6, 256 }
  0x24   :  { %s53_s16 = sshll.u32 %s5086_s15, 4  ;;  %p5055_p2 = scmp.ne.s32.totalorder %s8383_s6, %s5054_s21  ;;  %s54_s16 = int_to_ptr.vmem [resolvable:$true] %s53_s16 }
  0x25   :  { %p5058_p3 = scmp.lt.u32.totalorder %s5054_s21, %s8383_s6 }
  0x27   :  { %p5060_p4 = pnand %p5058_p3, %p5055_p2 }
  0x29   :  { %5063 = shalt.err (!%p5060_p4)
}
  0x2a   :  { %s5064_s27 = scalar_lea.vmem %s54_s16, 256  ;;  %p5069_p6 = scmp.lt.s32.totalorder %s54_s16, %s54_s16 }
  0x2b   :  { %p5065_p5 = scmp.ne.s32.totalorder %s54_s16, %s5064_s27  ;;  %p5070_p7 = scmp.lt.s32.totalorder %s5064_s27, %s5064_s27 }
  0x2d   :  { %p5071_p8 = por %p5070_p7, %p5069_p6 }
  0x2f   :  { %p5072_p9 = pnand %p5071_p8, %p5065_p5 }
  0x31   :  { %5075 = shalt.err (!%p5072_p9)
}
  0x32   :  { %59 = dma.hbm_to_vmem [thread:$0]  %s8383_s6, 256, %s54_s16, [#allocation6], %s5081_s19, %s5081_s19, %s5082_s20  }
  0x33   :  { %5076 = dma.done.wait [#allocation4], 1024  }
  0x34   :  { %5077 = vsyncadd [#allocation4], 4294966272 }
  0x35   :  { %5078 = dma.done.wait [#allocation6], 768  }
  0x36   :  { %5079 = vsyncadd [#allocation6], 4294966528  ;;  %v5209_v0 = vld [vmem:[%s8377_s0 + $0x10] sm:$0xff]  ;;  %v5214_v1 = vld [vmem:[%s8377_s0] sm:$0xff]  ;;  %s5087_s12 = smov 17   ;;  %s5088_s13 = smov 16   ;;  %v85_v10 = vlaneseq }
  0x37   :  { %81 = vrot.lane.b32.xlu1 %v5209_v0, %s5087_s12  ;;  %77 = vrot.lane.b32.xlu0 %v5214_v1, %s5087_s12  ;;  %v5223_v2 = vld [vmem:[%s8377_s0 + $0x18] sm:$0xff]  ;;  %v5228_v3 = vld [vmem:[%s8377_s0 + $0x8] sm:$0xff]  ;;  %s5089_s14 = smov 15   ;;  %s5090_s15 = smov 1   ;;  %v8387_v4 = vmov 0.0   ;;  %v5096_v7 = vmov 0  }
  0x38   :  { %s5091_s16 = smov 127   ;;  %s5092_s17 = smov 113   ;;  %530 = vmatprep.mubr.f32.mxu0 %v8387_v4  ;;  %619 = vmatprep.mubr.f32.mxu1 %v8387_v4  ;;  %v430_v5 = vld [vmem:[%s8380_s3 + $0x8] sm:$0xff]  ;;  %v429_v6 = vld [vmem:[%s8380_s3] sm:$0xff]  ;;  %v431_v8 = vld [vmem:[%s8380_s3 + $0x10] sm:$0xff]  ;;  %v95_v11 = vshrl.u32 %v85_v10, 7 }
  0x39   :  { %s5093_s18 = smov 112   ;;  %s5095_s21 = smov 111   ;;  %5005 = vset.pattern.permute.xlu1 %v5096_v7  ;;  %5004 = vset.pattern.permute.xlu0 %v5096_v7  ;;  %v432_v9 = vld [vmem:[%s8380_s3 + $0x18] sm:$0xff]  ;;  %v5304_v14 = vand.u32 127, %v85_v10  ;;  %vm453_vm8 = vcmask 588800  }
  0x3a   :  { %v5306_v15 = vsub.s32 1, %v95_v11  ;;  %v92_v16 = vld [vmem:[#allocation3] ss:$8 sm:$0xf]  ;;  %v5309_v20 = vsub.s32 0, %v95_v11  ;;  %v5311_v21 = vsub.s32 2, %v95_v11 }
  0x3b   :  { %83 = vrot.lane.b32.xlu1 %v5223_v2, %s5087_s12  ;;  %79 = vrot.lane.b32.xlu0 %v5228_v3, %s5087_s12  ;;  %v132_v17 = vld [vmem:[#allocation3 + $0x1] ss:$8 sm:$0xf]  ;;  %vm87_vm0 = vcmp.lt.s32.totalorder %v5304_v14, 17  ;;  %v5313_v22 = vsub.s32 3, %v95_v11  ;;  %vm126_vm1 = vcmp.lt.s32.totalorder %v5304_v14, 16 }
  0x3c   :  { %8571 = vst [vmem:[#allocation10_spill] sm:$0xff] %v5306_v15  ;;  %8572 = vst [vmem:[#allocation11_spill] sm:$0xff] %v5309_v20  ;;  %v101_v23 = vrot.slane %v92_v16, %v5306_v15  ;;  %v141_v24 = vrot.slane %v132_v17, %v5306_v15  ;;  %v97_v28 = vrot.slane %v92_v16, %v5309_v20  ;;  %v172_v57 = vld [vmem:[#allocation3 + $0x2] ss:$8 sm:$0xf]  ;;  %vm166_vm2 = vcmp.lt.s32.totalorder %v5304_v14, 15 }
  0x3d   :  { %8573 = vst [vmem:[#allocation12_spill] sm:$0xff] %v5311_v21  ;;  %8574 = vst [vmem:[#allocation13_spill] sm:$0xff] %v5313_v22  ;;  %v109_v29 = vrot.slane %v92_v16, %v5313_v22  ;;  %v105_v30 = vrot.slane %v92_v16, %v5311_v21  ;;  %v137_v33 = vrot.slane %v132_v17, %v5309_v20  ;;  %v212_v58 = vld [vmem:[#allocation3 + $0x3] ss:$8 sm:$0xf]  ;;  %vm206_vm3 = vcmp.lt.s32.totalorder %v5304_v14, 1 }
  0x3e   :  { %v149_v34 = vrot.slane %v132_v17, %v5313_v22  ;;  %v145_v38 = vrot.slane %v132_v17, %v5311_v21  ;;  %v181_v61 = vrot.slane %v172_v57, %v5306_v15  ;;  %v221_v62 = vrot.slane %v212_v58, %v5306_v15  ;;  %s5097_s3 = smov 34   ;;  %s5098_s29 = smov 33  }
  0x3f   :  { %120 = vrot.lane.b32.xlu1 %v5228_v3, %s5088_s13  ;;  %118 = vrot.lane.b32.xlu0 %v5214_v1, %s5088_s13  ;;  %v189_v7 = vrot.slane %v172_v57, %v5313_v22  ;;  %vm273_vm4 = vcmp.lt.s32.totalorder %v5304_v14, 127  ;;  %vm353_vm5 = vcmp.lt.s32.totalorder %v5304_v14, 112  ;;  %vm313_vm6 = vcmp.lt.s32.totalorder %v5304_v14, 113  ;;  %s5099_s30 = smov 31   ;;  %s5100_s11 = smov 30  }
  0x40   :  { %vm393_vm7 = vcmp.lt.s32.totalorder %v5304_v14, 111  ;;  %s5101_s6 = smov 18   ;;  %s5102_s19 = smov 14   ;;  %vm692_vm9 = vcmp.lt.s32.totalorder %v5304_v14, 34  ;;  %vm795_vm10 = vcmp.lt.s32.totalorder %v5304_v14, 33  ;;  %vm899_vm11 = vcmp.lt.s32.totalorder %v5304_v14, 32 }
  0x41   :  { %vm1003_vm12 = vcmp.lt.s32.totalorder %v5304_v14, 31  ;;  %s5103_s2 = smov 2   ;;  %vm1107_vm13 = vcmp.lt.s32.totalorder %v5304_v14, 30  ;;  %vm1211_vm14 = vcmp.lt.s32.totalorder %v5304_v14, 18  ;;  %vm1624_vm15 = vcmp.lt.s32.totalorder %v5304_v14, 14  ;;  %s5109_s26 = smov 96  }
  0x42   :  { %s5110_s24 = smov 95  }
  0x43   :  { %124 = vrot.lane.b32.xlu1 %v5223_v2, %s5088_s13  ;;  %122 = vrot.lane.b32.xlu0 %v5209_v0, %s5088_s13 }
  0x47   :  { %160 = vrot.lane.b32.xlu1 %v5228_v3, %s5089_s14  ;;  %158 = vrot.lane.b32.xlu0 %v5214_v1, %s5089_s14 }
  0x4b   :  { %164 = vrot.lane.b32.xlu1 %v5223_v2, %s5089_s14  ;;  %162 = vrot.lane.b32.xlu0 %v5209_v0, %s5089_s14 }
  0x4f   :  { %200 = vrot.lane.b32.xlu1 %v5228_v3, %s5090_s15  ;;  %198 = vrot.lane.b32.xlu0 %v5214_v1, %s5090_s15 }
  0x53   :  { %204 = vrot.lane.b32.xlu1 %v5223_v2, %s5090_s15  ;;  %202 = vrot.lane.b32.xlu0 %v5209_v0, %s5090_s15 }
  0x57   :  { %267 = vrot.lane.b32.xlu1 %v5228_v3, %s5091_s16  ;;  %265 = vrot.lane.b32.xlu0 %v5214_v1, %s5091_s16 }
  0x5b   :  { %271 = vrot.lane.b32.xlu1 %v5223_v2, %s5091_s16  ;;  %269 = vrot.lane.b32.xlu0 %v5209_v0, %s5091_s16 }
  0x5f   :  { %307 = vrot.lane.b32.xlu1 %v5228_v3, %s5092_s17  ;;  %305 = vrot.lane.b32.xlu0 %v5214_v1, %s5092_s17 }
  0x63   :  { %311 = vrot.lane.b32.xlu1 %v5223_v2, %s5092_s17  ;;  %309 = vrot.lane.b32.xlu0 %v5209_v0, %s5092_s17 }
  0x67   :  { %347 = vrot.lane.b32.xlu1 %v5228_v3, %s5093_s18  ;;  %345 = vrot.lane.b32.xlu0 %v5214_v1, %s5093_s18 }
  0x6b   :  { %351 = vrot.lane.b32.xlu1 %v5223_v2, %s5093_s18  ;;  %349 = vrot.lane.b32.xlu0 %v5209_v0, %s5093_s18 }
  0x6f   :  { %387 = vrot.lane.b32.xlu1 %v5228_v3, %s5095_s21  ;;  %385 = vrot.lane.b32.xlu0 %v5214_v1, %s5095_s21 }
  0x73   :  { %391 = vrot.lane.b32.xlu1 %v5223_v2, %s5095_s21  ;;  %389 = vrot.lane.b32.xlu0 %v5209_v0, %s5095_s21 }
  0x77   :  { %440 = vperm.xlu1 %5005, %v430_v5   ;;  %435 = vperm.xlu0 %5004, %v429_v6   ;;  %v177_v5 = vrot.slane %v172_v57, %v5309_v20  ;;  %v185_v6 = vrot.slane %v172_v57, %v5311_v21 }
  0x7b   :  { %445 = vperm.xlu1 %5005, %v431_v8   ;;  %450 = vperm.xlu0 %5004, %v432_v9  }
  0xa9   :  { %v82_v12 = vpop.permute.xlu1 %81  ;;  %v78_v13 = vpop.permute.xlu0 %77 }
  0xad   :  { %v84_v18 = vpop.permute.xlu1 %83  ;;  %v80_v19 = vpop.permute.xlu0 %79 }
  0xae   :  { %v90_v25 = vsel %vm87_vm0, %v78_v13, %v80_v19  ;;  %v91_v31 = vsel %vm87_vm0, %v84_v18, %v78_v13  ;;  %v88_v37 = vsel %vm87_vm0, %v82_v12, %v84_v18  ;;  %v89_v39 = vsel %vm87_vm0, %v80_v19, %v82_v12 }
  0xaf   :  { %v115_v35 = vmul.f32 %v101_v23, %v90_v25  ;;  %v114_v43 = vmul.f32 %v97_v28, %v91_v31  ;;  %v117_v46 = vmul.f32 %v109_v29, %v88_v37  ;;  %v116_v50 = vmul.f32 %v105_v30, %v89_v39  ;;  %v239_v28 = vld [vmem:[#allocation3 + $0x4] ss:$8 sm:$0xf]  ;;  %v279_v37 = vld [vmem:[#allocation3 + $0x5] ss:$8 sm:$0xf] }
  0xb0   :  { %v217_v12 = vrot.slane %v212_v58, %v5309_v20  ;;  %v225_v13 = vrot.slane %v212_v58, %v5311_v21  ;;  %v229_v19 = vrot.slane %v212_v58, %v5313_v22  ;;  %v256_v39 = vrot.slane %v239_v28, %v5313_v22 }
  0xb1   :  { %v121_v26 = vpop.permute.xlu1 %120  ;;  %v119_v27 = vpop.permute.xlu0 %118 }
  0xb2   :  { %v129_v32 = vsel %vm126_vm1, %v119_v27, %v121_v26 }
  0xb3   :  { %v155_v36 = vmul.f32 %v141_v24, %v129_v32 }
  0xb5   :  { %v125_v40 = vpop.permute.xlu1 %124  ;;  %v123_v41 = vpop.permute.xlu0 %122  ;;  %v4495_v42 = vpack.c.bf16 %v155_v36, %v115_v35 }
  0xb6   :  { %v130_v44 = vsel %vm126_vm1, %v125_v40, %v119_v27  ;;  %v128_v45 = vsel %vm126_vm1, %v121_v26, %v123_v41  ;;  %v127_v47 = vsel %vm126_vm1, %v123_v41, %v125_v40  ;;  %v244_v40 = vrot.slane %v239_v28, %v5309_v20 }
  0xb7   :  { %4496 = vmatprep.subr.bf16.mxu0 %v4495_v42  ;;  %v154_v48 = vmul.f32 %v137_v33, %v130_v44  ;;  %v157_v49 = vmul.f32 %v149_v34, %v127_v47  ;;  %v156_v51 = vmul.f32 %v145_v38, %v128_v45  ;;  %v248_v38 = vrot.slane %v239_v28, %v5306_v15 }
  0xb8   :  { %v284_v47 = vrot.slane %v279_v37, %v5309_v20 }
  0xb9   :  { %v161_v52 = vpop.permute.xlu1 %160  ;;  %v159_v53 = vpop.permute.xlu0 %158  ;;  %v4497_v54 = vpack.c.bf16 %v154_v48, %v114_v43  ;;  %v4511_v55 = vpack.c.bf16 %v157_v49, %v117_v46  ;;  %v4513_v56 = vpack.c.bf16 %v156_v51, %v116_v50  ;;  %v252_v46 = vrot.slane %v239_v28, %v5311_v21 }
  0xba   :  { %v169_v63 = vsel %vm166_vm2, %v159_v53, %v161_v52  ;;  %v296_v48 = vrot.slane %v279_v37, %v5313_v22  ;;  %v288_v50 = vrot.slane %v279_v37, %v5306_v15  ;;  %v292_v51 = vrot.slane %v279_v37, %v5311_v21 }
  0xbb   :  { %4498 = vmatpush1.bf16.msra.mxu0 %v4497_v54  ;;  %4512 = vmatprep.subr.bf16.mxu1 %v4511_v55  ;;  %v195_v16 = vmul.f32 %v181_v61, %v169_v63  ;;  %v262_v54 = vmul.f32 %v248_v38, %v5228_v3  ;;  %v264_v55 = vmul.f32 %v256_v39, %v5223_v2 }
  0xbc   :  { %4514 = vmatpush1.bf16.msra.mxu1 %v4513_v56  ;;  %v261_v56 = vmul.f32 %v244_v40, %v5214_v1  ;;  %v263_v57 = vmul.f32 %v252_v46, %v5209_v0 }
  0xbd   :  { %v165_v59 = vpop.permute.xlu1 %164  ;;  %v163_v60 = vpop.permute.xlu0 %162 }
  0xbe   :  { %v170_v10 = vsel %vm166_vm2, %v165_v59, %v159_v53  ;;  %v168_v17 = vsel %vm166_vm2, %v161_v52, %v163_v60  ;;  %v167_v23 = vsel %vm166_vm2, %v163_v60, %v165_v59 }
  0xbf   :  { %v194_v24 = vmul.f32 %v177_v5, %v170_v10  ;;  %v196_v29 = vmul.f32 %v185_v6, %v168_v17  ;;  %v197_v33 = vmul.f32 %v189_v7, %v167_v23  ;;  %v359_v10 = vld [vmem:[#allocation3 + $0x7] ss:$8 sm:$0xf] }
  0xc0   :  { %v372_v28 = vrot.slane %v359_v10, %v5311_v21 }
  0xc1   :  { %v201_v8 = vpop.permute.xlu1 %200  ;;  %v199_v9 = vpop.permute.xlu0 %198 }
  0xc2   :  { %v209_v11 = vsel %vm206_vm3, %v199_v9, %v201_v8 }
  0xc3   :  { %v235_v18 = vmul.f32 %v221_v62, %v209_v11  ;;  %v319_v11 = vld [vmem:[#allocation3 + $0x6] ss:$8 sm:$0xf] }
  0xc5   :  { %v205_v25 = vpop.permute.xlu1 %204  ;;  %v203_v26 = vpop.permute.xlu0 %202  ;;  %v4499_v27 = vpack.c.bf16 %v235_v18, %v195_v16 }
  0xc6   :  { %v210_v30 = vsel %vm206_vm3, %v205_v25, %v199_v9  ;;  %v207_v31 = vsel %vm206_vm3, %v203_v26, %v205_v25  ;;  %v208_v32 = vsel %vm206_vm3, %v201_v8, %v203_v26  ;;  %v376_v26 = vrot.slane %v359_v10, %v5313_v22 }
  0xc7   :  { %v234_v34 = vmul.f32 %v217_v12, %v210_v30  ;;  %v236_v35 = vmul.f32 %v225_v13, %v208_v32  ;;  %v237_v36 = vmul.f32 %v229_v19, %v207_v31  ;;  %4500 = vmatprep.subr.bf16.mxu0 %v4499_v27  ;;  %v336_v12 = vrot.slane %v319_v11, %v5313_v22 }
  0xc8   :  { %v328_v13 = vrot.slane %v319_v11, %v5306_v15  ;;  %v332_v19 = vrot.slane %v319_v11, %v5311_v21  ;;  %v368_v27 = vrot.slane %v359_v10, %v5306_v15 }
  0xc9   :  { %v268_v41 = vpop.permute.xlu1 %267  ;;  %v266_v42 = vpop.permute.xlu0 %265  ;;  %v4501_v43 = vpack.c.bf16 %v234_v34, %v194_v24  ;;  %v4515_v44 = vpack.c.bf16 %v237_v36, %v197_v33  ;;  %v4517_v45 = vpack.c.bf16 %v236_v35, %v196_v29  ;;  %v364_v24 = vrot.slane %v359_v10, %v5309_v20 }
  0xca   :  { %v276_v49 = vsel %vm273_vm4, %v266_v42, %v268_v41  ;;  %v324_v29 = vrot.slane %v319_v11, %v5309_v20 }
  0xcb   :  { %4502 = vmatpush1.bf16.msra.mxu0 %v4501_v43  ;;  %4516 = vmatprep.subr.bf16.mxu1 %v4515_v44  ;;  %v301_v58 = vmul.f32 %v284_v47, %v276_v49 }
  0xcc   :  { %4518 = vmatpush1.bf16.msra.mxu1 %v4517_v45 }
  0xcd   :  { %v272_v52 = vpop.permute.xlu1 %271  ;;  %v270_v53 = vpop.permute.xlu0 %269  ;;  %v4505_v8 = vpack.c.bf16 %v301_v58, %v261_v56 }
  0xce   :  { %v277_v59 = vsel %vm273_vm4, %v272_v52, %v266_v42  ;;  %v274_v60 = vsel %vm273_vm4, %v270_v53, %v272_v52  ;;  %v275_v61 = vsel %vm273_vm4, %v268_v41, %v270_v53 }
  0xcf   :  { %v304_v62 = vmul.f32 %v296_v48, %v277_v59  ;;  %v302_v63 = vmul.f32 %v288_v50, %v275_v61  ;;  %v303_v5 = vmul.f32 %v292_v51, %v274_v60  ;;  %v399_v50 = vld [vmem:[#allocation3 + $0x20] ss:$8 sm:$0xf] }
  0xd0   :  { %v408_v52 = vrot.slane %v399_v50, %v5306_v15  ;;  %v416_v53 = vrot.slane %v399_v50, %v5313_v22 }
  0xd1   :  { %v308_v3 = vpop.permute.xlu1 %307  ;;  %v306_v6 = vpop.permute.xlu0 %305  ;;  %v4503_v2 = vpack.c.bf16 %v302_v63, %v262_v54  ;;  %v4519_v7 = vpack.c.bf16 %v304_v62, %v264_v55  ;;  %v4521_v1 = vpack.c.bf16 %v303_v5, %v263_v57  ;;  %v412_v54 = vrot.slane %v399_v50, %v5311_v21 }
  0xd2   :  { %v316_v31 = vsel %vm313_vm6, %v306_v6, %v308_v3  ;;  %v404_v55 = vrot.slane %v399_v50, %v5309_v20 }
  0xd3   :  { %4504 = vmatprep.subr.bf16.mxu0 %v4503_v2  ;;  %4520 = vmatprep.subr.bf16.mxu1 %v4519_v7  ;;  %v341_v44 = vmul.f32 %v324_v29, %v316_v31  ;;  %v426_v2 = vld [vmem:[#allocation5 + $0x8] sm:$0xff]  ;;  %v427_v7 = vld [vmem:[#allocation5 + $0x10] sm:$0xff] }
  0xd4   :  { %4506 = vmatpush1.bf16.msra.mxu0 %v4505_v8  ;;  %4522 = vmatpush1.bf16.msra.mxu1 %v4521_v1  ;;  %v428_v1 = vld [vmem:[#allocation5 + $0x18] sm:$0xff] }
  0xd5   :  { %v312_v0 = vpop.permute.xlu1 %311  ;;  %v310_v9 = vpop.permute.xlu0 %309 }
  0xd6   :  { %v317_v18 = vsel %vm313_vm6, %v312_v0, %v306_v6  ;;  %v315_v23 = vsel %vm313_vm6, %v308_v3, %v310_v9  ;;  %v314_v30 = vsel %vm313_vm6, %v310_v9, %v312_v0  ;;  %v425_v6 = vld [vmem:[#allocation5] sm:$0xff] }
  0xd7   :  { %v344_v32 = vmul.f32 %v336_v12, %v317_v18  ;;  %v342_v33 = vmul.f32 %v328_v13, %v315_v23  ;;  %v343_v40 = vmul.f32 %v332_v19, %v314_v30 }
  0xd9   :  { %v348_v16 = vpop.permute.xlu1 %347  ;;  %v346_v17 = vpop.permute.xlu0 %345 }
  0xda   :  { %v356_v25 = vsel %vm353_vm5, %v346_v17, %v348_v16 }
  0xdb   :  { %v381_v36 = vmul.f32 %v364_v24, %v356_v25 }
  0xdd   :  { %v352_v34 = vpop.permute.xlu1 %351  ;;  %v350_v35 = vpop.permute.xlu0 %349  ;;  %v4509_v51 = vpack.c.bf16 %v381_v36, %v341_v44 }
  0xde   :  { %v357_v37 = vsel %vm353_vm5, %v352_v34, %v346_v17  ;;  %v354_v38 = vsel %vm353_vm5, %v350_v35, %v352_v34  ;;  %v355_v39 = vsel %vm353_vm5, %v348_v16, %v350_v35 }
  0xdf   :  { %v384_v41 = vmul.f32 %v376_v26, %v357_v37  ;;  %v382_v42 = vmul.f32 %v368_v27, %v355_v39  ;;  %v383_v43 = vmul.f32 %v372_v28, %v354_v38 }
  0xe1   :  { %v388_v45 = vpop.permute.xlu1 %387  ;;  %v386_v46 = vpop.permute.xlu0 %385  ;;  %v4507_v47 = vpack.c.bf16 %v382_v42, %v342_v33  ;;  %v4523_v48 = vpack.c.bf16 %v384_v41, %v344_v32  ;;  %v4525_v49 = vpack.c.bf16 %v383_v43, %v343_v40 }
  0xe2   :  { %v396_v56 = vsel %vm393_vm7, %v386_v46, %v388_v45 }
  0xe3   :  { %4508 = vmatprep.subr.bf16.mxu0 %v4507_v47  ;;  %4524 = vmatprep.subr.bf16.mxu1 %v4523_v48  ;;  %v421_v3 = vmul.f32 %v404_v55, %v396_v56 }
  0xe4   :  { %4510 = vmatpush1.bf16.msra.mxu0 %v4509_v51  ;;  %4526 = vmatpush1.bf16.msra.mxu1 %v4525_v49 }
  0xe5   :  { %v392_v57 = vpop.permute.xlu1 %391  ;;  %v390_v58 = vpop.permute.xlu0 %389 }
  0xe6   :  { %v397_v59 = vsel %vm393_vm7, %v392_v57, %v386_v46  ;;  %v394_v60 = vsel %vm393_vm7, %v390_v58, %v392_v57  ;;  %v395_v61 = vsel %vm393_vm7, %v388_v45, %v390_v58 }
  0xe7   :  { %v422_v62 = vmul.f32 %v408_v52, %v395_v61  ;;  %v424_v63 = vmul.f32 %v416_v53, %v397_v59  ;;  %v423_v5 = vmul.f32 %v412_v54, %v394_v60 }
  0xe9   :  { %482 = vmatprep.subr.mxu0 %v422_v62  ;;  %571 = vmatprep.subr.mxu1 %v424_v63 }
  0xea   :  { %483 = vmatpush1.msra.mxu0 %v421_v3  ;;  %572 = vmatpush1.msra.mxu1 %v423_v5 }
  0xeb   :  { %4453 = vmatmul.mubr.msk.f32.vlgmr.msra.gmra.mrb[0].mxu0 %vm453_vm8, %v425_v6  ;;  %4457 = vmatmul.mubr.msk.f32.vlgmr.msra.gmra.mrb[0].mxu1 %vm453_vm8, %v425_v6 }
  0xec   :  { %536 = vmatprep.mubr.f32.mxu0 %v8387_v4  ;;  %625 = vmatprep.mubr.f32.mxu1 %v8387_v4 }
  0xef   :  { %4454 = vmatmul.mubr.msk.f32.gmra.mrb[2].mxu0 %vm453_vm8, %v426_v2  ;;  %4458 = vmatmul.mubr.msk.f32.gmra.mrb[2].mxu1 %vm453_vm8, %v426_v2 }
  0xf0   :  { %542 = vmatprep.mubr.f32.mxu0 %v8387_v4  ;;  %631 = vmatprep.mubr.f32.mxu1 %v8387_v4 }
  0xf3   :  { %4455 = vmatmul.mubr.msk.f32.gmra.mrb[4].mxu0 %vm453_vm8, %v427_v7  ;;  %4459 = vmatmul.mubr.msk.f32.gmra.mrb[4].mxu1 %vm453_vm8, %v427_v7 }
  0xf4   :  { %548 = vmatprep.mubr.f32.mxu0 %v8387_v4  ;;  %637 = vmatprep.mubr.f32.mxu1 %v8387_v4 }
  0xf6   :  { %v5440_v8 = vpop.permute.xlu0 %435  ;;  %v5448_v16 = vpop.permute.xlu1 %440 }
  0xf7   :  { %4456 = vmatmul.mubr.msk.f32.gmra.mrb[6].mxu0 %vm453_vm8, %v428_v1  ;;  %4460 = vmatmul.mubr.msk.f32.gmra.mrb[6].mxu1 %vm453_vm8, %v428_v1  ;;  %vm3130_vm8 = vcmp.lt.s32.totalorder %v5304_v14, 94 }
  0xfa   :  { %v5603_v46 = vpop.permute.xlu1 %445  ;;  %v5609_v47 = vpop.permute.xlu0 %450 }
 0x1be   :  { %v532_v0 = vpop.f32.mrb[0].mxu0  ;;  %v621_v9 = vpop.f32.mrb[0].mxu1 }
 0x1bf   :  { %v533_v10 = vadd.f32 %v532_v0, %v5440_v8  ;;  %v5443_v11 = vpop.f32.mrb[1].mxu0  ;;  %v622_v12 = vadd.f32 %v621_v9, %v5440_v8  ;;  %v5446_v13 = vpop.f32.mrb[1].mxu1 }
 0x1c0   :  { %v535_v38 = vadd.f32 %v5443_v11, %v5440_v8  ;;  %v624_v40 = vadd.f32 %v5446_v13, %v5440_v8 }
 0x1c1   :  { %v5450_v17 = vmax.f32 %v533_v10, 0.0  ;;  %v5452_v23 = vmax.f32 %v622_v12, 0.0 }
 0x1c2   :  { %v627_v18 = vpop.f32.mrb[2].mxu1  ;;  %v538_v19 = vpop.f32.mrb[2].mxu0  ;;  %v5558_v39 = vmax.f32 %v535_v38, 0.0  ;;  %v5567_v42 = vmax.f32 %v624_v40, 0.0 }
 0x1c3   :  { %8575 = vst [vmem:[#allocation14_spill] sm:$0xff] %v5450_v17  ;;  %v539_v24 = vadd.f32 %v538_v19, %v5448_v16  ;;  %v540_v25 = vpop.f32.mrb[3].mxu0  ;;  %v5455_v26 = vpop.f32.mrb[3].mxu1  ;;  %660 = vrot.lane.b32.xlu1 %v5450_v17, %s5097_s3  ;;  %v628_v27 = vadd.f32 %v627_v18, %v5448_v16 }
 0x1c4   :  { %8577 = vst [vmem:[#allocation16_spill] sm:$0xff] %v5558_v39  ;;  %v541_v41 = vadd.f32 %v540_v25, %v5448_v16  ;;  %v630_v44 = vadd.f32 %v5455_v26, %v5448_v16 }
 0x1c5   :  { %v5460_v28 = vmax.f32 %v539_v24, 0.0  ;;  %v5474_v33 = vmax.f32 %v628_v27, 0.0 }
 0x1c6   :  { %v5462_v29 = vpop.f32.mrb[4].mxu0  ;;  %v5464_v30 = vpop.f32.mrb[4].mxu1  ;;  %v5569_v43 = vmax.f32 %v541_v41, 0.0  ;;  %v5577_v45 = vmax.f32 %v630_v44, 0.0 }
 0x1c7   :  { %8576 = vst [vmem:[#allocation15_spill] sm:$0xff] %v5460_v28  ;;  %v5466_v31 = vpop.f32.mrb[5].mxu0  ;;  %v5468_v32 = vpop.f32.mrb[5].mxu1  ;;  %662 = vrot.lane.b32.xlu0 %v5460_v28, %s5097_s3  ;;  %676 = vrot.lane.b32.xlu1 %v5452_v23, %s5097_s3  ;;  %v545_v3 = vadd.f32 %v5462_v29, %v5603_v46  ;;  %v634_v1 = vadd.f32 %v5464_v30, %v5603_v46 }
 0x1c9   :  { %v5691_v7 = vmax.f32 %v545_v3, 0.0  ;;  %v5705_v10 = vmax.f32 %v634_v1, 0.0 }
 0x1ca   :  { %v5476_v34 = vpop.f32.mrb[6].mxu0  ;;  %v5478_v35 = vpop.f32.mrb[6].mxu1 }
 0x1cb   :  { %v5480_v36 = vpop.f32.mrb[7].mxu0  ;;  %v5482_v37 = vpop.f32.mrb[7].mxu1  ;;  %678 = vrot.lane.b32.xlu0 %v5474_v33, %s5097_s3  ;;  %763 = vrot.lane.b32.xlu1 %v5450_v17, %s5098_s29  ;;  %8580 = vst [vmem:[#allocation19_spill] sm:$0xff] %v5691_v7  ;;  %v551_v8 = vadd.f32 %v5476_v34, %v5609_v47  ;;  %8582 = vst [vmem:[#allocation21_spill] sm:$0xff] %v5705_v10  ;;  %v640_v12 = vadd.f32 %v5478_v35, %v5609_v47 }
 0x1cd   :  { %v5707_v11 = vmax.f32 %v551_v8, 0.0  ;;  %v5719_v18 = vmax.f32 %v640_v12, 0.0  ;;  %v709_v12 = vld [vmem:[%s8381_s4] ss:$8 sm:$0xf] }
 0x1cf   :  { %765 = vrot.lane.b32.xlu0 %v5460_v28, %s5098_s29  ;;  %779 = vrot.lane.b32.xlu1 %v5452_v23, %s5098_s29  ;;  %8583 = vst [vmem:[#allocation22_spill] sm:$0xff] %v5707_v11  ;;  %8586 = vst [vmem:[#allocation25_spill] sm:$0xff] %v5719_v18 }
 0x1d3   :  { %781 = vrot.lane.b32.xlu0 %v5474_v33, %s5098_s29  ;;  %867 = vrot.lane.b32.xlu1 %v5450_v17, %s5085_s10 }
 0x1d7   :  { %869 = vrot.lane.b32.xlu0 %v5460_v28, %s5085_s10  ;;  %883 = vrot.lane.b32.xlu1 %v5452_v23, %s5085_s10 }
 0x1db   :  { %885 = vrot.lane.b32.xlu0 %v5474_v33, %s5085_s10  ;;  %971 = vrot.lane.b32.xlu1 %v5450_v17, %s5099_s30 }
 0x1df   :  { %973 = vrot.lane.b32.xlu0 %v5460_v28, %s5099_s30  ;;  %987 = vrot.lane.b32.xlu1 %v5452_v23, %s5099_s30 }
 0x1e3   :  { %989 = vrot.lane.b32.xlu0 %v5474_v33, %s5099_s30  ;;  %1075 = vrot.lane.b32.xlu1 %v5450_v17, %s5100_s11 }
 0x1e7   :  { %1077 = vrot.lane.b32.xlu0 %v5460_v28, %s5100_s11  ;;  %1091 = vrot.lane.b32.xlu1 %v5452_v23, %s5100_s11 }
 0x1eb   :  { %1093 = vrot.lane.b32.xlu0 %v5474_v33, %s5100_s11  ;;  %1179 = vrot.lane.b32.xlu1 %v5450_v17, %s5101_s6 }
 0x1ef   :  { %1181 = vrot.lane.b32.xlu0 %v5460_v28, %s5101_s6  ;;  %1195 = vrot.lane.b32.xlu1 %v5452_v23, %s5101_s6 }
 0x1f3   :  { %1197 = vrot.lane.b32.xlu0 %v5474_v33, %s5101_s6  ;;  %1283 = vrot.lane.b32.xlu1 %v5450_v17, %s5087_s12 }
 0x1f7   :  { %1285 = vrot.lane.b32.xlu0 %v5460_v28, %s5087_s12  ;;  %1299 = vrot.lane.b32.xlu1 %v5452_v23, %s5087_s12 }
 0x1fb   :  { %1301 = vrot.lane.b32.xlu0 %v5474_v33, %s5087_s12  ;;  %1386 = vrot.lane.b32.xlu1 %v5450_v17, %s5088_s13 }
 0x1ff   :  { %1388 = vrot.lane.b32.xlu0 %v5460_v28, %s5088_s13  ;;  %1402 = vrot.lane.b32.xlu1 %v5452_v23, %s5088_s13 }
 0x203   :  { %1404 = vrot.lane.b32.xlu0 %v5474_v33, %s5088_s13  ;;  %1489 = vrot.lane.b32.xlu1 %v5450_v17, %s5089_s14 }
 0x207   :  { %1491 = vrot.lane.b32.xlu0 %v5460_v28, %s5089_s14  ;;  %1505 = vrot.lane.b32.xlu1 %v5452_v23, %s5089_s14 }
 0x20b   :  { %1507 = vrot.lane.b32.xlu0 %v5474_v33, %s5089_s14  ;;  %1592 = vrot.lane.b32.xlu1 %v5450_v17, %s5102_s19 }
 0x20f   :  { %1594 = vrot.lane.b32.xlu0 %v5460_v28, %s5102_s19  ;;  %1608 = vrot.lane.b32.xlu1 %v5452_v23, %s5102_s19 }
 0x213   :  { %1610 = vrot.lane.b32.xlu0 %v5474_v33, %s5102_s19  ;;  %668 = vrot.lane.b32.xlu1 %v5558_v39, %s5097_s3 }
 0x217   :  { %670 = vrot.lane.b32.xlu0 %v5569_v43, %s5097_s3  ;;  %684 = vrot.lane.b32.xlu1 %v5567_v42, %s5097_s3 }
 0x21b   :  { %686 = vrot.lane.b32.xlu0 %v5577_v45, %s5097_s3  ;;  %771 = vrot.lane.b32.xlu1 %v5558_v39, %s5098_s29 }
 0x21f   :  { %773 = vrot.lane.b32.xlu0 %v5569_v43, %s5098_s29  ;;  %787 = vrot.lane.b32.xlu1 %v5567_v42, %s5098_s29 }
 0x223   :  { %789 = vrot.lane.b32.xlu0 %v5577_v45, %s5098_s29  ;;  %875 = vrot.lane.b32.xlu1 %v5558_v39, %s5085_s10 }
 0x227   :  { %877 = vrot.lane.b32.xlu0 %v5569_v43, %s5085_s10  ;;  %891 = vrot.lane.b32.xlu1 %v5567_v42, %s5085_s10 }
 0x22b   :  { %893 = vrot.lane.b32.xlu0 %v5577_v45, %s5085_s10  ;;  %979 = vrot.lane.b32.xlu1 %v5558_v39, %s5099_s30 }
 0x22f   :  { %981 = vrot.lane.b32.xlu0 %v5569_v43, %s5099_s30  ;;  %995 = vrot.lane.b32.xlu1 %v5567_v42, %s5099_s30 }
 0x233   :  { %997 = vrot.lane.b32.xlu0 %v5577_v45, %s5099_s30  ;;  %1083 = vrot.lane.b32.xlu1 %v5558_v39, %s5100_s11 }
 0x235   :  { %v5611_v48 = vpop.permute.xlu1 %660 }
 0x237   :  { %1085 = vrot.lane.b32.xlu0 %v5569_v43, %s5100_s11  ;;  %1099 = vrot.lane.b32.xlu1 %v5567_v42, %s5100_s11 }
 0x239   :  { %v5617_v49 = vpop.permute.xlu0 %662  ;;  %v5619_v50 = vpop.permute.xlu1 %676 }
 0x23b   :  { %1101 = vrot.lane.b32.xlu0 %v5577_v45, %s5100_s11  ;;  %1187 = vrot.lane.b32.xlu1 %v5558_v39, %s5101_s6 }
 0x23d   :  { %v5625_v51 = vpop.permute.xlu0 %678  ;;  %v5627_v52 = vpop.permute.xlu1 %763 }
 0x23f   :  { %1189 = vrot.lane.b32.xlu0 %v5569_v43, %s5101_s6  ;;  %1203 = vrot.lane.b32.xlu1 %v5567_v42, %s5101_s6 }
 0x241   :  { %v5633_v53 = vpop.permute.xlu0 %765  ;;  %v5635_v54 = vpop.permute.xlu1 %779 }
 0x243   :  { %1205 = vrot.lane.b32.xlu0 %v5577_v45, %s5101_s6  ;;  %1291 = vrot.lane.b32.xlu1 %v5558_v39, %s5087_s12 }
 0x245   :  { %v5641_v55 = vpop.permute.xlu0 %781  ;;  %v5643_v56 = vpop.permute.xlu1 %867 }
 0x247   :  { %1293 = vrot.lane.b32.xlu0 %v5569_v43, %s5087_s12  ;;  %1307 = vrot.lane.b32.xlu1 %v5567_v42, %s5087_s12 }
 0x249   :  { %v5649_v57 = vpop.permute.xlu0 %869  ;;  %v5651_v58 = vpop.permute.xlu1 %883 }
 0x24b   :  { %1309 = vrot.lane.b32.xlu0 %v5577_v45, %s5087_s12  ;;  %1394 = vrot.lane.b32.xlu1 %v5558_v39, %s5088_s13 }
 0x24d   :  { %v5657_v59 = vpop.permute.xlu0 %885  ;;  %v5659_v60 = vpop.permute.xlu1 %971 }
 0x24f   :  { %1396 = vrot.lane.b32.xlu0 %v5569_v43, %s5088_s13  ;;  %1410 = vrot.lane.b32.xlu1 %v5567_v42, %s5088_s13 }
 0x251   :  { %v5665_v61 = vpop.permute.xlu0 %973  ;;  %v5667_v62 = vpop.permute.xlu1 %987 }
 0x253   :  { %1412 = vrot.lane.b32.xlu0 %v5577_v45, %s5088_s13  ;;  %1497 = vrot.lane.b32.xlu1 %v5558_v39, %s5089_s14 }
 0x255   :  { %v5673_v63 = vpop.permute.xlu0 %989  ;;  %v5675_v5 = vpop.permute.xlu1 %1075 }
 0x257   :  { %1499 = vrot.lane.b32.xlu0 %v5569_v43, %s5089_s14  ;;  %1513 = vrot.lane.b32.xlu1 %v5567_v42, %s5089_s14 }
 0x259   :  { %v5683_v6 = vpop.permute.xlu0 %1077  ;;  %v5685_v2 = vpop.permute.xlu1 %1091 }
 0x25a   :  { %8578 = vst [vmem:[#allocation17_spill] sm:$0xff] %v5683_v6  ;;  %8579 = vst [vmem:[#allocation18_spill] sm:$0xff] %v5685_v2 }
 0x25b   :  { %1515 = vrot.lane.b32.xlu0 %v5577_v45, %s5089_s14  ;;  %1600 = vrot.lane.b32.xlu1 %v5558_v39, %s5102_s19 }
 0x25d   :  { %v5697_v0 = vpop.permute.xlu0 %1093  ;;  %v5699_v9 = vpop.permute.xlu1 %1179 }
 0x25e   :  { %8581 = vst [vmem:[#allocation20_spill] sm:$0xff] %v5699_v9 }
 0x25f   :  { %1602 = vrot.lane.b32.xlu0 %v5569_v43, %s5102_s19  ;;  %664 = vrot.lane.b32.xlu1 %v5691_v7, %s5097_s3 }
 0x261   :  { %v5711_v13 = vpop.permute.xlu0 %1181  ;;  %v5713_v16 = vpop.permute.xlu1 %1195 }
 0x262   :  { %8584 = vst [vmem:[#allocation23_spill] sm:$0xff] %v5711_v13  ;;  %8585 = vst [vmem:[#allocation24_spill] sm:$0xff] %v5713_v16 }
 0x263   :  { %666 = vrot.lane.b32.xlu0 %v5707_v11, %s5097_s3  ;;  %680 = vrot.lane.b32.xlu1 %v5705_v10, %s5097_s3 }
 0x265   :  { %v5721_v19 = vpop.permute.xlu0 %1197  ;;  %v5723_v24 = vpop.permute.xlu1 %1283 }
 0x266   :  { %8587 = vst [vmem:[#allocation26_spill] sm:$0xff] %v5721_v19  ;;  %8588 = vst [vmem:[#allocation27_spill] sm:$0xff] %v5723_v24 }
 0x267   :  { %682 = vrot.lane.b32.xlu0 %v5719_v18, %s5097_s3  ;;  %767 = vrot.lane.b32.xlu1 %v5691_v7, %s5098_s29 }
 0x269   :  { %v5729_v25 = vpop.permute.xlu0 %1285  ;;  %v5731_v26 = vpop.permute.xlu1 %1299 }
 0x26a   :  { %8589 = vst [vmem:[#allocation28_spill] sm:$0xff] %v5729_v25  ;;  %8590 = vst [vmem:[#allocation29_spill] sm:$0xff] %v5731_v26  ;;  %v5828_v26 = vrot.slane %v709_v12, %v5311_v21 }
 0x26b   :  { %769 = vrot.lane.b32.xlu0 %v5707_v11, %s5098_s29  ;;  %783 = vrot.lane.b32.xlu1 %v5705_v10, %s5098_s29 }
 0x26c   :  { %8607 = vst [vmem:[#allocation46_spill] sm:$0xff] %v5828_v26 }
 0x26d   :  { %v5737_v27 = vpop.permute.xlu0 %1301  ;;  %v5739_v29 = vpop.permute.xlu1 %1386 }
 0x26e   :  { %8591 = vst [vmem:[#allocation30_spill] sm:$0xff] %v5737_v27  ;;  %8592 = vst [vmem:[#allocation31_spill] sm:$0xff] %v5739_v29 }
 0x26f   :  { %785 = vrot.lane.b32.xlu0 %v5719_v18, %s5098_s29  ;;  %871 = vrot.lane.b32.xlu1 %v5691_v7, %s5085_s10 }
 0x271   :  { %v5745_v30 = vpop.permute.xlu0 %1388  ;;  %v5747_v34 = vpop.permute.xlu1 %1402 }
 0x272   :  { %8593 = vst [vmem:[#allocation32_spill] sm:$0xff] %v5745_v30  ;;  %8594 = vst [vmem:[#allocation33_spill] sm:$0xff] %v5747_v34  ;;  %v5807_v30 = vrot.slane %v709_v12, %v5309_v20 }
 0x273   :  { %873 = vrot.lane.b32.xlu0 %v5707_v11, %s5085_s10  ;;  %887 = vrot.lane.b32.xlu1 %v5705_v10, %s5085_s10 }
 0x274   :  { %8605 = vst [vmem:[#allocation44_spill] sm:$0xff] %v5807_v30 }
 0x275   :  { %v5753_v35 = vpop.permute.xlu0 %1404  ;;  %v5755_v38 = vpop.permute.xlu1 %1489 }
 0x276   :  { %8595 = vst [vmem:[#allocation34_spill] sm:$0xff] %v5753_v35  ;;  %8596 = vst [vmem:[#allocation35_spill] sm:$0xff] %v5755_v38  ;;  %v5810_v35 = vrot.slane %v709_v12, %v5313_v22 }
 0x277   :  { %889 = vrot.lane.b32.xlu0 %v5719_v18, %s5085_s10  ;;  %975 = vrot.lane.b32.xlu1 %v5691_v7, %s5099_s30 }
 0x278   :  { %8606 = vst [vmem:[#allocation45_spill] sm:$0xff] %v5810_v35 }
 0x279   :  { %v5761_v40 = vpop.permute.xlu0 %1491  ;;  %v5763_v41 = vpop.permute.xlu1 %1505 }
 0x27a   :  { %8597 = vst [vmem:[#allocation36_spill] sm:$0xff] %v5761_v40  ;;  %8598 = vst [vmem:[#allocation37_spill] sm:$0xff] %v5763_v41  ;;  %v5792_v40 = vrot.slane %v709_v12, %v5306_v15 }
 0x27b   :  { %977 = vrot.lane.b32.xlu0 %v5707_v11, %s5099_s30  ;;  %991 = vrot.lane.b32.xlu1 %v5705_v10, %s5099_s30 }
 0x27c   :  { %8604 = vst [vmem:[#allocation43_spill] sm:$0xff] %v5792_v40 }
 0x27d   :  { %v5769_v44 = vpop.permute.xlu0 %1507  ;;  %v5771_v3 = vpop.permute.xlu1 %1592 }
 0x27e   :  { %8599 = vst [vmem:[#allocation38_spill] sm:$0xff] %v5769_v44  ;;  %8600 = vst [vmem:[#allocation39_spill] sm:$0xff] %v5771_v3 }
 0x27f   :  { %993 = vrot.lane.b32.xlu0 %v5719_v18, %s5099_s30  ;;  %1079 = vrot.lane.b32.xlu1 %v5691_v7, %s5100_s11 }
 0x281   :  { %v5777_v1 = vpop.permute.xlu0 %1594  ;;  %v5779_v8 = vpop.permute.xlu1 %1608 }
 0x282   :  { %8601 = vst [vmem:[#allocation40_spill] sm:$0xff] %v5777_v1  ;;  %8602 = vst [vmem:[#allocation41_spill] sm:$0xff] %v5779_v8 }
 0x283   :  { %1081 = vrot.lane.b32.xlu0 %v5707_v11, %s5100_s11  ;;  %1095 = vrot.lane.b32.xlu1 %v5705_v10, %s5100_s11 }
 0x285   :  { %v5788_v4 = vpop.permute.xlu0 %1610  ;;  %v669_v3 = vpop.permute.xlu1 %668 }
 0x286   :  { %8603 = vst [vmem:[#allocation42_spill] sm:$0xff] %v5788_v4  ;;  %v701_v1 = vsel %vm692_vm9, %v5611_v48, %v669_v3 }
 0x287   :  { %1097 = vrot.lane.b32.xlu0 %v5719_v18, %s5100_s11  ;;  %1183 = vrot.lane.b32.xlu1 %v5691_v7, %s5101_s6  ;;  %v732_v38 = vmul.f32 %v5792_v40, %v701_v1 }
 0x289   :  { %v671_v8 = vpop.permute.xlu0 %670  ;;  %v685_v44 = vpop.permute.xlu1 %684 }
 0x28a   :  { %v702_v4 = vsel %vm692_vm9, %v5617_v49, %v671_v8  ;;  %v693_v29 = vsel %vm692_vm9, %v5619_v50, %v685_v44  ;;  %v705_v34 = vsel %vm692_vm9, %v685_v44, %v5611_v48 }
 0x28b   :  { %v736_v41 = vmul.f32 %v5792_v40, %v702_v4  ;;  %1185 = vrot.lane.b32.xlu0 %v5707_v11, %s5101_s6  ;;  %1199 = vrot.lane.b32.xlu1 %v5705_v10, %s5101_s6  ;;  %v698_v4 = vsel %vm692_vm9, %v671_v8, %v5625_v51  ;;  %v697_v40 = vsel %vm692_vm9, %v669_v3, %v5619_v50 }
 0x28c   :  { %v731_v8 = vmul.f32 %v5807_v30, %v705_v34  ;;  %v734_v24 = vmul.f32 %v5810_v35, %v693_v29  ;;  %v737_v50 = vmul.f32 %v5828_v26, %v698_v4  ;;  %v733_v29 = vmul.f32 %v5828_v26, %v697_v40 }
 0x28d   :  { %v687_v1 = vpop.permute.xlu0 %686  ;;  %v5825_v25 = vpop.permute.xlu1 %771  ;;  %v4527_v27 = vpack.c.bf16 %v736_v41, %v732_v38 }
 0x28e   :  { %v694_v48 = vsel %vm692_vm9, %v5625_v51, %v687_v1  ;;  %v706_v44 = vsel %vm692_vm9, %v687_v1, %v5617_v49  ;;  %v4729_v12 = vpack.c.bf16 %v737_v50, %v733_v29  ;;  %v636_v29 = vadd.f32 %v5468_v32, %v5603_v46 }
 0x28f   :  { %v735_v38 = vmul.f32 %v5807_v30, %v706_v44  ;;  %v738_v41 = vmul.f32 %v5810_v35, %v694_v48  ;;  %1201 = vrot.lane.b32.xlu0 %v5719_v18, %s5101_s6  ;;  %1287 = vrot.lane.b32.xlu1 %v5691_v7, %s5087_s12 }
 0x290   :  { %4528 = vmatprep.subr.bf16.mxu0 %v4527_v27 }
 0x291   :  { %v4529_v51 = vpack.c.bf16 %v735_v38, %v731_v8  ;;  %v5848_v3 = vpop.permute.xlu0 %773  ;;  %v5850_v49 = vpop.permute.xlu1 %787  ;;  %v4727_v34 = vpack.c.bf16 %v738_v41, %v734_v24  ;;  %v547_v38 = vadd.f32 %v5466_v31, %v5603_v46  ;;  %v553_v41 = vadd.f32 %v5480_v36, %v5609_v47 }
 0x292   :  { %v642_v36 = vadd.f32 %v5482_v37, %v5609_v47 }
 0x293   :  { %1289 = vrot.lane.b32.xlu0 %v5707_v11, %s5087_s12  ;;  %1303 = vrot.lane.b32.xlu1 %v5705_v10, %s5087_s12  ;;  %v5905_v31 = vmax.f32 %v553_v41, 0.0 }
 0x294   :  { %4530 = vmatpush1.bf16.msra.mxu0 %v4529_v51  ;;  %4728 = vmatprep.subr.bf16.mxu1 %v4727_v34  ;;  %v5897_v34 = vmax.f32 %v547_v38, 0.0  ;;  %v5913_v38 = vmax.f32 %v636_v29, 0.0  ;;  %v5919_v32 = vmax.f32 %v642_v36, 0.0 }
 0x295   :  { %v5857_v4 = vpop.permute.xlu0 %789  ;;  %v5859_v27 = vpop.permute.xlu1 %875  ;;  %4730 = vmatpush1.bf16.msra.mxu1 %v4729_v12  ;;  %8609 = vst [vmem:[#allocation48_spill] sm:$0xff] %v5905_v31 }
 0x296   :  { %8608 = vst [vmem:[#allocation47_spill] sm:$0xff] %v5897_v34  ;;  %8611 = vst [vmem:[#allocation50_spill] sm:$0xff] %v5913_v38 }
 0x297   :  { %1305 = vrot.lane.b32.xlu0 %v5719_v18, %s5087_s12  ;;  %1390 = vrot.lane.b32.xlu1 %v5691_v7, %s5088_s13  ;;  %8612 = vst [vmem:[#allocation51_spill] sm:$0xff] %v5919_v32 }
 0x299   :  { %v5865_v24 = vpop.permute.xlu0 %877  ;;  %v5867_v40 = vpop.permute.xlu1 %891 }
 0x29b   :  { %1392 = vrot.lane.b32.xlu0 %v5707_v11, %s5088_s13  ;;  %1406 = vrot.lane.b32.xlu1 %v5705_v10, %s5088_s13 }
 0x29d   :  { %v5873_v1 = vpop.permute.xlu0 %893  ;;  %v5875_v48 = vpop.permute.xlu1 %979 }
 0x29f   :  { %1408 = vrot.lane.b32.xlu0 %v5719_v18, %s5088_s13  ;;  %1493 = vrot.lane.b32.xlu1 %v5691_v7, %s5089_s14 }
 0x2a1   :  { %v5881_v44 = vpop.permute.xlu0 %981  ;;  %v5883_v8 = vpop.permute.xlu1 %995 }
 0x2a3   :  { %1495 = vrot.lane.b32.xlu0 %v5707_v11, %s5089_s14  ;;  %1509 = vrot.lane.b32.xlu1 %v5705_v10, %s5089_s14 }
 0x2a5   :  { %v5893_v50 = vpop.permute.xlu0 %997  ;;  %v5895_v51 = vpop.permute.xlu1 %1083 }
 0x2a7   :  { %1511 = vrot.lane.b32.xlu0 %v5719_v18, %s5089_s14  ;;  %672 = vrot.lane.b32.xlu1 %v5897_v34, %s5097_s3 }
 0x2a9   :  { %v5909_v12 = vpop.permute.xlu0 %1085  ;;  %v5911_v35 = vpop.permute.xlu1 %1099 }
 0x2aa   :  { %8610 = vst [vmem:[#allocation49_spill] sm:$0xff] %v5911_v35  ;;  %v4466_v35 = vld [vmem:[%s8381_s4 + $0x6] ss:$8 sm:$0xf] }
 0x2ab   :  { %674 = vrot.lane.b32.xlu0 %v5905_v31, %s5097_s3  ;;  %688 = vrot.lane.b32.xlu1 %v5913_v38, %s5097_s3 }
 0x2ad   :  { %v5921_v46 = vpop.permute.xlu0 %1101  ;;  %v5923_v41 = vpop.permute.xlu1 %1187 }
 0x2ae   :  { %8613 = vst [vmem:[#allocation52_spill] sm:$0xff] %v5921_v46  ;;  %8614 = vst [vmem:[#allocation53_spill] sm:$0xff] %v5923_v41 }
 0x2af   :  { %690 = vrot.lane.b32.xlu0 %v5919_v32, %s5097_s3  ;;  %775 = vrot.lane.b32.xlu1 %v5897_v34, %s5098_s29 }
 0x2b1   :  { %v5929_v37 = vpop.permute.xlu0 %1189  ;;  %v5931_v47 = vpop.permute.xlu1 %1203 }
 0x2b2   :  { %8615 = vst [vmem:[#allocation54_spill] sm:$0xff] %v5929_v37  ;;  %8616 = vst [vmem:[#allocation55_spill] sm:$0xff] %v5931_v47 }
 0x2b3   :  { %777 = vrot.lane.b32.xlu0 %v5905_v31, %s5098_s29  ;;  %791 = vrot.lane.b32.xlu1 %v5913_v38, %s5098_s29 }
 0x2b5   :  { %v5937_v29 = vpop.permute.xlu0 %1205  ;;  %v5939_v36 = vpop.permute.xlu1 %1291 }
 0x2b6   :  { %8617 = vst [vmem:[#allocation56_spill] sm:$0xff] %v5937_v29  ;;  %8618 = vst [vmem:[#allocation57_spill] sm:$0xff] %v5939_v36 }
 0x2b7   :  { %793 = vrot.lane.b32.xlu0 %v5919_v32, %s5098_s29  ;;  %879 = vrot.lane.b32.xlu1 %v5897_v34, %s5085_s10  ;;  %s5111_s29 = smov 94  }
 0x2b9   :  { %v5945_v30 = vpop.permute.xlu0 %1293  ;;  %v5947_v26 = vpop.permute.xlu1 %1307 }
 0x2ba   :  { %8619 = vst [vmem:[#allocation58_spill] sm:$0xff] %v5945_v30  ;;  %8620 = vst [vmem:[#allocation59_spill] sm:$0xff] %v5947_v26 }
 0x2bb   :  { %881 = vrot.lane.b32.xlu0 %v5905_v31, %s5085_s10  ;;  %895 = vrot.lane.b32.xlu1 %v5913_v38, %s5085_s10 }
 0x2bd   :  { %v5953_v47 = vpop.permute.xlu0 %1309  ;;  %v5955_v29 = vpop.permute.xlu1 %1394 }
 0x2be   :  { %8621 = vst [vmem:[#allocation60_spill] sm:$0xff] %v5953_v47  ;;  %8622 = vst [vmem:[#allocation61_spill] sm:$0xff] %v5955_v29 }
 0x2bf   :  { %897 = vrot.lane.b32.xlu0 %v5919_v32, %s5085_s10  ;;  %983 = vrot.lane.b32.xlu1 %v5897_v34, %s5099_s30 }
 0x2c1   :  { %v5961_v36 = vpop.permute.xlu0 %1396  ;;  %v5963_v30 = vpop.permute.xlu1 %1410 }
 0x2c2   :  { %8623 = vst [vmem:[#allocation62_spill] sm:$0xff] %v5961_v36  ;;  %8624 = vst [vmem:[#allocation63_spill] sm:$0xff] %v5963_v30 }
 0x2c3   :  { %985 = vrot.lane.b32.xlu0 %v5905_v31, %s5099_s30  ;;  %999 = vrot.lane.b32.xlu1 %v5913_v38, %s5099_s30 }
 0x2c5   :  { %v5969_v26 = vpop.permute.xlu0 %1412  ;;  %v5971_v47 = vpop.permute.xlu1 %1497 }
 0x2c6   :  { %8625 = vst [vmem:[#allocation64_spill] sm:$0xff] %v5969_v26  ;;  %8626 = vst [vmem:[#allocation65_spill] sm:$0xff] %v5971_v47 }
 0x2c7   :  { %1001 = vrot.lane.b32.xlu0 %v5919_v32, %s5099_s30  ;;  %1087 = vrot.lane.b32.xlu1 %v5897_v34, %s5100_s11 }
 0x2c9   :  { %v5977_v29 = vpop.permute.xlu0 %1499  ;;  %v5979_v36 = vpop.permute.xlu1 %1513 }
 0x2ca   :  { %8627 = vst [vmem:[#allocation66_spill] sm:$0xff] %v5977_v29  ;;  %8628 = vst [vmem:[#allocation67_spill] sm:$0xff] %v5979_v36 }
 0x2cb   :  { %1089 = vrot.lane.b32.xlu0 %v5905_v31, %s5100_s11  ;;  %1103 = vrot.lane.b32.xlu1 %v5913_v38, %s5100_s11 }
 0x2cd   :  { %v5985_v30 = vpop.permute.xlu0 %1515  ;;  %v5987_v26 = vpop.permute.xlu1 %1600 }
 0x2ce   :  { %8629 = vst [vmem:[#allocation68_spill] sm:$0xff] %v5985_v30  ;;  %8630 = vst [vmem:[#allocation69_spill] sm:$0xff] %v5987_v26 }
 0x2cf   :  { %1105 = vrot.lane.b32.xlu0 %v5919_v32, %s5100_s11  ;;  %1191 = vrot.lane.b32.xlu1 %v5897_v34, %s5101_s6 }
 0x2d1   :  { %v5993_v47 = vpop.permute.xlu0 %1602  ;;  %v5995_v29 = vpop.permute.xlu1 %664 }
 0x2d2   :  { %8631 = vst [vmem:[#allocation70_spill] sm:$0xff] %v5993_v47  ;;  %8632 = vst [vmem:[#allocation71_spill] sm:$0xff] %v5995_v29 }
 0x2d3   :  { %1193 = vrot.lane.b32.xlu0 %v5905_v31, %s5101_s6  ;;  %1207 = vrot.lane.b32.xlu1 %v5913_v38, %s5101_s6 }
 0x2d5   :  { %v6001_v36 = vpop.permute.xlu0 %666  ;;  %v6003_v30 = vpop.permute.xlu1 %680 }
 0x2d6   :  { %8633 = vst [vmem:[#allocation72_spill] sm:$0xff] %v6001_v36  ;;  %8634 = vst [vmem:[#allocation73_spill] sm:$0xff] %v6003_v30 }
 0x2d7   :  { %1209 = vrot.lane.b32.xlu0 %v5919_v32, %s5101_s6  ;;  %1295 = vrot.lane.b32.xlu1 %v5897_v34, %s5087_s12 }
 0x2d9   :  { %v6009_v26 = vpop.permute.xlu0 %682  ;;  %v6011_v47 = vpop.permute.xlu1 %767 }
 0x2da   :  { %8635 = vst [vmem:[#allocation74_spill] sm:$0xff] %v6009_v26  ;;  %8636 = vst [vmem:[#allocation75_spill] sm:$0xff] %v6011_v47  ;;  %v3203_v47 = vld [vmem:[%s8382_s5 + $0x8] sm:$0xff] }
 0x2db   :  { %1297 = vrot.lane.b32.xlu0 %v5905_v31, %s5087_s12  ;;  %1311 = vrot.lane.b32.xlu1 %v5913_v38, %s5087_s12 }
 0x2dc   :  { %3699 = vmatprep.mubr.f32.mxu0 %v3203_v47  ;;  %4007 = vmatprep.mubr.f32.mxu1 %v3203_v47 }
 0x2dd   :  { %v6017_v29 = vpop.permute.xlu0 %769  ;;  %v6019_v36 = vpop.permute.xlu1 %783 }
 0x2de   :  { %8637 = vst [vmem:[#allocation76_spill] sm:$0xff] %v6017_v29  ;;  %8638 = vst [vmem:[#allocation77_spill] sm:$0xff] %v6019_v36 }
 0x2df   :  { %1313 = vrot.lane.b32.xlu0 %v5919_v32, %s5087_s12  ;;  %1398 = vrot.lane.b32.xlu1 %v5897_v34, %s5088_s13  ;;  %s5104_s12 = smov 126  }
 0x2e1   :  { %v6025_v30 = vpop.permute.xlu0 %785  ;;  %v6027_v26 = vpop.permute.xlu1 %871 }
 0x2e2   :  { %8639 = vst [vmem:[#allocation78_spill] sm:$0xff] %v6025_v30  ;;  %8640 = vst [vmem:[#allocation79_spill] sm:$0xff] %v6027_v26 }
 0x2e3   :  { %1400 = vrot.lane.b32.xlu0 %v5905_v31, %s5088_s13  ;;  %1414 = vrot.lane.b32.xlu1 %v5913_v38, %s5088_s13 }
 0x2e5   :  { %v6036_v36 = vpop.permute.xlu0 %873  ;;  %v6038_v29 = vpop.permute.xlu1 %887 }
 0x2e6   :  { %8641 = vst [vmem:[#allocation80_spill] sm:$0xff] %v6036_v36  ;;  %8642 = vst [vmem:[#allocation81_spill] sm:$0xff] %v6038_v29 }
 0x2e7   :  { %1416 = vrot.lane.b32.xlu0 %v5919_v32, %s5088_s13  ;;  %1501 = vrot.lane.b32.xlu1 %v5897_v34, %s5089_s14 }
 0x2e9   :  { %v6044_v26 = vpop.permute.xlu0 %889  ;;  %v6046_v30 = vpop.permute.xlu1 %975 }
 0x2ea   :  { %8643 = vst [vmem:[#allocation82_spill] sm:$0xff] %v6044_v26  ;;  %8644 = vst [vmem:[#allocation83_spill] sm:$0xff] %v6046_v30 }
 0x2eb   :  { %1503 = vrot.lane.b32.xlu0 %v5905_v31, %s5089_s14  ;;  %1517 = vrot.lane.b32.xlu1 %v5913_v38, %s5089_s14 }
 0x2ed   :  { %v6052_v36 = vpop.permute.xlu0 %977  ;;  %v6054_v29 = vpop.permute.xlu1 %991 }
 0x2ee   :  { %8645 = vst [vmem:[#allocation84_spill] sm:$0xff] %v6052_v36  ;;  %8646 = vst [vmem:[#allocation85_spill] sm:$0xff] %v6054_v29 }
 0x2ef   :  { %1519 = vrot.lane.b32.xlu0 %v5919_v32, %s5089_s14  ;;  %1616 = vrot.lane.b32.xlu1 %v5567_v42, %s5102_s19  ;;  %s5105_s14 = smov 114  }
 0x2f1   :  { %v6060_v47 = vpop.permute.xlu0 %993  ;;  %v6062_v26 = vpop.permute.xlu1 %1079 }
 0x2f2   :  { %8647 = vst [vmem:[#allocation86_spill] sm:$0xff] %v6060_v47  ;;  %8648 = vst [vmem:[#allocation87_spill] sm:$0xff] %v6062_v26  ;;  %v4461_v26 = vld [vmem:[%s8381_s4 + $0x1] ss:$8 sm:$0xf] }
 0x2f3   :  { %1618 = vrot.lane.b32.xlu0 %v5577_v45, %s5102_s19  ;;  %1596 = vrot.lane.b32.xlu1 %v5691_v7, %s5102_s19  ;;  %v6103_v13 = vrot.slane %v4461_v26, %v5309_v20  ;;  %v6106_v9 = vrot.slane %v4461_v26, %v5313_v22  ;;  %v4467_v7 = vld [vmem:[%s8381_s4 + $0x7] ss:$8 sm:$0xf] }
 0x2f5   :  { %v6068_v30 = vpop.permute.xlu0 %1081  ;;  %v6070_v36 = vpop.permute.xlu1 %1095 }
 0x2f6   :  { %8649 = vst [vmem:[#allocation88_spill] sm:$0xff] %v6068_v30  ;;  %8650 = vst [vmem:[#allocation89_spill] sm:$0xff] %v6070_v36  ;;  %v4462_v36 = vld [vmem:[%s8381_s4 + $0x2] ss:$8 sm:$0xf] }
 0x2f7   :  { %1598 = vrot.lane.b32.xlu0 %v5707_v11, %s5102_s19  ;;  %1604 = vrot.lane.b32.xlu1 %v5897_v34, %s5102_s19  ;;  %v6118_v37 = vrot.slane %v4462_v36, %v5311_v21  ;;  %v6121_v19 = vrot.slane %v4462_v36, %v5309_v20 }
 0x2f9   :  { %v6076_v29 = vpop.permute.xlu0 %1097  ;;  %v6078_v47 = vpop.permute.xlu1 %1183 }
 0x2fa   :  { %8651 = vst [vmem:[#allocation90_spill] sm:$0xff] %v6076_v29  ;;  %8652 = vst [vmem:[#allocation91_spill] sm:$0xff] %v6078_v47  ;;  %v4463_v47 = vld [vmem:[%s8381_s4 + $0x3] ss:$8 sm:$0xf]  ;;  %v6097_v29 = vrot.slane %v4461_v26, %v5306_v15 }
 0x2fb   :  { %1606 = vrot.lane.b32.xlu0 %v5905_v31, %s5102_s19  ;;  %1612 = vrot.lane.b32.xlu1 %v5705_v10, %s5102_s19  ;;  %v6100_v31 = vrot.slane %v4461_v26, %v5311_v21  ;;  %v4464_v10 = vld [vmem:[%s8381_s4 + $0x4] ss:$8 sm:$0xf]  ;;  %v4465_v26 = vld [vmem:[%s8381_s4 + $0x5] ss:$8 sm:$0xf]  ;;  %v6132_v41 = vrot.slane %v4463_v47, %v5306_v15  ;;  %v6135_v16 = vrot.slane %v4463_v47, %v5311_v21 }
 0x2fc   :  { %v6138_v11 = vrot.slane %v4463_v47, %v5309_v20  ;;  %v6152_v46 = vrot.slane %v4464_v10, %v5311_v21  ;;  %v6155_v2 = vrot.slane %v4464_v10, %v5309_v20 }
 0x2fd   :  { %v6094_v30 = vpop.permute.xlu0 %1185  ;;  %v6111_v34 = vpop.permute.xlu1 %1199  ;;  %8655 = vst [vmem:[#allocation94_spill] sm:$0xff] %v6132_v41  ;;  %8656 = vst [vmem:[#allocation95_spill] sm:$0xff] %v6135_v16 }
 0x2fe   :  { %8653 = vst [vmem:[#allocation92_spill] sm:$0xff] %v6094_v30  ;;  %8654 = vst [vmem:[#allocation93_spill] sm:$0xff] %v6111_v34  ;;  %v6115_v30 = vrot.slane %v4462_v36, %v5306_v15  ;;  %v6129_v34 = vrot.slane %v4462_v36, %v5313_v22  ;;  %v6149_v36 = vrot.slane %v4464_v10, %v5306_v15 }
 0x2ff   :  { %1614 = vrot.lane.b32.xlu0 %v5719_v18, %s5102_s19  ;;  %8657 = vst [vmem:[#allocation96_spill] sm:$0xff] %v6138_v11  ;;  %1620 = vrot.lane.b32.xlu1 %v5913_v38, %s5102_s19  ;;  %v6146_v18 = vrot.slane %v4463_v47, %v5313_v22  ;;  %8660 = vst [vmem:[#allocation99_spill] sm:$0xff] %v6152_v46  ;;  %v6163_v38 = vrot.slane %v4464_v10, %v5313_v22 }
 0x300   :  { %8659 = vst [vmem:[#allocation98_spill] sm:$0xff] %v6149_v36  ;;  %8661 = vst [vmem:[#allocation100_spill] sm:$0xff] %v6155_v2  ;;  %v6166_v47 = vrot.slane %v4465_v26, %v5306_v15  ;;  %v6169_v36 = vrot.slane %v4465_v26, %v5311_v21  ;;  %v6172_v46 = vrot.slane %v4465_v26, %v5309_v20  ;;  %v4468_v2 = vld [vmem:[%s8381_s4 + $0x20] ss:$8 sm:$0xf] }
 0x301   :  { %8658 = vst [vmem:[#allocation97_spill] sm:$0xff] %v6146_v18  ;;  %v6160_v6 = vpop.permute.xlu0 %1201  ;;  %8663 = vst [vmem:[#allocation102_spill] sm:$0xff] %v6163_v38  ;;  %v6177_v18 = vpop.permute.xlu1 %1287  ;;  %v6183_v10 = vrot.slane %v4466_v35, %v5306_v15 }
 0x302   :  { %8662 = vst [vmem:[#allocation101_spill] sm:$0xff] %v6160_v6  ;;  %8664 = vst [vmem:[#allocation103_spill] sm:$0xff] %v6166_v47  ;;  %v6180_v6 = vrot.slane %v4465_v26, %v5313_v22  ;;  %v6186_v47 = vrot.slane %v4466_v35, %v5311_v21  ;;  %v805_v26 = vsel %vm795_vm10, %v5633_v53, %v5848_v3 }
 0x303   :  { %8665 = vst [vmem:[#allocation104_spill] sm:$0xff] %v6169_v36  ;;  %8666 = vst [vmem:[#allocation105_spill] sm:$0xff] %v6172_v46  ;;  %v6189_v36 = vrot.slane %v4466_v35, %v5309_v20  ;;  %1622 = vrot.lane.b32.xlu0 %v5919_v32, %s5102_s19  ;;  %1696 = vrot.lane.b32.xlu1 %v5450_v17, %s5103_s2  ;;  %v6211_v32 = vrot.slane %v4467_v7, %v5311_v21  ;;  %s5106_s19 = smov 110  }
 0x304   :  { %8667 = vst [vmem:[#allocation106_spill] sm:$0xff] %v6177_v18  ;;  %8668 = vst [vmem:[#allocation107_spill] sm:$0xff] %v6180_v6  ;;  %v801_v18 = vsel %vm795_vm10, %v5848_v3, %v5641_v55  ;;  %v6217_v3 = vrot.slane %v4467_v7, %v5313_v22  ;;  %v6220_v6 = vrot.slane %v4468_v2, %v5306_v15 }
 0x305   :  { %8669 = vst [vmem:[#allocation108_spill] sm:$0xff] %v6183_v10  ;;  %8670 = vst [vmem:[#allocation109_spill] sm:$0xff] %v6186_v47  ;;  %v6203_v47 = vrot.slane %v4466_v35, %v5313_v22  ;;  %v6214_v10 = vrot.slane %v4467_v7, %v5309_v20  ;;  %v6225_v35 = vld [vmem:[%s8381_s4 + $0x21] ss:$8 sm:$0xf]  ;;  %v808_v17 = vsel %vm795_vm10, %v5850_v49, %v5627_v52 }
 0x306   :  { %8671 = vst [vmem:[#allocation110_spill] sm:$0xff] %v6189_v36  ;;  %v6206_v36 = vrot.slane %v4467_v7, %v5306_v15  ;;  %8674 = vst [vmem:[#allocation113_spill] sm:$0xff] %v6211_v32  ;;  %v800_v32 = vsel %vm795_vm10, %v5825_v25, %v5635_v54  ;;  %v804_v7 = vsel %vm795_vm10, %v5627_v52, %v5825_v25 }
 0x307   :  { %8672 = vst [vmem:[#allocation111_spill] sm:$0xff] %v6203_v47  ;;  %8675 = vst [vmem:[#allocation114_spill] sm:$0xff] %v6214_v10  ;;  %v6243_v10 = vpop.permute.xlu1 %1303  ;;  %v6249_v47 = vmul.f32 %v6100_v31, %v801_v18  ;;  %v809_v25 = vsel %vm795_vm10, %v5857_v4, %v5633_v53  ;;  %1698 = vrot.lane.b32.xlu0 %v5460_v28, %s5103_s2  ;;  %v6267_v18 = vrot.slane %v4468_v2, %v5313_v22 }
 0x308   :  { %8673 = vst [vmem:[#allocation112_spill] sm:$0xff] %v6206_v36  ;;  %8676 = vst [vmem:[#allocation115_spill] sm:$0xff] %v6217_v3  ;;  %v6227_v36 = vpop.permute.xlu0 %1289  ;;  %v6238_v3 = vrot.slane %v4468_v2, %v5311_v21  ;;  %v6271_v52 = vrot.slane %v6225_v35, %v5306_v15  ;;  %v6275_v53 = vrot.slane %v6225_v35, %v5311_v21  ;;  %1704 = vrot.lane.b32.xlu1 %v5558_v39, %s5103_s2 }
 0x309   :  { %8677 = vst [vmem:[#allocation116_spill] sm:$0xff] %v6220_v6  ;;  %8678 = vst [vmem:[#allocation117_spill] sm:$0xff] %v6225_v35  ;;  %v6241_v6 = vrot.slane %v4468_v2, %v5309_v20  ;;  %v6280_v20 = vmul.f32 %v6097_v29, %v804_v7  ;;  %v797_v2 = vsel %vm795_vm10, %v5641_v55, %v5857_v4 }
 0x30a   :  { %8679 = vst [vmem:[#allocation118_spill] sm:$0xff] %v6227_v36  ;;  %8680 = vst [vmem:[#allocation119_spill] sm:$0xff] %v6238_v3  ;;  %v6246_v36 = vmul.f32 %v6097_v29, %v805_v26  ;;  %v796_v26 = vsel %vm795_vm10, %v5635_v54, %v5850_v49  ;;  %v6283_v54 = vmul.f32 %v6100_v31, %v800_v32 }
 0x30b   :  { %8681 = vst [vmem:[#allocation120_spill] sm:$0xff] %v6241_v6  ;;  %8682 = vst [vmem:[#allocation121_spill] sm:$0xff] %v6243_v10  ;;  %v905_v49 = vsel %vm899_vm11, %v5865_v24, %v5657_v59  ;;  %v6296_v15 = vmul.f32 %v6103_v13, %v808_v17  ;;  %v6299_v7 = vmul.f32 %v6103_v13, %v809_v25  ;;  %v6309_v4 = vpop.permute.xlu1 %1390  ;;  %1706 = vrot.lane.b32.xlu0 %v5569_v43, %s5103_s2  ;;  %v8707_v10 = vld [vmem:[#allocation98_spill] sm:$0xff] }
 0x30c   :  { %8683 = vst [vmem:[#allocation122_spill] sm:$0xff] %v6267_v18  ;;  %8684 = vst [vmem:[#allocation123_spill] sm:$0xff] %v6271_v52  ;;  %v6293_v21 = vpop.permute.xlu0 %1305  ;;  %v904_v32 = vsel %vm899_vm11, %v5859_v27, %v5651_v58  ;;  %v908_v55 = vsel %vm899_vm11, %v5643_v56, %v5859_v27  ;;  %v6314_v17 = vmul.f32 %v6106_v9, %v796_v26  ;;  %1712 = vrot.lane.b32.xlu1 %v5452_v23, %s5103_s2 }
 0x30d   :  { %8685 = vst [vmem:[#allocation124_spill] sm:$0xff] %v6275_v53  ;;  %8686 = vst [vmem:[#allocation125_spill] sm:$0xff] %v6293_v21  ;;  %v909_v25 = vsel %vm899_vm11, %v5649_v57, %v5865_v24  ;;  %v6325_v27 = vmul.f32 %v6106_v9, %v797_v2  ;;  %v6328_v35 = vmul.f32 %v6118_v37, %v905_v49 }
 0x30e   :  { %8687 = vst [vmem:[#allocation126_spill] sm:$0xff] %v6309_v4  ;;  %v901_v26 = vsel %vm899_vm11, %v5657_v59, %v5873_v1  ;;  %v913_v24 = vsel %vm899_vm11, %v5873_v1, %v5649_v57  ;;  %v6341_v53 = vmul.f32 %v6115_v30, %v908_v55  ;;  %v6344_v2 = vmul.f32 %v6118_v37, %v904_v32 }
 0x30f   :  { %8688 = vst [vmem:[#allocation127_spill] sm:$0xff] %v6328_v35  ;;  %v900_v49 = vsel %vm899_vm11, %v5651_v58, %v5867_v40  ;;  %v912_v59 = vsel %vm899_vm11, %v5867_v40, %v5643_v56  ;;  %v6360_v32 = vmul.f32 %v6115_v30, %v909_v25  ;;  %v1009_v58 = vsel %vm1003_vm12, %v5881_v44, %v5673_v63  ;;  %v6370_v40 = vpop.permute.xlu1 %1406 }
 0x310   :  { %8689 = vst [vmem:[#allocation128_spill] sm:$0xff] %v6344_v2  ;;  %v6355_v57 = vpop.permute.xlu0 %1392  ;;  %v1013_v56 = vsel %vm1003_vm12, %v5665_v61, %v5881_v44  ;;  %8691 = vst [vmem:[#allocation130_spill] sm:$0xff] %v6370_v40  ;;  %v6373_v55 = vmul.f32 %v6121_v19, %v913_v24  ;;  %v6376_v1 = vmul.f32 %v6129_v34, %v901_v26  ;;  %1714 = vrot.lane.b32.xlu0 %v5474_v33, %s5103_s2  ;;  %v8767_v2 = vld [vmem:[#allocation77_spill] sm:$0xff] }
 0x311   :  { %8690 = vst [vmem:[#allocation129_spill] sm:$0xff] %v6355_v57  ;;  %v1008_v25 = vsel %vm1003_vm12, %v5875_v48, %v5667_v62  ;;  %v1012_v22 = vsel %vm1003_vm12, %v5659_v60, %v5875_v48  ;;  %v6391_v24 = vmul.f32 %v6121_v19, %v912_v59  ;;  %v6394_v26 = vmul.f32 %v6129_v34, %v900_v49 }
 0x312   :  { %1720 = vrot.lane.b32.xlu1 %v5567_v42, %s5103_s2  ;;  %v6401_v48 = vmul.f32 %v6132_v41, %v1013_v56  ;;  %v6404_v40 = vmul.f32 %v6135_v16, %v1009_v58  ;;  %v1016_v59 = vsel %vm1003_vm12, %v5883_v8, %v5659_v60  ;;  %v1017_v49 = vsel %vm1003_vm12, %v5893_v50, %v5665_v61 }
 0x313   :  { %v6417_v52 = vmul.f32 %v6132_v41, %v1012_v22  ;;  %v6420_v56 = vmul.f32 %v6135_v16, %v1008_v25  ;;  %v1004_v58 = vsel %vm1003_vm12, %v5667_v62, %v5883_v8  ;;  %v6426_v57 = vpop.permute.xlu1 %1493  ;;  %v1005_v22 = vsel %vm1003_vm12, %v5673_v63, %v5893_v50  ;;  %v8700_v50 = vld [vmem:[#allocation17_spill] sm:$0xff]  ;;  %v8759_v41 = vld [vmem:[#allocation30_spill] sm:$0xff] }
 0x314   :  { %8692 = vst [vmem:[#allocation131_spill] sm:$0xff] %v6401_v48  ;;  %8693 = vst [vmem:[#allocation132_spill] sm:$0xff] %v6404_v40  ;;  %v6414_v44 = vpop.permute.xlu0 %1408  ;;  %v1116_v25 = vsel %vm1107_vm13, %v5675_v5, %v5895_v51  ;;  %1722 = vrot.lane.b32.xlu0 %v5577_v45, %s5103_s2  ;;  %v6445_v8 = vmul.f32 %v6138_v11, %v1016_v59  ;;  %v6448_v61 = vmul.f32 %v6138_v11, %v1017_v49  ;;  %v8702_v62 = vld [vmem:[#allocation97_spill] sm:$0xff]  ;;  %v8704_v49 = vld [vmem:[#allocation18_spill] sm:$0xff] }
 0x315   :  { %8694 = vst [vmem:[#allocation133_spill] sm:$0xff] %v6414_v44  ;;  %8695 = vst [vmem:[#allocation134_spill] sm:$0xff] %v6417_v52  ;;  %v1113_v63 = vsel %vm1107_vm13, %v5909_v12, %v5697_v0  ;;  %v1117_v60 = vsel %vm1107_vm13, %v8700_v50, %v5909_v12  ;;  %v6463_v44 = vmul.f32 %v8702_v62, %v1004_v58  ;;  %v8709_v59 = vld [vmem:[#allocation52_spill] sm:$0xff]  ;;  %v8720_v40 = vld [vmem:[#allocation54_spill] sm:$0xff] }
 0x316   :  { %8696 = vst [vmem:[#allocation135_spill] sm:$0xff] %v6420_v56  ;;  %8697 = vst [vmem:[#allocation136_spill] sm:$0xff] %v6426_v57  ;;  %v8701_v57 = vld [vmem:[#allocation19_spill] sm:$0xff]  ;;  %v1112_v4 = vsel %vm1107_vm13, %v5895_v51, %v8704_v49  ;;  %v6474_v12 = vmul.f32 %v8702_v62, %v1005_v22  ;;  %v6477_v21 = vmul.f32 %v8707_v10, %v1116_v25  ;;  %v8714_v25 = vld [vmem:[#allocation49_spill] sm:$0xff] }
 0x317   :  { %8698 = vst [vmem:[#allocation137_spill] sm:$0xff] %v6445_v8  ;;  %8699 = vst [vmem:[#allocation138_spill] sm:$0xff] %v6448_v61  ;;  %1700 = vrot.lane.b32.xlu1 %v8701_v57, %s5103_s2  ;;  %v1109_v58 = vsel %vm1107_vm13, %v5697_v0, %v8709_v59  ;;  %v1121_v51 = vsel %vm1107_vm13, %v8709_v59, %v8700_v50  ;;  %v6490_v6 = vmul.f32 %v8707_v10, %v1117_v60  ;;  %v8712_v22 = vld [vmem:[#allocation99_spill] sm:$0xff]  ;;  %v8715_v50 = vld [vmem:[#allocation22_spill] sm:$0xff] }
 0x318   :  { %8703 = vst [vmem:[#allocation17_spill] sm:$0xff] %v6463_v44  ;;  %v6469_v18 = vpop.permute.xlu0 %1495  ;;  %8706 = vst [vmem:[#allocation18_spill] sm:$0xff] %v6474_v12  ;;  %v6493_v3 = vmul.f32 %v8712_v22, %v1113_v63  ;;  %v1108_v56 = vsel %vm1107_vm13, %v8704_v49, %v8714_v25  ;;  %v1120_v0 = vsel %vm1107_vm13, %v8714_v25, %v5675_v5  ;;  %1702 = vrot.lane.b32.xlu0 %v8715_v50, %s5103_s2  ;;  %v8717_v63 = vld [vmem:[#allocation24_spill] sm:$0xff]  ;;  %v8719_v49 = vld [vmem:[#allocation26_spill] sm:$0xff] }
 0x319   :  { %8705 = vst [vmem:[#allocation19_spill] sm:$0xff] %v6469_v18  ;;  %8708 = vst [vmem:[#allocation139_spill] sm:$0xff] %v6477_v21  ;;  %v6487_v18 = vpop.permute.xlu1 %1509  ;;  %v6508_v59 = vmul.f32 %v8712_v22, %v1112_v4  ;;  %v1217_v62 = vsel %vm1211_vm14, %v8720_v40, %v8719_v49  ;;  %v8721_v5 = vld [vmem:[#allocation47_spill] sm:$0xff]  ;;  %v8722_v25 = vld [vmem:[#allocation100_spill] sm:$0xff]  ;;  %v6524_v60 = vmul.f32 %v6163_v38, %v1109_v58 }
 0x31a   :  { %8710 = vst [vmem:[#allocation52_spill] sm:$0xff] %v6487_v18  ;;  %8711 = vst [vmem:[#allocation140_spill] sm:$0xff] %v6490_v6  ;;  %v8718_v18 = vld [vmem:[#allocation53_spill] sm:$0xff]  ;;  %v6521_v11 = vmul.f32 %v8722_v25, %v1121_v51  ;;  %v8725_v4 = vld [vmem:[#allocation20_spill] sm:$0xff]  ;;  %v6537_v48 = vmul.f32 %v8722_v25, %v1120_v0  ;;  %v6540_v51 = vmul.f32 %v6163_v38, %v1108_v56 }
 0x31b   :  { %8713 = vst [vmem:[#allocation141_spill] sm:$0xff] %v6493_v3  ;;  %8716 = vst [vmem:[#allocation49_spill] sm:$0xff] %v6508_v59  ;;  %v1216_v10 = vsel %vm1211_vm14, %v8718_v18, %v8717_v63  ;;  %1708 = vrot.lane.b32.xlu1 %v8721_v5, %s5103_s2  ;;  %v1220_v22 = vsel %vm1211_vm14, %v8725_v4, %v8718_v18  ;;  %v8726_v8 = vld [vmem:[#allocation23_spill] sm:$0xff]  ;;  %v8731_v50 = vld [vmem:[#allocation104_spill] sm:$0xff] }
 0x31c   :  { %8723 = vst [vmem:[#allocation24_spill] sm:$0xff] %v6521_v11  ;;  %8724 = vst [vmem:[#allocation53_spill] sm:$0xff] %v6524_v60  ;;  %v1221_v61 = vsel %vm1211_vm14, %v8726_v8, %v8720_v40  ;;  %v6534_v52 = vpop.permute.xlu0 %1511  ;;  %v8730_v58 = vld [vmem:[#allocation55_spill] sm:$0xff]  ;;  %v8733_v0 = vld [vmem:[#allocation48_spill] sm:$0xff]  ;;  %v6565_v18 = vmul.f32 %v8731_v50, %v1216_v10 }
 0x31d   :  { %8727 = vst [vmem:[#allocation26_spill] sm:$0xff] %v6534_v52  ;;  %8728 = vst [vmem:[#allocation54_spill] sm:$0xff] %v6537_v48  ;;  %v1224_v16 = vsel %vm1211_vm14, %v8730_v58, %v8725_v4  ;;  %v673_v5 = vpop.permute.xlu1 %672  ;;  %v6551_v52 = vmul.f32 %v8731_v50, %v1217_v62  ;;  %v1212_v56 = vsel %vm1211_vm14, %v8717_v63, %v8730_v58  ;;  %1710 = vrot.lane.b32.xlu0 %v8733_v0, %s5103_s2  ;;  %v8734_v38 = vld [vmem:[#allocation103_spill] sm:$0xff]  ;;  %v8739_v63 = vld [vmem:[#allocation21_spill] sm:$0xff] }
 0x31e   :  { %8729 = vst [vmem:[#allocation20_spill] sm:$0xff] %v6540_v51  ;;  %v6562_v25 = vmul.f32 %v8734_v38, %v1220_v22  ;;  %8736 = vst [vmem:[#allocation142_spill] sm:$0xff] %v6565_v18  ;;  %v6568_v62 = vmul.f32 %v8734_v38, %v1221_v61  ;;  %v8738_v40 = vld [vmem:[#allocation71_spill] sm:$0xff]  ;;  %v6578_v4 = vmul.f32 %v6172_v46, %v1224_v16  ;;  %v8741_v22 = vld [vmem:[#allocation56_spill] sm:$0xff] }
 0x31f   :  { %8732 = vst [vmem:[#allocation23_spill] sm:$0xff] %v6551_v52  ;;  %v703_v59 = vsel %vm692_vm9, %v8738_v40, %v673_v5  ;;  %1716 = vrot.lane.b32.xlu1 %v8739_v63, %s5103_s2  ;;  %v1225_v10 = vsel %vm1211_vm14, %v8741_v22, %v8726_v8  ;;  %v8742_v38 = vld [vmem:[#allocation107_spill] sm:$0xff]  ;;  %v1213_v58 = vsel %vm1211_vm14, %v8719_v49, %v8741_v22  ;;  %v8743_v48 = vld [vmem:[#allocation57_spill] sm:$0xff]  ;;  %v8745_v21 = vld [vmem:[#allocation72_spill] sm:$0xff] }
 0x320   :  { %8735 = vst [vmem:[#allocation55_spill] sm:$0xff] %v6562_v25  ;;  %8737 = vst [vmem:[#allocation143_spill] sm:$0xff] %v6568_v62  ;;  %v675_v61 = vpop.permute.xlu0 %674  ;;  %v6587_v3 = vmul.f32 %v8742_v38, %v1212_v56  ;;  %v8744_v16 = vld [vmem:[#allocation27_spill] sm:$0xff]  ;;  %v8747_v60 = vld [vmem:[#allocation74_spill] sm:$0xff]  ;;  %v6610_v0 = vmul.f32 %v6172_v46, %v1225_v10 }
 0x321   :  { %8740 = vst [vmem:[#allocation71_spill] sm:$0xff] %v6578_v4  ;;  %v1323_v11 = vsel %vm87_vm0, %v8744_v16, %v8743_v48  ;;  %v704_v8 = vsel %vm692_vm9, %v8745_v21, %v675_v61  ;;  %v689_v6 = vpop.permute.xlu1 %688  ;;  %v8746_v56 = vld [vmem:[#allocation43_spill] sm:$0xff]  ;;  %v700_v63 = vsel %vm692_vm9, %v675_v61, %v8747_v60  ;;  %v8748_v22 = vld [vmem:[#allocation25_spill] sm:$0xff]  ;;  %v8751_v50 = vld [vmem:[#allocation50_spill] sm:$0xff] }
 0x322   :  { %v740_v51 = vmul.f32 %v8746_v56, %v703_v59  ;;  %v744_v49 = vmul.f32 %v8746_v56, %v704_v8  ;;  %1718 = vrot.lane.b32.xlu0 %v8748_v22, %s5103_s2  ;;  %8749 = vst [vmem:[#allocation56_spill] sm:$0xff] %v6610_v0  ;;  %v8750_v44 = vld [vmem:[#allocation73_spill] sm:$0xff]  ;;  %v707_v59 = vsel %vm692_vm9, %v689_v6, %v8738_v40  ;;  %v8753_v18 = vld [vmem:[#allocation108_spill] sm:$0xff]  ;;  %v8754_v40 = vld [vmem:[#allocation46_spill] sm:$0xff] }
 0x323   :  { %v695_v12 = vsel %vm692_vm9, %v8750_v44, %v689_v6  ;;  %1724 = vrot.lane.b32.xlu1 %v8751_v50, %s5103_s2  ;;  %v6623_v8 = vmul.f32 %v8742_v38, %v1213_v58  ;;  %v8752_v56 = vld [vmem:[#allocation29_spill] sm:$0xff]  ;;  %v6630_v52 = vmul.f32 %v8753_v18, %v1323_v11  ;;  %v699_v6 = vsel %vm692_vm9, %v673_v5, %v8750_v44  ;;  %v8755_v38 = vld [vmem:[#allocation44_spill] sm:$0xff]  ;;  %v8757_v44 = vld [vmem:[#allocation51_spill] sm:$0xff] }
 0x324   :  { %v1319_v10 = vsel %vm87_vm0, %v8743_v48, %v8752_v56  ;;  %v691_v46 = vpop.permute.xlu0 %690  ;;  %v4531_v22 = vpack.c.bf16 %v744_v49, %v740_v51  ;;  %v745_v50 = vmul.f32 %v8754_v40, %v700_v63  ;;  %v739_v11 = vmul.f32 %v8755_v38, %v707_v59  ;;  %v8756_v25 = vld [vmem:[#allocation45_spill] sm:$0xff]  ;;  %v8762_v59 = vld [vmem:[#allocation75_spill] sm:$0xff] }
 0x325   :  { %v696_v58 = vsel %vm692_vm9, %v8747_v60, %v691_v46  ;;  %v708_v61 = vsel %vm692_vm9, %v691_v46, %v8745_v21  ;;  %v776_v48 = vpop.permute.xlu1 %775  ;;  %v742_v62 = vmul.f32 %v8756_v25, %v695_v12  ;;  %v8758_v60 = vld [vmem:[#allocation109_spill] sm:$0xff]  ;;  %v8760_v21 = vld [vmem:[#allocation58_spill] sm:$0xff]  ;;  %v8764_v0 = vld [vmem:[#allocation59_spill] sm:$0xff]  ;;  %vm3628_vm9 = vcmask 261120  }
 0x326   :  { %v743_v51 = vmul.f32 %v8755_v38, %v708_v61  ;;  %v746_v49 = vmul.f32 %v8756_v25, %v696_v58  ;;  %1726 = vrot.lane.b32.xlu0 %v8757_v44, %s5103_s2  ;;  %v6651_v63 = vmul.f32 %v8758_v60, %v1319_v10  ;;  %v1320_v46 = vsel %vm87_vm0, %v8760_v21, %v8759_v41  ;;  %v8761_v12 = vld [vmem:[#allocation14_spill] sm:$0xff]  ;;  %v8763_v10 = vld [vmem:[#allocation28_spill] sm:$0xff] }
 0x327   :  { %1800 = vrot.lane.b32.xlu1 %v8761_v12, %s5090_s15  ;;  %4532 = vmatprep.subr.bf16.mxu0 %v4531_v22  ;;  %v741_v38 = vmul.f32 %v8754_v40, %v699_v6  ;;  %v806_v61 = vsel %vm795_vm10, %v8762_v59, %v776_v48  ;;  %v1324_v4 = vsel %vm87_vm0, %v8763_v10, %v8760_v21  ;;  %v8765_v22 = vld [vmem:[#allocation76_spill] sm:$0xff] }
 0x328   :  { %v4533_v25 = vpack.c.bf16 %v743_v51, %v739_v11  ;;  %v778_v58 = vpop.permute.xlu0 %777  ;;  %v4731_v5 = vpack.c.bf16 %v746_v49, %v742_v62  ;;  %v1315_v12 = vsel %vm87_vm0, %v8752_v56, %v8764_v0  ;;  %v6677_v62 = vmul.f32 %v8758_v60, %v1320_v46  ;;  %v8766_v49 = vld [vmem:[#allocation78_spill] sm:$0xff] }
 0x329   :  { %v807_v6 = vsel %vm795_vm10, %v8765_v22, %v778_v58  ;;  %v792_v40 = vpop.permute.xlu1 %791  ;;  %v4733_v51 = vpack.c.bf16 %v745_v50, %v741_v38  ;;  %v803_v21 = vsel %vm795_vm10, %v778_v58, %v8766_v49  ;;  %v844_v56 = vmul.f32 %v6097_v29, %v806_v61 }
 0x32a   :  { %v848_v44 = vmul.f32 %v6097_v29, %v807_v6  ;;  %1802 = vrot.lane.b32.xlu0 %v5460_v28, %s5090_s15  ;;  %v798_v35 = vsel %vm795_vm10, %v8767_v2, %v792_v40  ;;  %v810_v46 = vsel %vm795_vm10, %v792_v40, %v8762_v59  ;;  %4534 = vmatpush1.bf16.msra.mxu0 %v4533_v25  ;;  %v8770_v40 = vld [vmem:[#allocation110_spill] sm:$0xff] }
 0x32b   :  { %1808 = vrot.lane.b32.xlu1 %v5558_v39, %s5090_s15  ;;  %v6695_v50 = vmul.f32 %v8753_v18, %v1324_v4  ;;  %v1327_v29 = vsel %vm87_vm0, %v8764_v0, %v8744_v16  ;;  %v802_v38 = vsel %vm795_vm10, %v776_v48, %v8767_v2  ;;  %4732 = vmatprep.subr.bf16.mxu1 %v4731_v5 }
 0x32c   :  { %v8768_v59 = vpack.c.bf16 %v6246_v36, %v6280_v20  ;;  %v794_v61 = vpop.permute.xlu0 %793  ;;  %v849_v25 = vmul.f32 %v6100_v31, %v803_v21  ;;  %4734 = vmatpush1.bf16.msra.mxu1 %v4733_v51  ;;  %v4539_v58 = vpack.c.bf16 %v848_v44, %v844_v56  ;;  %v843_v2 = vmul.f32 %v6103_v13, %v810_v46  ;;  %v8774_v21 = vld [vmem:[#allocation60_spill] sm:$0xff]  ;;  %v8776_v46 = vld [vmem:[#allocation82_spill] sm:$0xff] }
 0x32d   :  { %v799_v4 = vsel %vm795_vm10, %v8766_v49, %v794_v61  ;;  %v811_v0 = vsel %vm795_vm10, %v794_v61, %v8765_v22  ;;  %v880_v16 = vpop.permute.xlu1 %879  ;;  %v846_v48 = vmul.f32 %v6106_v9, %v798_v35  ;;  %v8769_v5 = vpack.c.bf16 %v6325_v27, %v6314_v17  ;;  %v8771_v22 = vld [vmem:[#allocation111_spill] sm:$0xff]  ;;  %v8779_v61 = vld [vmem:[#allocation61_spill] sm:$0xff] }
 0x32e   :  { %4536 = vmatprep.subr.bf16.mxu0 %v8768_v59  ;;  %v847_v20 = vmul.f32 %v6103_v13, %v811_v0  ;;  %v850_v36 = vmul.f32 %v6106_v9, %v799_v4  ;;  %v6724_v51 = vmul.f32 %v8770_v40, %v1327_v29  ;;  %v6727_v44 = vmul.f32 %v8771_v22, %v1315_v12  ;;  %v8772_v35 = vld [vmem:[#allocation79_spill] sm:$0xff] }
 0x32f   :  { %4736 = vmatprep.subr.bf16.mxu1 %v8769_v5  ;;  %1810 = vrot.lane.b32.xlu0 %v5569_v43, %s5090_s15  ;;  %v845_v9 = vmul.f32 %v6100_v31, %v802_v38  ;;  %v910_v17 = vsel %vm899_vm11, %v8772_v35, %v880_v16  ;;  %v8773_v27 = vpack.c.bf16 %v6299_v7, %v6296_v15  ;;  %v8777_v38 = vld [vmem:[#allocation80_spill] sm:$0xff]  ;;  %vm4270_vm10 = vcmask 1046528  }
 0x330   :  { %1816 = vrot.lane.b32.xlu1 %v5452_v23, %s5090_s15  ;;  %v4541_v13 = vpack.c.bf16 %v847_v20, %v843_v2  ;;  %v882_v49 = vpop.permute.xlu0 %881  ;;  %v4739_v12 = vpack.c.bf16 %v850_v36, %v846_v48  ;;  %v1328_v56 = vsel %vm87_vm0, %v8774_v21, %v8763_v10  ;;  %v8775_v31 = vpack.c.bf16 %v6249_v47, %v6283_v54  ;;  %v8778_v10 = vld [vmem:[#allocation33_spill] sm:$0xff] }
 0x331   :  { %4538 = vmatpush1.bf16.msra.mxu0 %v8773_v27  ;;  %v907_v29 = vsel %vm899_vm11, %v882_v49, %v8776_v46  ;;  %v911_v15 = vsel %vm899_vm11, %v8777_v38, %v882_v49  ;;  %v896_v7 = vpop.permute.xlu1 %895  ;;  %v1316_v59 = vsel %vm87_vm0, %v8759_v41, %v8774_v21  ;;  %v1422_v47 = vsel %vm126_vm1, %v8779_v61, %v8778_v10 }
 0x332   :  { %4540 = vmatprep.subr.bf16.mxu0 %v4539_v58  ;;  %4738 = vmatpush1.bf16.msra.mxu1 %v8775_v31  ;;  %v4741_v54 = vpack.c.bf16 %v849_v25, %v845_v9  ;;  %v952_v4 = vmul.f32 %v6115_v30, %v911_v15  ;;  %v948_v0 = vmul.f32 %v6115_v30, %v910_v17  ;;  %v8780_v58 = vld [vmem:[#allocation81_spill] sm:$0xff]  ;;  %v8781_v25 = vld [vmem:[#allocation31_spill] sm:$0xff] }
 0x333   :  { %4740 = vmatprep.subr.bf16.mxu1 %v4739_v12  ;;  %v902_v2 = vsel %vm899_vm11, %v8780_v58, %v896_v7  ;;  %v914_v48 = vsel %vm899_vm11, %v896_v7, %v8772_v35  ;;  %1818 = vrot.lane.b32.xlu0 %v5474_v33, %s5090_s15  ;;  %v6774_v41 = vmul.f32 %v8770_v40, %v1328_v56  ;;  %v8784_v56 = vld [vmem:[#allocation112_spill] sm:$0xff]  ;;  %v8787_v7 = vld [vmem:[#allocation113_spill] sm:$0xff] }
 0x334   :  { %1824 = vrot.lane.b32.xlu1 %v5567_v42, %s5090_s15  ;;  %v1426_v30 = vsel %vm126_vm1, %v8781_v25, %v8779_v61  ;;  %v906_v20 = vsel %vm899_vm11, %v880_v16, %v8780_v58  ;;  %v953_v36 = vmul.f32 %v6118_v37, %v907_v29  ;;  %v898_v5 = vpop.permute.xlu0 %897  ;;  %v8782_v9 = vpack.c.bf16 %v6360_v32, %v6341_v53  ;;  %v8789_v61 = vld [vmem:[#allocation127_spill] sm:$0xff]  ;;  %v8793_v58 = vld [vmem:[#allocation84_spill] sm:$0xff] }
 0x335   :  { %4542 = vmatpush1.bf16.msra.mxu0 %v4541_v13  ;;  %v903_v35 = vsel %vm899_vm11, %v8776_v46, %v898_v5  ;;  %v915_v17 = vsel %vm899_vm11, %v898_v5, %v8777_v38  ;;  %v984_v27 = vpop.permute.xlu1 %983  ;;  %v4547_v49 = vpack.c.bf16 %v952_v4, %v948_v0  ;;  %v947_v16 = vmul.f32 %v6121_v19, %v914_v48  ;;  %v8794_v48 = vld [vmem:[#allocation34_spill] sm:$0xff] }
 0x336   :  { %4544 = vmatprep.subr.bf16.mxu0 %v8782_v9  ;;  %4742 = vmatpush1.bf16.msra.mxu1 %v4741_v54  ;;  %v950_v13 = vmul.f32 %v6129_v34, %v902_v2  ;;  %v951_v12 = vmul.f32 %v6121_v19, %v915_v17  ;;  %v954_v53 = vmul.f32 %v6129_v34, %v903_v35  ;;  %v8790_v54 = vld [vmem:[#allocation128_spill] sm:$0xff]  ;;  %v8796_v5 = vld [vmem:[#allocation94_spill] sm:$0xff]  ;;  %v8797_v17 = vld [vmem:[#allocation85_spill] sm:$0xff]  ;;  %vm5112_vm11 = vmmov 1  }
 0x337   :  { %v8783_v32 = vpack.c.bf16 %v6376_v1, %v6394_v26  ;;  %v6801_v21 = vmul.f32 %v8771_v22, %v1316_v59  ;;  %v6804_v31 = vmul.f32 %v8784_v56, %v1426_v30  ;;  %1826 = vrot.lane.b32.xlu0 %v5577_v45, %s5090_s15  ;;  %v949_v34 = vmul.f32 %v6118_v37, %v906_v20  ;;  %v8785_v1 = vld [vmem:[#allocation83_spill] sm:$0xff]  ;;  %v8792_v37 = vld [vmem:[#allocation86_spill] sm:$0xff] }
 0x338   :  { %1804 = vrot.lane.b32.xlu1 %v8701_v57, %s5090_s15  ;;  %v4549_v46 = vpack.c.bf16 %v951_v12, %v947_v16  ;;  %v1014_v26 = vsel %vm1003_vm12, %v8785_v1, %v984_v27  ;;  %v8786_v29 = vpack.c.bf16 %v6373_v55, %v6391_v24  ;;  %v986_v38 = vpop.permute.xlu0 %985  ;;  %v4747_v15 = vpack.c.bf16 %v954_v53, %v950_v13  ;;  %v8798_v13 = vld [vmem:[#allocation22_spill] sm:$0xff]  ;;  %v8799_v12 = vld [vmem:[#allocation47_spill] sm:$0xff] }
 0x339   :  { %4744 = vmatprep.subr.bf16.mxu1 %v8783_v32  ;;  %v6820_v59 = vmul.f32 %v8787_v7, %v1422_v47  ;;  %v8791_v4 = vpack.c.bf16 %v8789_v61, %v8790_v54  ;;  %v1011_v0 = vsel %vm1003_vm12, %v986_v38, %v8792_v37  ;;  %v1015_v2 = vsel %vm1003_vm12, %v8793_v58, %v986_v38  ;;  %v1000_v55 = vpop.permute.xlu1 %999  ;;  %v8795_v47 = vld [vmem:[#allocation62_spill] sm:$0xff]  ;;  %v8801_v32 = vld [vmem:[#allocation63_spill] sm:$0xff] }
 0x33a   :  { %4546 = vmatpush1.bf16.msra.mxu0 %v8786_v29  ;;  %v1423_v30 = vsel %vm126_vm1, %v8795_v47, %v8794_v48  ;;  %v4749_v20 = vpack.c.bf16 %v953_v36, %v949_v34  ;;  %v1056_v9 = vmul.f32 %v8796_v5, %v1015_v2  ;;  %v1052_v35 = vmul.f32 %v8796_v5, %v1014_v26  ;;  %v8800_v36 = vld [vmem:[#allocation32_spill] sm:$0xff]  ;;  %v8802_v26 = vld [vmem:[#allocation95_spill] sm:$0xff]  ;;  %v8804_v61 = vld [vmem:[#allocation134_spill] sm:$0xff] }
 0x33b   :  { %8788 = vst [vmem:[#allocation57_spill] sm:$0xff] %v6820_v59  ;;  %4548 = vmatprep.subr.bf16.mxu0 %v4547_v49  ;;  %4746 = vmatpush1.bf16.msra.mxu1 %v8791_v4  ;;  %v1006_v49 = vsel %vm1003_vm12, %v8797_v17, %v1000_v55  ;;  %v1018_v16 = vsel %vm1003_vm12, %v1000_v55, %v8785_v1  ;;  %v8834_v19 = vld [vmem:[#allocation102_spill] sm:$0xff] }
 0x33c   :  { %4748 = vmatprep.subr.bf16.mxu1 %v4747_v15  ;;  %1806 = vrot.lane.b32.xlu0 %v8798_v13, %s5090_s15  ;;  %v1427_v53 = vsel %vm126_vm1, %v8800_v36, %v8795_v47  ;;  %v1418_v34 = vsel %vm126_vm1, %v8778_v10, %v8801_v32  ;;  %v1010_v1 = vsel %vm1003_vm12, %v984_v27, %v8797_v17  ;;  %v1002_v38 = vpop.permute.xlu0 %1001  ;;  %v8803_v15 = vld [vmem:[#allocation131_spill] sm:$0xff]  ;;  %v8806_v27 = vld [vmem:[#allocation96_spill] sm:$0xff] }
 0x33d   :  { %1812 = vrot.lane.b32.xlu1 %v8799_v12, %s5090_s15  ;;  %v1057_v29 = vmul.f32 %v8802_v26, %v1011_v0  ;;  %v8805_v54 = vpack.c.bf16 %v8803_v15, %v8804_v61  ;;  %v1007_v4 = vsel %vm1003_vm12, %v8792_v37, %v1002_v38  ;;  %v1019_v10 = vsel %vm1003_vm12, %v1002_v38, %v8793_v58  ;;  %v1088_v2 = vpop.permute.xlu1 %1087  ;;  %v8807_v0 = vld [vmem:[#allocation97_spill] sm:$0xff]  ;;  %v8808_v15 = vld [vmem:[#allocation18_spill] sm:$0xff]  ;;  %v8814_v38 = vld [vmem:[#allocation87_spill] sm:$0xff] }
 0x33e   :  { %4550 = vmatpush1.bf16.msra.mxu0 %v4549_v46  ;;  %v4555_v55 = vpack.c.bf16 %v1056_v9, %v1052_v35  ;;  %v1051_v47 = vmul.f32 %v8806_v27, %v1018_v16  ;;  %v1054_v46 = vmul.f32 %v8807_v0, %v1006_v49  ;;  %v1055_v5 = vmul.f32 %v8806_v27, %v1019_v10  ;;  %v8812_v9 = vld [vmem:[#allocation48_spill] sm:$0xff]  ;;  %v8813_v35 = vld [vmem:[#allocation21_spill] sm:$0xff]  ;;  %vm4928_vm12 = vmpackc.low %vm4270_vm10, %vm5112_vm11 }
 0x33f   :  { %4552 = vmatprep.subr.bf16.mxu0 %v8805_v54  ;;  %4750 = vmatpush1.bf16.msra.mxu1 %v4749_v20  ;;  %v1058_v17 = vmul.f32 %v8807_v0, %v1007_v4  ;;  %v8809_v20 = vld [vmem:[#allocation17_spill] sm:$0xff]  ;;  %v6878_v37 = vmul.f32 %v8784_v56, %v1427_v53  ;;  %v6881_v54 = vmul.f32 %v8787_v7, %v1423_v30  ;;  %v8815_v30 = vld [vmem:[#allocation138_spill] sm:$0xff] }
 0x340   :  { %v8810_v61 = vpack.c.bf16 %v8808_v15, %v8809_v20  ;;  %v1430_v58 = vsel %vm126_vm1, %v8801_v32, %v8781_v25  ;;  %1814 = vrot.lane.b32.xlu0 %v8812_v9, %s5090_s15  ;;  %v1053_v49 = vmul.f32 %v8802_v26, %v1010_v1  ;;  %v4557_v16 = vpack.c.bf16 %v1055_v5, %v1051_v47  ;;  %v8816_v4 = vld [vmem:[#allocation137_spill] sm:$0xff]  ;;  %v1090_v27 = vpop.permute.xlu0 %1089  ;;  %v8818_v25 = vld [vmem:[#allocation132_spill] sm:$0xff]  ;;  %v8819_v32 = vld [vmem:[#allocation135_spill] sm:$0xff] }
 0x341   :  { %8811 = vst [vmem:[#allocation27_spill] sm:$0xff] %v6881_v54  ;;  %1820 = vrot.lane.b32.xlu1 %v8813_v35, %s5090_s15  ;;  %v1118_v53 = vsel %vm1107_vm13, %v8814_v38, %v1088_v2  ;;  %v8817_v10 = vpack.c.bf16 %v8815_v30, %v8816_v4  ;;  %v4755_v0 = vpack.c.bf16 %v1058_v17, %v1054_v46  ;;  %v8821_v20 = vld [vmem:[#allocation90_spill] sm:$0xff]  ;;  %v8822_v26 = vld [vmem:[#allocation88_spill] sm:$0xff]  ;;  %v1104_v5 = vpop.permute.xlu1 %1103 }
 0x342   :  { %4752 = vmatprep.subr.bf16.mxu1 %v8810_v61  ;;  %v8820_v15 = vpack.c.bf16 %v8818_v25, %v8819_v32  ;;  %v1115_v1 = vsel %vm1107_vm13, %v1090_v27, %v8821_v20  ;;  %v1119_v47 = vsel %vm1107_vm13, %v8822_v26, %v1090_v27  ;;  %v8823_v30 = vld [vmem:[#allocation114_spill] sm:$0xff]  ;;  %v4757_v17 = vpack.c.bf16 %v1057_v29, %v1053_v49 }
 0x343   :  { %4554 = vmatpush1.bf16.msra.mxu0 %v8817_v10  ;;  %v6910_v4 = vmul.f32 %v8823_v30, %v1430_v58  ;;  %v8825_v10 = vld [vmem:[#allocation98_spill] sm:$0xff]  ;;  %v1122_v6 = vsel %vm1107_vm13, %v1104_v5, %v8814_v38  ;;  %v8827_v58 = vld [vmem:[#allocation25_spill] sm:$0xff] }
 0x344   :  { %4556 = vmatprep.subr.bf16.mxu0 %v4555_v55  ;;  %4754 = vmatpush1.bf16.msra.mxu1 %v8820_v15  ;;  %v8824_v55 = vld [vmem:[#allocation115_spill] sm:$0xff]  ;;  %v1160_v25 = vmul.f32 %v8825_v10, %v1119_v47  ;;  %v1156_v32 = vmul.f32 %v8825_v10, %v1118_v53  ;;  %v8826_v15 = vld [vmem:[#allocation89_spill] sm:$0xff]  ;;  %v1106_v47 = vpop.permute.xlu0 %1105 }
 0x345   :  { %v6913_v46 = vmul.f32 %v8824_v55, %v1418_v34  ;;  %4756 = vmatprep.subr.bf16.mxu1 %v4755_v0  ;;  %v1110_v27 = vsel %vm1107_vm13, %v8826_v15, %v1104_v5  ;;  %1822 = vrot.lane.b32.xlu0 %v8827_v58, %s5090_s15  ;;  %v8828_v34 = vld [vmem:[#allocation50_spill] sm:$0xff]  ;;  %v1114_v49 = vsel %vm1107_vm13, %v1088_v2, %v8826_v15  ;;  %v8829_v53 = vld [vmem:[#allocation99_spill] sm:$0xff]  ;;  %v8830_v5 = vld [vmem:[#allocation140_spill] sm:$0xff]  ;;  %v1192_v15 = vpop.permute.xlu1 %1191 }
 0x346   :  { %1828 = vrot.lane.b32.xlu1 %v8828_v34, %s5090_s15  ;;  %v1161_v0 = vmul.f32 %v8829_v53, %v1115_v1  ;;  %v8831_v10 = vld [vmem:[#allocation139_spill] sm:$0xff]  ;;  %v1111_v29 = vsel %vm1107_vm13, %v8821_v20, %v1106_v47  ;;  %v1123_v2 = vsel %vm1107_vm13, %v1106_v47, %v8822_v26  ;;  %v4563_v1 = vpack.c.bf16 %v1160_v25, %v1156_v32  ;;  %v8838_v34 = vld [vmem:[#allocation64_spill] sm:$0xff]  ;;  %v8839_v26 = vld [vmem:[#allocation37_spill] sm:$0xff] }
 0x347   :  { %4558 = vmatpush1.bf16.msra.mxu0 %v4557_v16  ;;  %v8832_v24 = vpack.c.bf16 %v8830_v5, %v8831_v10  ;;  %v8833_v16 = vld [vmem:[#allocation100_spill] sm:$0xff]  ;;  %v1158_v11 = vmul.f32 %v8834_v19, %v1110_v27  ;;  %v1162_v5 = vmul.f32 %v8834_v19, %v1111_v29  ;;  %v1419_v20 = vsel %vm126_vm1, %v8794_v48, %v8838_v34  ;;  %v8840_v25 = vld [vmem:[#allocation65_spill] sm:$0xff]  ;;  %v8841_v19 = vld [vmem:[#allocation51_spill] sm:$0xff] }
 0x348   :  { %4758 = vmatpush1.bf16.msra.mxu1 %v4757_v17  ;;  %v1155_v61 = vmul.f32 %v8833_v16, %v1122_v6  ;;  %v1159_v38 = vmul.f32 %v8833_v16, %v1123_v2  ;;  %v8836_v17 = vld [vmem:[#allocation20_spill] sm:$0xff]  ;;  %v1431_v6 = vsel %vm126_vm1, %v8838_v34, %v8800_v36  ;;  %v1525_v32 = vsel %vm166_vm2, %v8840_v25, %v8839_v26  ;;  %v8842_v27 = vld [vmem:[#allocation14_spill] sm:$0xff]  ;;  %v8843_v48 = vld [vmem:[#allocation91_spill] sm:$0xff] }
 0x349   :  { %4560 = vmatprep.subr.bf16.mxu0 %v8832_v24  ;;  %v8835_v24 = vld [vmem:[#allocation53_spill] sm:$0xff]  ;;  %1830 = vrot.lane.b32.xlu0 %v8841_v19, %s5090_s15  ;;  %v1157_v29 = vmul.f32 %v8829_v53, %v1114_v49  ;;  %v1222_v2 = vsel %vm1211_vm14, %v8843_v48, %v1192_v15  ;;  %v8844_v16 = vld [vmem:[#allocation24_spill] sm:$0xff]  ;;  %v8845_v36 = vld [vmem:[#allocation54_spill] sm:$0xff]  ;;  %vm4266_vm13 = vcmask 121856  }
 0x34a   :  { %v8837_v10 = vpack.c.bf16 %v8835_v24, %v8836_v17  ;;  %1958 = vrot.lane.b32.xlu1 %v8842_v27, %s5091_s16  ;;  %v4565_v47 = vpack.c.bf16 %v1159_v38, %v1155_v61  ;;  %v8846_v34 = vpack.c.bf16 %v8844_v16, %v8845_v36  ;;  %v1194_v24 = vpop.permute.xlu0 %1193  ;;  %v4763_v17 = vpack.c.bf16 %v1162_v5, %v1158_v11  ;;  %v8848_v27 = vld [vmem:[#allocation141_spill] sm:$0xff]  ;;  %v8852_v38 = vld [vmem:[#allocation92_spill] sm:$0xff]  ;;  %v1208_v36 = vpop.permute.xlu1 %1207 }
 0x34b   :  { %v8849_v58 = vld [vmem:[#allocation49_spill] sm:$0xff]  ;;  %v1223_v16 = vsel %vm1211_vm14, %v8852_v38, %v1194_v24  ;;  %v6988_v11 = vmul.f32 %v8823_v30, %v1431_v6  ;;  %v6991_v5 = vmul.f32 %v8824_v55, %v1419_v20  ;;  %v8856_v6 = vld [vmem:[#allocation119_spill] sm:$0xff] }
 0x34c   :  { %4760 = vmatprep.subr.bf16.mxu1 %v8837_v10  ;;  %4562 = vmatpush1.bf16.msra.mxu0 %v8846_v34  ;;  %v8847_v10 = vld [vmem:[#allocation35_spill] sm:$0xff]  ;;  %v8850_v49 = vpack.c.bf16 %v8848_v27, %v8849_v58  ;;  %v8851_v61 = vld [vmem:[#allocation101_spill] sm:$0xff] }
 0x34d   :  { %v1529_v19 = vsel %vm166_vm2, %v8847_v10, %v8840_v25  ;;  %4564 = vmatprep.subr.bf16.mxu0 %v4563_v1  ;;  %v1219_v53 = vsel %vm1211_vm14, %v1194_v24, %v8851_v61  ;;  %v4765_v1 = vpack.c.bf16 %v1161_v0, %v1157_v29  ;;  %v8853_v25 = vld [vmem:[#allocation103_spill] sm:$0xff]  ;;  %v8854_v27 = vld [vmem:[#allocation93_spill] sm:$0xff]  ;;  %v1226_v24 = vsel %vm1211_vm14, %v1208_v36, %v8843_v48  ;;  %v8855_v0 = vld [vmem:[#allocation116_spill] sm:$0xff] }
 0x34e   :  { %4762 = vmatpush1.bf16.msra.mxu1 %v8850_v49  ;;  %v1264_v34 = vmul.f32 %v8853_v25, %v1223_v16  ;;  %v1260_v58 = vmul.f32 %v8853_v25, %v1222_v2  ;;  %v1214_v49 = vsel %vm1211_vm14, %v8854_v27, %v1208_v36  ;;  %1960 = vrot.lane.b32.xlu0 %v5460_v28, %s5091_s16  ;;  %v1210_v48 = vpop.permute.xlu0 %1209  ;;  %v8858_v36 = vld [vmem:[#allocation143_spill] sm:$0xff] }
 0x34f   :  { %4764 = vmatprep.subr.bf16.mxu1 %v4763_v17  ;;  %1966 = vrot.lane.b32.xlu1 %v5558_v39, %s5091_s16  ;;  %v7006_v20 = vmul.f32 %v8855_v0, %v1529_v19  ;;  %v7009_v29 = vmul.f32 %v8856_v6, %v1525_v32  ;;  %v1218_v2 = vsel %vm1211_vm14, %v1192_v15, %v8854_v27  ;;  %v8857_v17 = vld [vmem:[#allocation104_spill] sm:$0xff]  ;;  %v8859_v25 = vld [vmem:[#allocation55_spill] sm:$0xff]  ;;  %v1296_v39 = vpop.permute.xlu1 %1295  ;;  %v8861_v15 = vld [vmem:[#allocation105_spill] sm:$0xff] }
 0x350   :  { %v1265_v16 = vmul.f32 %v8857_v17, %v1219_v53  ;;  %4566 = vmatpush1.bf16.msra.mxu0 %v4565_v47  ;;  %v8860_v28 = vpack.c.bf16 %v8858_v36, %v8859_v25  ;;  %v1215_v19 = vsel %vm1211_vm14, %v8851_v61, %v1210_v48  ;;  %v1227_v32 = vsel %vm1211_vm14, %v1210_v48, %v8852_v38  ;;  %v8862_v53 = vld [vmem:[#allocation107_spill] sm:$0xff]  ;;  %v8865_v25 = vld [vmem:[#allocation66_spill] sm:$0xff] }
 0x351   :  { %v4571_v59 = vpack.c.bf16 %v1264_v34, %v1260_v58  ;;  %v1259_v27 = vmul.f32 %v8861_v15, %v1226_v24  ;;  %v1262_v47 = vmul.f32 %v8862_v53, %v1214_v49  ;;  %v1263_v54 = vmul.f32 %v8861_v15, %v1227_v32  ;;  %v8866_v58 = vld [vmem:[#allocation106_spill] sm:$0xff]  ;;  %v8867_v24 = vld [vmem:[#allocation56_spill] sm:$0xff]  ;;  %v8868_v48 = vld [vmem:[#allocation71_spill] sm:$0xff] }
 0x352   :  { %4568 = vmatprep.subr.bf16.mxu0 %v8860_v28  ;;  %4766 = vmatpush1.bf16.msra.mxu1 %v4765_v1  ;;  %v1266_v36 = vmul.f32 %v8862_v53, %v1215_v19  ;;  %v8863_v28 = vpack.c.bf16 %v6623_v8, %v6587_v3  ;;  %v8864_v1 = vld [vmem:[#allocation38_spill] sm:$0xff]  ;;  %v1261_v3 = vmul.f32 %v8857_v17, %v1218_v2  ;;  %v1298_v32 = vpop.permute.xlu0 %1297  ;;  %v8870_v53 = vld [vmem:[#allocation36_spill] sm:$0xff]  ;;  %v8871_v61 = vld [vmem:[#allocation23_spill] sm:$0xff] }
 0x353   :  { %v1526_v38 = vsel %vm166_vm2, %v8865_v25, %v8864_v1  ;;  %1968 = vrot.lane.b32.xlu0 %v5569_v43, %s5091_s16  ;;  %1974 = vrot.lane.b32.xlu1 %v5452_v23, %s5091_s16  ;;  %v4573_v8 = vpack.c.bf16 %v1263_v54, %v1259_v27  ;;  %v1325_v49 = vsel %vm87_vm0, %v8866_v58, %v1296_v39  ;;  %v8872_v34 = vld [vmem:[#allocation142_spill] sm:$0xff]  ;;  %v8874_v54 = vld [vmem:[#allocation125_spill] sm:$0xff] }
 0x354   :  { %4768 = vmatprep.subr.bf16.mxu1 %v8863_v28  ;;  %v8869_v19 = vpack.c.bf16 %v8867_v24, %v8868_v48  ;;  %v4771_v15 = vpack.c.bf16 %v1266_v36, %v1262_v47  ;;  %v1530_v28 = vsel %vm166_vm2, %v8870_v53, %v8865_v25  ;;  %v8873_v2 = vpack.c.bf16 %v8871_v61, %v8872_v34  ;;  %v8875_v27 = vld [vmem:[#allocation118_spill] sm:$0xff]  ;;  %v1312_v48 = vpop.permute.xlu1 %1311  ;;  %v8876_v36 = vld [vmem:[#allocation67_spill] sm:$0xff] }
 0x355   :  { %v1322_v17 = vsel %vm87_vm0, %v1298_v32, %v8874_v54  ;;  %v1326_v24 = vsel %vm87_vm0, %v8875_v27, %v1298_v32  ;;  %v7064_v47 = vmul.f32 %v8856_v6, %v1526_v38  ;;  %v4773_v25 = vpack.c.bf16 %v1265_v16, %v1261_v3 }
 0x356   :  { %4570 = vmatpush1.bf16.msra.mxu0 %v8869_v19  ;;  %4770 = vmatpush1.bf16.msra.mxu1 %v8873_v2  ;;  %v1367_v61 = vmul.f32 %v8753_v18, %v1326_v24  ;;  %v1363_v34 = vmul.f32 %v8753_v18, %v1325_v49  ;;  %v8877_v19 = vld [vmem:[#allocation121_spill] sm:$0xff]  ;;  %v1329_v38 = vsel %vm87_vm0, %v1312_v48, %v8866_v58  ;;  %v1314_v58 = vpop.permute.xlu0 %1313  ;;  %v8880_v24 = vld [vmem:[#allocation120_spill] sm:$0xff] }
 0x357   :  { %4572 = vmatprep.subr.bf16.mxu0 %v4571_v59  ;;  %v1521_v59 = vsel %vm166_vm2, %v8839_v26, %v8876_v36  ;;  %4772 = vmatprep.subr.bf16.mxu1 %v4771_v15  ;;  %v1317_v2 = vsel %vm87_vm0, %v8877_v19, %v1312_v48  ;;  %v7083_v26 = vmul.f32 %v8855_v0, %v1530_v28 }
 0x358   :  { %1976 = vrot.lane.b32.xlu0 %v5474_v33, %s5091_s16  ;;  %1982 = vrot.lane.b32.xlu1 %v5567_v42, %s5091_s16  ;;  %v1533_v18 = vsel %vm166_vm2, %v8876_v36, %v8847_v10  ;;  %v1321_v16 = vsel %vm87_vm0, %v1296_v39, %v8877_v19  ;;  %v1368_v3 = vmul.f32 %v8758_v60, %v1322_v17  ;;  %v1399_v15 = vpop.permute.xlu1 %1398 }
 0x359   :  { %v8878_v49 = vpack.c.bf16 %v6695_v50, %v6630_v52  ;;  %v1318_v32 = vsel %vm87_vm0, %v8874_v54, %v1314_v58  ;;  %v1330_v10 = vsel %vm87_vm0, %v1314_v58, %v8875_v27  ;;  %v4579_v28 = vpack.c.bf16 %v1367_v61, %v1363_v34  ;;  %v8881_v27 = vld [vmem:[#allocation122_spill] sm:$0xff]  ;;  %v8884_v34 = vld [vmem:[#allocation68_spill] sm:$0xff] }
 0x35a   :  { %4574 = vmatpush1.bf16.msra.mxu0 %v4573_v8  ;;  %4774 = vmatpush1.bf16.msra.mxu1 %v4773_v25  ;;  %v1362_v39 = vmul.f32 %v8770_v40, %v1329_v38  ;;  %v1365_v8 = vmul.f32 %v8771_v22, %v1317_v2  ;;  %v1366_v17 = vmul.f32 %v8770_v40, %v1330_v10  ;;  %v8886_v38 = vld [vmem:[#allocation129_spill] sm:$0xff]  ;;  %vm1728_vm0 = vcmp.lt.s32.totalorder %v5304_v14, 2 }
 0x35b   :  { %4576 = vmatprep.subr.bf16.mxu0 %v8878_v49  ;;  %v1369_v52 = vmul.f32 %v8771_v22, %v1318_v32  ;;  %v8879_v50 = vpack.c.bf16 %v6801_v21, %v6727_v44  ;;  %v4793_v54 = vpack.c.bf16 %v7064_v47, %v7009_v29  ;;  %v7112_v48 = vmul.f32 %v8880_v24, %v1533_v18  ;;  %v8882_v44 = vld [vmem:[#allocation126_spill] sm:$0xff]  ;;  %v8887_v18 = vld [vmem:[#allocation69_spill] sm:$0xff] }
 0x35c   :  { %v7115_v36 = vmul.f32 %v8881_v27, %v1521_v59  ;;  %1984 = vrot.lane.b32.xlu0 %v5577_v45, %s5091_s16  ;;  %1962 = vrot.lane.b32.xlu1 %v8701_v57, %s5091_s16  ;;  %v1364_v40 = vmul.f32 %v8758_v60, %v1321_v16  ;;  %v4581_v22 = vpack.c.bf16 %v1366_v17, %v1362_v39  ;;  %v1401_v59 = vpop.permute.xlu0 %1400  ;;  %v8888_v16 = vld [vmem:[#allocation39_spill] sm:$0xff] }
 0x35d   :  { %4776 = vmatprep.subr.bf16.mxu1 %v8879_v50  ;;  %v1428_v21 = vsel %vm126_vm1, %v8882_v44, %v1399_v15  ;;  %v8883_v25 = vpack.c.bf16 %v6774_v41, %v6724_v51  ;;  %v4779_v61 = vpack.c.bf16 %v1369_v52, %v1365_v8  ;;  %v1522_v19 = vsel %vm166_vm2, %v8864_v1, %v8884_v34  ;;  %v1415_v41 = vpop.permute.xlu1 %1414 }
 0x35e   :  { %v1534_v60 = vsel %vm166_vm2, %v8884_v34, %v8870_v53  ;;  %v8885_v2 = vpack.c.bf16 %v6677_v62, %v6651_v63  ;;  %v1429_v51 = vsel %vm126_vm1, %v8886_v38, %v1401_v59  ;;  %v1633_v1 = vsel %vm1624_vm15, %v8888_v16, %v8887_v18  ;;  %v8889_v62 = vld [vmem:[#allocation130_spill] sm:$0xff] }
 0x35f   :  { %4578 = vmatpush1.bf16.msra.mxu0 %v8883_v25  ;;  %v4781_v58 = vpack.c.bf16 %v1368_v3, %v1364_v40  ;;  %v1470_v49 = vmul.f32 %v8784_v56, %v1429_v51  ;;  %v4591_v53 = vpack.c.bf16 %v7083_v26, %v7006_v20  ;;  %v1466_v63 = vmul.f32 %v8784_v56, %v1428_v21  ;;  %v8890_v26 = vld [vmem:[#allocation133_spill] sm:$0xff] }
 0x360   :  { %4580 = vmatprep.subr.bf16.mxu0 %v4579_v28  ;;  %4778 = vmatpush1.bf16.msra.mxu1 %v8885_v2  ;;  %v1420_v32 = vsel %vm126_vm1, %v8889_v62, %v1415_v41  ;;  %v1432_v10 = vsel %vm126_vm1, %v1415_v41, %v8882_v44  ;;  %v7162_v3 = vmul.f32 %v8880_v24, %v1534_v60  ;;  %v1417_v39 = vpop.permute.xlu0 %1416  ;;  %v8893_v21 = vld [vmem:[#allocation41_spill] sm:$0xff]  ;;  %v8898_v41 = vld [vmem:[#allocation136_spill] sm:$0xff] }
 0x361   :  { %4780 = vmatprep.subr.bf16.mxu1 %v4779_v61  ;;  %1964 = vrot.lane.b32.xlu0 %v8798_v13, %s5091_s16  ;;  %v1567_v20 = vmul.f32 %v8881_v27, %v1522_v19  ;;  %v1424_v56 = vsel %vm126_vm1, %v1399_v15, %v8889_v62  ;;  %v1425_v28 = vsel %vm126_vm1, %v1401_v59, %v8890_v26  ;;  %v1502_v15 = vpop.permute.xlu1 %1501  ;;  %v8894_v59 = vld [vmem:[#allocation70_spill] sm:$0xff]  ;;  %v8895_v61 = vld [vmem:[#allocation40_spill] sm:$0xff] }
 0x362   :  { %1970 = vrot.lane.b32.xlu1 %v8799_v12, %s5091_s16  ;;  %v8891_v8 = vpack.c.bf16 %v6878_v37, %v6804_v31  ;;  %v1421_v17 = vsel %vm126_vm1, %v8890_v26, %v1417_v39  ;;  %v1433_v52 = vsel %vm126_vm1, %v1417_v39, %v8886_v38  ;;  %v4587_v50 = vpack.c.bf16 %v1470_v49, %v1466_v63  ;;  %v8900_v49 = vld [vmem:[#allocation57_spill] sm:$0xff]  ;;  %v8906_v39 = vld [vmem:[#allocation50_spill] sm:$0xff] }
 0x363   :  { %4582 = vmatpush1.bf16.msra.mxu0 %v4581_v22  ;;  %v1465_v40 = vmul.f32 %v8823_v30, %v1432_v10  ;;  %v1468_v22 = vmul.f32 %v8824_v55, %v1420_v32  ;;  %v1469_v44 = vmul.f32 %v8823_v30, %v1433_v52  ;;  %v1472_v31 = vmul.f32 %v8824_v55, %v1421_v17  ;;  %v8896_v55 = vld [vmem:[#allocation123_spill] sm:$0xff]  ;;  %v8908_v17 = vld [vmem:[#allocation117_spill] sm:$0xff] }
 0x364   :  { %4584 = vmatprep.subr.bf16.mxu0 %v8891_v8  ;;  %4782 = vmatpush1.bf16.msra.mxu1 %v4781_v58  ;;  %v8892_v37 = vpack.c.bf16 %v6991_v5, %v6913_v46  ;;  %v7191_v25 = vsel %vm1624_vm15, %v8887_v18, %v8893_v21  ;;  %v1634_v34 = vsel %vm1624_vm15, %v8895_v61, %v8894_v59  ;;  %v1504_v2 = vpop.permute.xlu0 %1503  ;;  %v8899_v58 = vld [vmem:[#allocation27_spill] sm:$0xff]  ;;  %vm2093_vm1 = vcmp.lt.s32.totalorder %v5304_v14, 126 }
 0x365   :  { %v1471_v19 = vmul.f32 %v8787_v7, %v1425_v28  ;;  %1972 = vrot.lane.b32.xlu0 %v8812_v9, %s5091_s16  ;;  %v4593_v30 = vpack.c.bf16 %v7162_v3, %v7112_v48  ;;  %v7205_v46 = vmul.f32 %v8896_v55, %v1633_v1  ;;  %v4589_v5 = vpack.c.bf16 %v1469_v44, %v1465_v40  ;;  %v8902_v1 = vld [vmem:[#allocation19_spill] sm:$0xff]  ;;  %v1518_v62 = vpop.permute.xlu1 %1517  ;;  %v8905_v28 = vld [vmem:[#allocation25_spill] sm:$0xff]  ;;  %v8909_v40 = vld [vmem:[#allocation26_spill] sm:$0xff] }
 0x366   :  { %4784 = vmatprep.subr.bf16.mxu1 %v8892_v37  ;;  %1978 = vrot.lane.b32.xlu1 %v8813_v35, %s5091_s16  ;;  %v8897_v60 = vpack.c.bf16 %v6988_v11, %v6910_v4  ;;  %v4787_v38 = vpack.c.bf16 %v1472_v31, %v1468_v22  ;;  %v1467_v51 = vmul.f32 %v8787_v7, %v1424_v56  ;;  %v8903_v4 = vld [vmem:[#allocation42_spill] sm:$0xff]  ;;  %v8904_v56 = vld [vmem:[#allocation52_spill] sm:$0xff]  ;;  %v8907_v8 = vld [vmem:[#allocation11_spill] sm:$0xff] }
 0x367   :  { %v1531_v18 = vsel %vm166_vm2, %v8898_v41, %v1502_v15  ;;  %v8901_v48 = vpack.c.bf16 %v8899_v58, %v8900_v49  ;;  %v1532_v63 = vsel %vm166_vm2, %v8902_v1, %v1504_v2  ;;  %v1630_v11 = vsel %vm1624_vm15, %v8894_v59, %v8903_v4  ;;  %v8910_v44 = vld [vmem:[#allocation13_spill] sm:$0xff] }
 0x368   :  { %4586 = vmatpush1.bf16.msra.mxu0 %v8897_v60  ;;  %v7225_v7 = vmul.f32 %v8896_v55, %v1634_v34  ;;  %v1573_v32 = vmul.f32 %v8855_v0, %v1532_v63  ;;  %v4791_v10 = vpack.c.bf16 %v1567_v20, %v7115_v36  ;;  %v4789_v3 = vpack.c.bf16 %v1471_v19, %v1467_v51  ;;  %v1520_v22 = vpop.permute.xlu0 %1519  ;;  %v3202_v19 = vld [vmem:[%s8382_s5] sm:$0xff] }
 0x369   :  { %4588 = vmatprep.subr.bf16.mxu0 %v4587_v50  ;;  %4786 = vmatpush1.bf16.msra.mxu1 %v8901_v48  ;;  %v1523_v26 = vsel %vm166_vm2, %v8904_v56, %v1518_v62  ;;  %v7238_v52 = vrot.slane %v8908_v17, %v8907_v8  ;;  %v1569_v50 = vmul.f32 %v8855_v0, %v1531_v18  ;;  %v1617_v34 = vpop.permute.xlu1 %1616  ;;  %v8912_v18 = vld [vmem:[#allocation14_spill] sm:$0xff] }
 0x36a   :  { %4788 = vmatprep.subr.bf16.mxu1 %v4787_v38  ;;  %1980 = vrot.lane.b32.xlu0 %v8905_v28, %s5091_s16  ;;  %v1528_v36 = vsel %vm166_vm2, %v1504_v2, %v8909_v40  ;;  %v1535_v20 = vsel %vm166_vm2, %v1518_v62, %v8898_v41  ;;  %v7249_v31 = vrot.slane %v8908_v17, %v8910_v44  ;;  %v8911_v41 = vld [vmem:[#allocation51_spill] sm:$0xff]  ;;  %v8913_v62 = vld [vmem:[#allocation124_spill] sm:$0xff] }
 0x36b   :  { %1986 = vrot.lane.b32.xlu1 %v8906_v39, %s5091_s16  ;;  %v1527_v37 = vsel %vm166_vm2, %v1502_v15, %v8904_v56  ;;  %v1524_v0 = vsel %vm166_vm2, %v8909_v40, %v1520_v22  ;;  %v1536_v59 = vsel %vm166_vm2, %v1520_v22, %v8902_v1  ;;  %v4595_v15 = vpack.c.bf16 %v1573_v32, %v1569_v50  ;;  %v8915_v32 = vld [vmem:[#allocation16_spill] sm:$0xff] }
 0x36c   :  { %4590 = vmatpush1.bf16.msra.mxu0 %v4589_v5  ;;  %v1571_v5 = vmul.f32 %v8881_v27, %v1523_v26  ;;  %v1572_v60 = vmul.f32 %v8880_v24, %v1536_v59  ;;  %v1574_v2 = vmul.f32 %v8856_v6, %v1528_v36  ;;  %v1568_v38 = vmul.f32 %v8880_v24, %v1535_v20  ;;  %v1619_v24 = vpop.permute.xlu0 %1618 }
 0x36d   :  { %4592 = vmatprep.subr.bf16.mxu0 %v4591_v53  ;;  %4790 = vmatpush1.bf16.msra.mxu1 %v4789_v3  ;;  %v1575_v53 = vmul.f32 %v8881_v27, %v1524_v0  ;;  %v1625_v51 = vsel %vm1624_vm15, %v8893_v21, %v1617_v34  ;;  %v1570_v58 = vmul.f32 %v8856_v6, %v1527_v37  ;;  %v1597_v1 = vpop.permute.xlu1 %1596  ;;  %vm2197_vm2 = vcmp.lt.s32.totalorder %v5304_v14, 114 }
 0x36e   :  { %4792 = vmatprep.subr.bf16.mxu1 %v4791_v10  ;;  %1988 = vrot.lane.b32.xlu0 %v8911_v41, %s5091_s16  ;;  %v1637_v27 = vsel %vm1624_vm15, %v1617_v34, %v8888_v16  ;;  %v4597_v48 = vpack.c.bf16 %v1572_v60, %v1568_v38  ;;  %v1626_v21 = vsel %vm1624_vm15, %v8903_v4, %v1619_v24  ;;  %v8914_v4 = vld [vmem:[#allocation15_spill] sm:$0xff] }
 0x36f   :  { %2061 = vrot.lane.b32.xlu1 %v8912_v18, %s5104_s12  ;;  %3700 = vmatmul.mubr.f32.vlgmr.msra.gmra.mrb[8].mxu0 %v3202_v19  ;;  %v4795_v49 = vpack.c.bf16 %v1575_v53, %v1571_v5  ;;  %v1638_v6 = vsel %vm1624_vm15, %v1619_v24, %v8895_v61  ;;  %v1667_v16 = vmul.f32 %v7249_v31, %v1625_v51 }
 0x370   :  { %4008 = vmatmul.mubr.f32.vlgmr.msra.gmra.mrb[8].mxu1 %v3202_v19  ;;  %4594 = vmatpush1.bf16.msra.mxu0 %v4593_v30  ;;  %v1668_v63 = vmul.f32 %v7238_v52, %v1638_v6  ;;  %v1671_v30 = vmul.f32 %v7249_v31, %v1626_v21  ;;  %v1670_v29 = vmul.f32 %v8913_v62, %v1630_v11  ;;  %v1599_v10 = vpop.permute.xlu0 %1598 }
 0x371   :  { %4794 = vmatpush1.bf16.msra.mxu1 %v4793_v54  ;;  %4596 = vmatprep.subr.bf16.mxu0 %v4595_v15  ;;  %v4797_v47 = vpack.c.bf16 %v1574_v2, %v1570_v58  ;;  %v1664_v54 = vmul.f32 %v7238_v52, %v1637_v27  ;;  %v4599_v61 = vpack.c.bf16 %v7225_v7, %v7205_v46  ;;  %v1605_v11 = vpop.permute.xlu1 %1604  ;;  %v4470_v27 = vld [vmem:[%s8381_s4 + $0x22] ss:$8 sm:$0xf] }
 0x372   :  { %4796 = vmatprep.subr.bf16.mxu1 %v4795_v49  ;;  %2063 = vrot.lane.b32.xlu0 %v8914_v4, %s5104_s12  ;;  %v4799_v3 = vpack.c.bf16 %v1671_v30, %v1667_v16  ;;  %v1666_v56 = vmul.f32 %v8913_v62, %v7191_v25  ;;  %v1635_v50 = vsel %vm1624_vm15, %v1597_v1, %v1605_v11 }
 0x373   :  { %2069 = vrot.lane.b32.xlu1 %v8915_v32, %s5104_s12  ;;  %v4601_v26 = vpack.c.bf16 %v1668_v63, %v1664_v54  ;;  %v1673_v40 = vmul.f32 %v8896_v55, %v1635_v50 }
 0x374   :  { %4598 = vmatpush1.bf16.msra.mxu0 %v4597_v48  ;;  %v4801_v17 = vpack.c.bf16 %v1670_v29, %v1666_v56  ;;  %v1607_v46 = vpop.permute.xlu0 %1606  ;;  %v1751_v56 = vrot.slane %v4470_v27, %v8907_v8 }
 0x375   :  { %4798 = vmatpush1.bf16.msra.mxu1 %v4797_v47  ;;  %4600 = vmatprep.subr.bf16.mxu0 %v4599_v61  ;;  %v1636_v25 = vsel %vm1624_vm15, %v1599_v10, %v1607_v46  ;;  %v1613_v7 = vpop.permute.xlu1 %1612 }
 0x376   :  { %4800 = vmatprep.subr.bf16.mxu1 %v4799_v3  ;;  %2071 = vrot.lane.b32.xlu0 %v5569_v43, %s5104_s12  ;;  %v1677_v36 = vmul.f32 %v8896_v55, %v1636_v25  ;;  %v1631_v19 = vsel %vm1624_vm15, %v1605_v11, %v1613_v7  ;;  %v8917_v11 = vld [vmem:[#allocation12_spill] sm:$0xff] }
 0x377   :  { %2077 = vrot.lane.b32.xlu1 %v5452_v23, %s5104_s12  ;;  %v1674_v24 = vmul.f32 %v8913_v62, %v1631_v19 }
 0x378   :  { %4602 = vmatpush1.bf16.msra.mxu0 %v4601_v26  ;;  %v1615_v20 = vpop.permute.xlu0 %1614  ;;  %v4603_v22 = vpack.c.bf16 %v1677_v36, %v1673_v40  ;;  %v1763_v26 = vrot.slane %v4470_v27, %v8910_v44 }
 0x379   :  { %4802 = vmatpush1.bf16.msra.mxu1 %v4801_v17  ;;  %v1621_v37 = vpop.permute.xlu1 %1620  ;;  %v1632_v0 = vsel %vm1624_vm15, %v1607_v46, %v1615_v20  ;;  %v1759_v17 = vrot.slane %v4470_v27, %v8917_v11 }
 0x37a   :  { %2079 = vrot.lane.b32.xlu0 %v5474_v33, %s5104_s12  ;;  %4604 = vmatprep.subr.bf16.mxu0 %v4603_v22  ;;  %v1627_v59 = vsel %vm1624_vm15, %v1613_v7, %v1621_v37  ;;  %v1639_v34 = vsel %vm1624_vm15, %v1621_v37, %v1597_v1  ;;  %v1678_v5 = vmul.f32 %v8913_v62, %v1632_v0 }
 0x37b   :  { %2085 = vrot.lane.b32.xlu1 %v5567_v42, %s5104_s12  ;;  %v1672_v2 = vmul.f32 %v7238_v52, %v1639_v34  ;;  %v1675_v38 = vmul.f32 %v7249_v31, %v1627_v59 }
 0x37c   :  { %v1623_v55 = vpop.permute.xlu0 %1622  ;;  %v4805_v6 = vpack.c.bf16 %v1678_v5, %v1674_v24 }
 0x37d   :  { %v1628_v60 = vsel %vm1624_vm15, %v1615_v20, %v1623_v55  ;;  %v1640_v53 = vsel %vm1624_vm15, %v1623_v55, %v1599_v10  ;;  %v1697_v15 = vpop.permute.xlu1 %1696 }
 0x37e   :  { %2087 = vrot.lane.b32.xlu0 %v5577_v45, %s5104_s12  ;;  %v1676_v51 = vmul.f32 %v7238_v52, %v1640_v53  ;;  %v1679_v58 = vmul.f32 %v7249_v31, %v1628_v60  ;;  %v8916_v31 = vld [vmem:[#allocation10_spill] sm:$0xff] }
 0x37f   :  { %2065 = vrot.lane.b32.xlu1 %v8701_v57, %s5104_s12  ;;  %v1755_v1 = vrot.slane %v4470_v27, %v8916_v31 }
 0x380   :  { %v4605_v49 = vpack.c.bf16 %v1676_v51, %v1672_v2  ;;  %v1699_v48 = vpop.permute.xlu0 %1698  ;;  %v4803_v21 = vpack.c.bf16 %v1679_v58, %v1675_v38 }
 0x381   :  { %v1705_v52 = vpop.permute.xlu1 %1704 }
 0x382   :  { %2067 = vrot.lane.b32.xlu0 %v8798_v13, %s5104_s12  ;;  %4606 = vmatpush1.bf16.msra.mxu0 %v4605_v49  ;;  %v1737_v16 = vsel %vm1728_vm0, %v1697_v15, %v1705_v52 }
 0x383   :  { %2073 = vrot.lane.b32.xlu1 %v8799_v12, %s5104_s12  ;;  %4804 = vmatprep.subr.bf16.mxu1 %v4803_v21  ;;  %v1769_v29 = vmul.f32 %v1755_v1, %v1737_v16 }
 0x384   :  { %4806 = vmatpush1.bf16.msra.mxu1 %v4805_v6  ;;  %v1707_v63 = vpop.permute.xlu0 %1706 }
 0x385   :  { %v1738_v30 = vsel %vm1728_vm0, %v1699_v48, %v1707_v63  ;;  %v1713_v62 = vpop.permute.xlu1 %1712 }
 0x386   :  { %2075 = vrot.lane.b32.xlu0 %v8812_v9, %s5104_s12  ;;  %v1773_v47 = vmul.f32 %v1755_v1, %v1738_v30  ;;  %v1733_v7 = vsel %vm1728_vm0, %v1705_v52, %v1713_v62 }
 0x387   :  { %2081 = vrot.lane.b32.xlu1 %v8813_v35, %s5104_s12  ;;  %v1770_v55 = vmul.f32 %v1759_v17, %v1733_v7  ;;  %v4471_v7 = vld [vmem:[%s8381_s4 + $0x23] ss:$8 sm:$0xf] }
 0x388   :  { %v1715_v54 = vpop.permute.xlu0 %1714  ;;  %v4607_v61 = vpack.c.bf16 %v1773_v47, %v1769_v29 }
 0x389   :  { %v1721_v10 = vpop.permute.xlu1 %1720  ;;  %v1734_v3 = vsel %vm1728_vm0, %v1707_v63, %v1715_v54 }
 0x38a   :  { %2083 = vrot.lane.b32.xlu0 %v8905_v28, %s5104_s12  ;;  %4608 = vmatprep.subr.bf16.mxu0 %v4607_v61  ;;  %v1729_v50 = vsel %vm1728_vm0, %v1713_v62, %v1721_v10  ;;  %v1741_v46 = vsel %vm1728_vm0, %v1721_v10, %v1697_v15  ;;  %v1774_v40 = vmul.f32 %v1759_v17, %v1734_v3 }
 0x38b   :  { %2089 = vrot.lane.b32.xlu1 %v8906_v39, %s5104_s12  ;;  %v1768_v37 = vmul.f32 %v1751_v56, %v1741_v46  ;;  %v1771_v0 = vmul.f32 %v1763_v26, %v1729_v50 }
 0x38c   :  { %v1723_v25 = vpop.permute.xlu0 %1722  ;;  %v4809_v15 = vpack.c.bf16 %v1774_v40, %v1770_v55 }
 0x38d   :  { %v1730_v36 = vsel %vm1728_vm0, %v1715_v54, %v1723_v25  ;;  %v1742_v20 = vsel %vm1728_vm0, %v1723_v25, %v1699_v48  ;;  %v1701_v22 = vpop.permute.xlu1 %1700 }
 0x38e   :  { %2091 = vrot.lane.b32.xlu0 %v8911_v41, %s5104_s12  ;;  %v1772_v59 = vmul.f32 %v1751_v56, %v1742_v20  ;;  %v1775_v34 = vmul.f32 %v1763_v26, %v1730_v36  ;;  %s5107_s12 = smov 98  }
 0x38f   :  { %2165 = vrot.lane.b32.xlu1 %v8912_v18, %s5105_s14 }
 0x390   :  { %v4609_v19 = vpack.c.bf16 %v1772_v59, %v1768_v37  ;;  %v1703_v5 = vpop.permute.xlu0 %1702  ;;  %v4807_v60 = vpack.c.bf16 %v1775_v34, %v1771_v0 }
 0x391   :  { %v1709_v53 = vpop.permute.xlu1 %1708 }
 0x392   :  { %2167 = vrot.lane.b32.xlu0 %v8914_v4, %s5105_s14  ;;  %4610 = vmatpush1.bf16.msra.mxu0 %v4609_v19  ;;  %v1739_v2 = vsel %vm1728_vm0, %v1701_v22, %v1709_v53 }
 0x393   :  { %2173 = vrot.lane.b32.xlu1 %v8915_v32, %s5105_s14  ;;  %4808 = vmatprep.subr.bf16.mxu1 %v4807_v60  ;;  %v1777_v27 = vmul.f32 %v1755_v1, %v1739_v2  ;;  %v3210_v2 = vld [vmem:[%s8382_s5 + $0x40] sm:$0x7f] }
 0x394   :  { %4810 = vmatpush1.bf16.msra.mxu1 %v4809_v15  ;;  %v1711_v38 = vpop.permute.xlu0 %1710  ;;  %3705 = vmatprep.mubr.f32.mxu0 %v3210_v2 }
 0x395   :  { %v1740_v51 = vsel %vm1728_vm0, %v1703_v5, %v1711_v38  ;;  %v1717_v58 = vpop.permute.xlu1 %1716  ;;  %4013 = vmatprep.mubr.f32.mxu1 %v3210_v2 }
 0x396   :  { %2175 = vrot.lane.b32.xlu0 %v5569_v43, %s5105_s14  ;;  %v1781_v24 = vmul.f32 %v1755_v1, %v1740_v51  ;;  %v1735_v63 = vsel %vm1728_vm0, %v1709_v53, %v1717_v58  ;;  %v7435_v53 = vrot.slane %v4471_v7, %v8910_v44  ;;  %v7450_v51 = vrot.slane %v4471_v7, %v8917_v11 }
 0x397   :  { %2181 = vrot.lane.b32.xlu1 %v5452_v23, %s5105_s14  ;;  %v1778_v50 = vmul.f32 %v1759_v17, %v1735_v63 }
 0x398   :  { %v1719_v49 = vpop.permute.xlu0 %1718  ;;  %v4611_v48 = vpack.c.bf16 %v1781_v24, %v1777_v27 }
 0x399   :  { %v1725_v21 = vpop.permute.xlu1 %1724  ;;  %v1736_v52 = vsel %vm1728_vm0, %v1711_v38, %v1719_v49  ;;  %v3209_v38 = vld [vmem:[%s8382_s5 + $0x38] sm:$0x7f] }
 0x39a   :  { %2183 = vrot.lane.b32.xlu0 %v5474_v33, %s5105_s14  ;;  %4612 = vmatprep.subr.bf16.mxu0 %v4611_v48  ;;  %v1731_v6 = vsel %vm1728_vm0, %v1717_v58, %v1725_v21  ;;  %v1743_v16 = vsel %vm1728_vm0, %v1725_v21, %v1701_v22  ;;  %v1782_v30 = vmul.f32 %v1759_v17, %v1736_v52 }
 0x39b   :  { %2189 = vrot.lane.b32.xlu1 %v5567_v42, %s5105_s14  ;;  %v1776_v54 = vmul.f32 %v1751_v56, %v1743_v16  ;;  %v1779_v61 = vmul.f32 %v1763_v26, %v1731_v6  ;;  %3706 = vmatmul.mubr.f32.gmra.mrb[10].mxu0 %v3209_v38 }
 0x39c   :  { %v1727_v1 = vpop.permute.xlu0 %1726  ;;  %v4813_v20 = vpack.c.bf16 %v1782_v30, %v1778_v50  ;;  %4014 = vmatmul.mubr.f32.gmra.mrb[10].mxu1 %v3209_v38  ;;  %v3205_v30 = vld [vmem:[%s8382_s5 + $0x18] sm:$0xff] }
 0x39d   :  { %v1732_v62 = vsel %vm1728_vm0, %v1719_v49, %v1727_v1  ;;  %v1744_v29 = vsel %vm1728_vm0, %v1727_v1, %v1703_v5  ;;  %v1801_v47 = vpop.permute.xlu1 %1800  ;;  %v7430_v5 = vrot.slane %v4471_v7, %v8907_v8  ;;  %3776 = vmatprep.mubr.f32.mxu0 %v3205_v30  ;;  %4084 = vmatprep.mubr.f32.mxu1 %v3205_v30 }
 0x39e   :  { %2191 = vrot.lane.b32.xlu0 %v5577_v45, %s5105_s14  ;;  %v1780_v10 = vmul.f32 %v1751_v56, %v1744_v29  ;;  %v1783_v3 = vmul.f32 %v1763_v26, %v1732_v62  ;;  %v1858_v56 = vrot.slane %v4471_v7, %v8916_v31 }
 0x39f   :  { %2169 = vrot.lane.b32.xlu1 %v8701_v57, %s5105_s14 }
 0x3a0   :  { %v4613_v46 = vpack.c.bf16 %v1780_v10, %v1776_v54  ;;  %v1803_v25 = vpop.permute.xlu0 %1802  ;;  %v4811_v40 = vpack.c.bf16 %v1783_v3, %v1779_v61 }
 0x3a1   :  { %v1809_v36 = vpop.permute.xlu1 %1808 }
 0x3a2   :  { %2171 = vrot.lane.b32.xlu0 %v8798_v13, %s5105_s14  ;;  %4614 = vmatpush1.bf16.msra.mxu0 %v4613_v46  ;;  %v1840_v26 = vsel %vm206_vm3, %v1801_v47, %v1809_v36 }
 0x3a3   :  { %2177 = vrot.lane.b32.xlu1 %v8799_v12, %s5105_s14  ;;  %4812 = vmatprep.subr.bf16.mxu1 %v4811_v40  ;;  %v1872_v0 = vmul.f32 %v1858_v56, %v1840_v26 }
 0x3a4   :  { %4814 = vmatpush1.bf16.msra.mxu1 %v4813_v20  ;;  %v1811_v17 = vpop.permute.xlu0 %1810 }
 0x3a5   :  { %v1817_v22 = vpop.permute.xlu1 %1816  ;;  %v1841_v37 = vsel %vm206_vm3, %v1803_v25, %v1811_v17 }
 0x3a6   :  { %2179 = vrot.lane.b32.xlu0 %v8812_v9, %s5105_s14  ;;  %v1876_v59 = vmul.f32 %v1858_v56, %v1841_v37  ;;  %v1836_v27 = vsel %vm206_vm3, %v1809_v36, %v1817_v22  ;;  %v4472_v36 = vld [vmem:[%s8381_s4 + $0x24] ss:$8 sm:$0xf] }
 0x3a7   :  { %2185 = vrot.lane.b32.xlu1 %v8813_v35, %s5105_s14  ;;  %v1873_v62 = vmul.f32 %v7450_v51, %v1836_v27  ;;  %v1917_v2 = vrot.slane %v4472_v36, %v8917_v11 }
 0x3a8   :  { %v1819_v34 = vpop.permute.xlu0 %1818  ;;  %v4615_v19 = vpack.c.bf16 %v1876_v59, %v1872_v0  ;;  %v1921_v59 = vrot.slane %v4472_v36, %v8910_v44 }
 0x3a9   :  { %v1825_v55 = vpop.permute.xlu1 %1824  ;;  %v1837_v60 = vsel %vm206_vm3, %v1811_v17, %v1819_v34 }
 0x3aa   :  { %2187 = vrot.lane.b32.xlu0 %v8905_v28, %s5105_s14  ;;  %v1844_v15 = vsel %vm206_vm3, %v1825_v55, %v1801_v47  ;;  %v1832_v58 = vsel %vm206_vm3, %v1817_v22, %v1825_v55  ;;  %4616 = vmatprep.subr.bf16.mxu0 %v4615_v19  ;;  %v1877_v48 = vmul.f32 %v7450_v51, %v1837_v60 }
 0x3ab   :  { %2193 = vrot.lane.b32.xlu1 %v8906_v39, %s5105_s14  ;;  %v1871_v21 = vmul.f32 %v7430_v5, %v1844_v15  ;;  %v1874_v16 = vmul.f32 %v7435_v53, %v1832_v58  ;;  %v1909_v15 = vrot.slane %v4472_v36, %v8907_v8 }
 0x3ac   :  { %v1827_v24 = vpop.permute.xlu0 %1826  ;;  %v4817_v10 = vpack.c.bf16 %v1877_v48, %v1873_v62 }
 0x3ad   :  { %v1805_v49 = vpop.permute.xlu1 %1804  ;;  %v1833_v52 = vsel %vm206_vm3, %v1819_v34, %v1827_v24  ;;  %v1845_v6 = vsel %vm206_vm3, %v1827_v24, %v1803_v25 }
 0x3ae   :  { %2195 = vrot.lane.b32.xlu0 %v8911_v41, %s5105_s14  ;;  %v1875_v1 = vmul.f32 %v7430_v5, %v1845_v6  ;;  %v1878_v63 = vmul.f32 %v7435_v53, %v1833_v52  ;;  %v1929_v52 = vmul.f32 %v1921_v59, %v5567_v42  ;;  %v1933_v6 = vmul.f32 %v1921_v59, %v5577_v45  ;;  %s5108_s14 = smov 97  }
 0x3af   :  { %2269 = vrot.lane.b32.xlu1 %v8912_v18, %s5092_s17 }
 0x3b0   :  { %v4617_v29 = vpack.c.bf16 %v1875_v1, %v1871_v21  ;;  %v1807_v47 = vpop.permute.xlu0 %1806  ;;  %v4815_v61 = vpack.c.bf16 %v1878_v63, %v1874_v16  ;;  %v1930_v16 = vmul.f32 %v1909_v15, %v8914_v4 }
 0x3b1   :  { %v1813_v54 = vpop.permute.xlu1 %1812 }
 0x3b2   :  { %2271 = vrot.lane.b32.xlu0 %v8914_v4, %s5092_s17  ;;  %v1842_v3 = vsel %vm206_vm3, %v1805_v49, %v1813_v54  ;;  %4618 = vmatpush1.bf16.msra.mxu0 %v4617_v29  ;;  %v1926_v29 = vmul.f32 %v1909_v15, %v8912_v18 }
 0x3b3   :  { %2277 = vrot.lane.b32.xlu1 %v8915_v32, %s5092_s17  ;;  %4816 = vmatprep.subr.bf16.mxu1 %v4815_v61  ;;  %v1880_v7 = vmul.f32 %v1858_v56, %v1842_v3  ;;  %v4823_v3 = vpack.c.bf16 %v1933_v6, %v1929_v52 }
 0x3b4   :  { %4818 = vmatpush1.bf16.msra.mxu1 %v4817_v10  ;;  %v1815_v50 = vpop.permute.xlu0 %1814 }
 0x3b5   :  { %v1821_v46 = vpop.permute.xlu1 %1820  ;;  %v1843_v25 = vsel %vm206_vm3, %v1807_v47, %v1815_v50 }
 0x3b6   :  { %2279 = vrot.lane.b32.xlu0 %v5569_v43, %s5092_s17  ;;  %v1884_v40 = vmul.f32 %v1858_v56, %v1843_v25  ;;  %v1913_v56 = vrot.slane %v4472_v36, %v8916_v31  ;;  %v1838_v34 = vsel %vm206_vm3, %v1813_v54, %v1821_v46  ;;  %v1932_v54 = vmul.f32 %v1917_v2, %v5474_v33  ;;  %v4473_v25 = vld [vmem:[%s8381_s4 + $0x25] ss:$8 sm:$0xf] }
 0x3b7   :  { %2285 = vrot.lane.b32.xlu1 %v5452_v23, %s5092_s17  ;;  %v1881_v1 = vmul.f32 %v7450_v51, %v1838_v34  ;;  %v2024_v52 = vrot.slane %v4473_v25, %v8910_v44 }
 0x3b8   :  { %v1823_v20 = vpop.permute.xlu0 %1822  ;;  %v4619_v17 = vpack.c.bf16 %v1884_v40, %v1880_v7  ;;  %v1931_v60 = vmul.f32 %v1913_v56, %v5569_v43  ;;  %v1939_v10 = vmul.f32 %v1913_v56, %v8812_v9  ;;  %v1935_v36 = vmul.f32 %v1913_v56, %v8799_v12 }
 0x3b9   :  { %v1829_v26 = vpop.permute.xlu1 %1828  ;;  %v1839_v22 = vsel %vm206_vm3, %v1815_v50, %v1823_v20  ;;  %v4625_v50 = vpack.c.bf16 %v1930_v16, %v1926_v29 }
 0x3ba   :  { %2287 = vrot.lane.b32.xlu0 %v5474_v33, %s5092_s17  ;;  %v1846_v37 = vsel %vm206_vm3, %v1829_v26, %v1805_v49  ;;  %v1834_v0 = vsel %vm206_vm3, %v1821_v46, %v1829_v26  ;;  %4620 = vmatprep.subr.bf16.mxu0 %v4619_v17  ;;  %v1885_v38 = vmul.f32 %v7450_v51, %v1839_v22 }
 0x3bb   :  { %2293 = vrot.lane.b32.xlu1 %v5567_v42, %s5092_s17  ;;  %v1879_v58 = vmul.f32 %v7430_v5, %v1846_v37  ;;  %v1882_v49 = vmul.f32 %v7435_v53, %v1834_v0  ;;  %v1941_v46 = vmul.f32 %v1921_v59, %v8911_v41  ;;  %v1940_v26 = vmul.f32 %v1917_v2, %v8905_v28 }
 0x3bc   :  { %v1831_v55 = vpop.permute.xlu0 %1830  ;;  %v4821_v61 = vpack.c.bf16 %v1885_v38, %v1881_v1  ;;  %v1937_v22 = vmul.f32 %v1921_v59, %v8906_v39  ;;  %v1934_v37 = vmul.f32 %v1909_v15, %v8701_v57  ;;  %v1936_v0 = vmul.f32 %v1917_v2, %v8813_v35 }
 0x3bd   :  { %v7502_v19 = vpop.permute.xlu1 %1958  ;;  %v1835_v27 = vsel %vm206_vm3, %v1823_v20, %v1831_v55  ;;  %v1847_v24 = vsel %vm206_vm3, %v1831_v55, %v1807_v47  ;;  %v1928_v47 = vmul.f32 %v1917_v2, %v5452_v23  ;;  %v1938_v20 = vmul.f32 %v1909_v15, %v8798_v13 }
 0x3be   :  { %2295 = vrot.lane.b32.xlu0 %v5577_v45, %s5092_s17  ;;  %v1883_v48 = vmul.f32 %v7430_v5, %v1847_v24  ;;  %v1886_v21 = vmul.f32 %v7435_v53, %v1835_v27  ;;  %v1927_v53 = vmul.f32 %v1913_v56, %v8915_v32  ;;  %v7549_v55 = vrot.slane %v4473_v25, %v8916_v31 }
 0x3bf   :  { %2273 = vrot.lane.b32.xlu1 %v8701_v57, %s5092_s17  ;;  %v4825_v17 = vpack.c.bf16 %v1932_v54, %v1928_v47  ;;  %v4627_v56 = vpack.c.bf16 %v1939_v10, %v1935_v36  ;;  %v7556_v59 = vrot.slane %v4473_v25, %v8907_v8  ;;  %v4827_v15 = vpack.c.bf16 %v1941_v46, %v1937_v22 }
 0x3c0   :  { %v4621_v63 = vpack.c.bf16 %v1883_v48, %v1879_v58  ;;  %v7524_v30 = vpop.permute.xlu0 %1960  ;;  %v4819_v62 = vpack.c.bf16 %v1886_v21, %v1882_v49  ;;  %v4623_v51 = vpack.c.bf16 %v1931_v60, %v1927_v53  ;;  %v4629_v27 = vpack.c.bf16 %v1938_v20, %v1934_v37 }
 0x3c1   :  { %v1967_v5 = vpop.permute.xlu1 %1966  ;;  %v4829_v24 = vpack.c.bf16 %v1940_v26, %v1936_v0  ;;  %v2020_v21 = vrot.slane %v4473_v25, %v8917_v11  ;;  %vm2610_vm3 = vcmp.lt.s32.totalorder %v5304_v14, 110 }
 0x3c2   :  { %2275 = vrot.lane.b32.xlu0 %v8798_v13, %s5092_s17  ;;  %4622 = vmatpush1.bf16.msra.mxu0 %v4621_v63  ;;  %v1998_v2 = vsel %vm273_vm4, %v7502_v19, %v1967_v5 }
 0x3c3   :  { %2281 = vrot.lane.b32.xlu1 %v8799_v12, %s5092_s17  ;;  %4820 = vmatprep.subr.bf16.mxu1 %v4819_v62  ;;  %v2029_v63 = vmul.f32 %v7556_v59, %v1998_v2 }
 0x3c4   :  { %4624 = vmatprep.subr.bf16.mxu0 %v4623_v51  ;;  %4822 = vmatpush1.bf16.msra.mxu1 %v4821_v61 }
 0x3c5   :  { %v1969_v7 = vpop.permute.xlu0 %1968  ;;  %v1975_v40 = vpop.permute.xlu1 %1974  ;;  %4824 = vmatprep.subr.bf16.mxu1 %v4823_v3 }
 0x3c6   :  { %2283 = vrot.lane.b32.xlu0 %v8812_v9, %s5092_s17  ;;  %v1999_v34 = vsel %vm273_vm4, %v7524_v30, %v1969_v7  ;;  %v1994_v60 = vsel %vm273_vm4, %v1967_v5, %v1975_v40  ;;  %4626 = vmatpush1.bf16.msra.mxu0 %v4625_v50 }
 0x3c7   :  { %2289 = vrot.lane.b32.xlu1 %v8813_v35, %s5092_s17  ;;  %4628 = vmatprep.subr.bf16.mxu0 %v4627_v56  ;;  %v2033_v49 = vmul.f32 %v7556_v59, %v1999_v34  ;;  %v2030_v6 = vmul.f32 %v7549_v55, %v1994_v60 }
 0x3c8   :  { %4826 = vmatpush1.bf16.msra.mxu1 %v4825_v17 }
 0x3c9   :  { %4828 = vmatprep.subr.bf16.mxu1 %v4827_v15  ;;  %v4633_v47 = vpack.c.bf16 %v2033_v49, %v2029_v63 }
 0x3ca   :  { %2291 = vrot.lane.b32.xlu0 %v8905_v28, %s5092_s17  ;;  %v1977_v38 = vpop.permute.xlu0 %1976  ;;  %v1983_v58 = vpop.permute.xlu1 %1982  ;;  %4630 = vmatpush1.bf16.msra.mxu0 %v4629_v27 }
 0x3cb   :  { %2297 = vrot.lane.b32.xlu1 %v8906_v39, %s5092_s17  ;;  %v1995_v48 = vsel %vm273_vm4, %v1969_v7, %v1977_v38  ;;  %v1990_v1 = vsel %vm273_vm4, %v1975_v40, %v1983_v58  ;;  %v2002_v5 = vsel %vm273_vm4, %v1983_v58, %v7502_v19 }
 0x3cc   :  { %v2034_v16 = vmul.f32 %v7549_v55, %v1995_v48  ;;  %4830 = vmatpush1.bf16.msra.mxu1 %v4829_v24  ;;  %v2031_v54 = vmul.f32 %v2020_v21, %v1990_v1  ;;  %v2032_v10 = vmul.f32 %v2024_v52, %v2002_v5 }
 0x3ce   :  { %2299 = vrot.lane.b32.xlu0 %v8911_v41, %s5092_s17  ;;  %v1985_v62 = vpop.permute.xlu0 %1984  ;;  %v1963_v53 = vpop.permute.xlu1 %1962  ;;  %v4631_v29 = vpack.c.bf16 %v2034_v16, %v2030_v6 }
 0x3cf   :  { %2372 = vrot.lane.b32.xlu1 %v8912_v18, %s5093_s18  ;;  %v1991_v61 = vsel %vm273_vm4, %v1977_v38, %v1985_v62  ;;  %v2003_v51 = vsel %vm273_vm4, %v1985_v62, %v7524_v30 }
 0x3d0   :  { %v2035_v3 = vmul.f32 %v2020_v21, %v1991_v61  ;;  %v2036_v50 = vmul.f32 %v2024_v52, %v2003_v51  ;;  %4632 = vmatprep.subr.bf16.mxu0 %v4631_v29 }
 0x3d1   :  { %4634 = vmatpush1.bf16.msra.mxu0 %v4633_v47 }
 0x3d2   :  { %2374 = vrot.lane.b32.xlu0 %v8914_v4, %s5093_s18  ;;  %v4833_v19 = vpack.c.bf16 %v2035_v3, %v2031_v54  ;;  %v4831_v7 = vpack.c.bf16 %v2036_v50, %v2032_v10 }
 0x3d3   :  { %2380 = vrot.lane.b32.xlu1 %v8915_v32, %s5093_s18  ;;  %v1965_v46 = vpop.permute.xlu0 %1964 }
 0x3d4   :  { %v1971_v25 = vpop.permute.xlu1 %1970  ;;  %4832 = vmatprep.subr.bf16.mxu1 %v4831_v7 }
 0x3d5   :  { %4834 = vmatpush1.bf16.msra.mxu1 %v4833_v19  ;;  %v2000_v26 = vsel %vm273_vm4, %v1963_v53, %v1971_v25 }
 0x3d6   :  { %2382 = vrot.lane.b32.xlu0 %v5569_v43, %s5093_s18  ;;  %v2037_v15 = vmul.f32 %v7556_v59, %v2000_v26 }
 0x3d7   :  { %2388 = vrot.lane.b32.xlu1 %v5452_v23, %s5093_s18  ;;  %v1973_v30 = vpop.permute.xlu0 %1972 }
 0x3d8   :  { %v1979_v40 = vpop.permute.xlu1 %1978  ;;  %v2001_v36 = vsel %vm273_vm4, %v1965_v46, %v1973_v30 }
 0x3d9   :  { %v1996_v20 = vsel %vm273_vm4, %v1971_v25, %v1979_v40  ;;  %v2041_v37 = vmul.f32 %v7556_v59, %v2001_v36 }
 0x3da   :  { %2390 = vrot.lane.b32.xlu0 %v5474_v33, %s5093_s18  ;;  %v2038_v34 = vmul.f32 %v7549_v55, %v1996_v20 }
 0x3db   :  { %2396 = vrot.lane.b32.xlu1 %v5567_v42, %s5093_s18  ;;  %v4637_v24 = vpack.c.bf16 %v2041_v37, %v2037_v15 }
 0x3dc   :  { %v1981_v17 = vpop.permute.xlu0 %1980 }
 0x3dd   :  { %v1987_v22 = vpop.permute.xlu1 %1986  ;;  %v1997_v0 = vsel %vm273_vm4, %v1973_v30, %v1981_v17 }
 0x3de   :  { %v2042_v56 = vmul.f32 %v7549_v55, %v1997_v0  ;;  %v1992_v60 = vsel %vm273_vm4, %v1979_v40, %v1987_v22  ;;  %2398 = vrot.lane.b32.xlu0 %v5577_v45, %s5093_s18  ;;  %v2004_v2 = vsel %vm273_vm4, %v1987_v22, %v1963_v53 }
 0x3df   :  { %2376 = vrot.lane.b32.xlu1 %v8701_v57, %s5093_s18  ;;  %v2039_v49 = vmul.f32 %v2020_v21, %v1992_v60  ;;  %v2040_v6 = vmul.f32 %v2024_v52, %v2004_v2 }
 0x3e0   :  { %v1989_v38 = vpop.permute.xlu0 %1988  ;;  %v4635_v27 = vpack.c.bf16 %v2042_v56, %v2038_v34 }
 0x3e1   :  { %v2062_v58 = vpop.permute.xlu1 %2061  ;;  %v1993_v55 = vsel %vm273_vm4, %v1981_v17, %v1989_v38  ;;  %v2005_v48 = vsel %vm273_vm4, %v1989_v38, %v1965_v46  ;;  %vm2714_vm4 = vcmp.lt.s32.totalorder %v5304_v14, 98 }
 0x3e2   :  { %v2043_v16 = vmul.f32 %v2020_v21, %v1993_v55  ;;  %v2044_v1 = vmul.f32 %v2024_v52, %v2005_v48  ;;  %2378 = vrot.lane.b32.xlu0 %v8798_v13, %s5093_s18  ;;  %4636 = vmatprep.subr.bf16.mxu0 %v4635_v27  ;;  %v4474_v21 = vld [vmem:[%s8381_s4 + $0x26] ss:$8 sm:$0xf] }
 0x3e3   :  { %2384 = vrot.lane.b32.xlu1 %v8799_v12, %s5093_s18  ;;  %4638 = vmatpush1.bf16.msra.mxu0 %v4637_v24  ;;  %v2120_v47 = vrot.slane %v4474_v21, %v8916_v31  ;;  %v2116_v54 = vrot.slane %v4474_v21, %v8907_v8  ;;  %v2124_v46 = vrot.slane %v4474_v21, %v8917_v11 }
 0x3e4   :  { %v4837_v59 = vpack.c.bf16 %v2043_v16, %v2039_v49  ;;  %v2064_v63 = vpop.permute.xlu0 %2063  ;;  %v4835_v62 = vpack.c.bf16 %v2044_v1, %v2040_v6  ;;  %v2128_v25 = vrot.slane %v4474_v21, %v8910_v44 }
 0x3e5   :  { %v2070_v5 = vpop.permute.xlu1 %2069 }
 0x3e6   :  { %2386 = vrot.lane.b32.xlu0 %v8812_v9, %s5093_s18  ;;  %4836 = vmatprep.subr.bf16.mxu1 %v4835_v62  ;;  %v2102_v51 = vsel %vm2093_vm1, %v2062_v58, %v2070_v5 }
 0x3e7   :  { %2392 = vrot.lane.b32.xlu1 %v8813_v35, %s5093_s18  ;;  %4838 = vmatpush1.bf16.msra.mxu1 %v4837_v59  ;;  %v2133_v36 = vmul.f32 %v2116_v54, %v2102_v51 }
 0x3e8   :  { %v2072_v52 = vpop.permute.xlu0 %2071 }
 0x3e9   :  { %v2078_v53 = vpop.permute.xlu1 %2077  ;;  %v2103_v29 = vsel %vm2093_vm1, %v2064_v63, %v2072_v52 }
 0x3ea   :  { %2394 = vrot.lane.b32.xlu0 %v8905_v28, %s5093_s18  ;;  %v2098_v61 = vsel %vm2093_vm1, %v2070_v5, %v2078_v53  ;;  %v2137_v50 = vmul.f32 %v2116_v54, %v2103_v29 }
 0x3eb   :  { %2400 = vrot.lane.b32.xlu1 %v8906_v39, %s5093_s18  ;;  %v2134_v7 = vmul.f32 %v2120_v47, %v2098_v61 }
 0x3ec   :  { %v2080_v10 = vpop.permute.xlu0 %2079  ;;  %v4641_v37 = vpack.c.bf16 %v2137_v50, %v2133_v36 }
 0x3ed   :  { %v2086_v3 = vpop.permute.xlu1 %2085  ;;  %v2099_v19 = vsel %vm2093_vm1, %v2072_v52, %v2080_v10 }
 0x3ee   :  { %v2138_v30 = vmul.f32 %v2120_v47, %v2099_v19  ;;  %v2094_v40 = vsel %vm2093_vm1, %v2078_v53, %v2086_v3  ;;  %2402 = vrot.lane.b32.xlu0 %v8911_v41, %s5093_s18  ;;  %v2106_v20 = vsel %vm2093_vm1, %v2086_v3, %v2062_v58 }
 0x3ef   :  { %2475 = vrot.lane.b32.xlu1 %v8912_v18, %s5095_s21  ;;  %v2135_v0 = vmul.f32 %v2124_v46, %v2094_v40  ;;  %v2136_v60 = vmul.f32 %v2128_v25, %v2106_v20 }
 0x3f0   :  { %v2088_v26 = vpop.permute.xlu0 %2087  ;;  %v4639_v22 = vpack.c.bf16 %v2138_v30, %v2134_v7 }
 0x3f1   :  { %v2066_v17 = vpop.permute.xlu1 %2065  ;;  %v2095_v34 = vsel %vm2093_vm1, %v2080_v10, %v2088_v26  ;;  %v2107_v56 = vsel %vm2093_vm1, %v2088_v26, %v2064_v63 }
 0x3f2   :  { %v2139_v15 = vmul.f32 %v2124_v46, %v2095_v34  ;;  %v2140_v2 = vmul.f32 %v2128_v25, %v2107_v56  ;;  %2477 = vrot.lane.b32.xlu0 %v8914_v4, %s5095_s21  ;;  %4640 = vmatprep.subr.bf16.mxu0 %v4639_v22 }
 0x3f3   :  { %2483 = vrot.lane.b32.xlu1 %v8915_v32, %s5095_s21  ;;  %4642 = vmatpush1.bf16.msra.mxu0 %v4641_v37 }
 0x3f4   :  { %v4841_v38 = vpack.c.bf16 %v2139_v15, %v2135_v0  ;;  %v2068_v58 = vpop.permute.xlu0 %2067  ;;  %v4839_v24 = vpack.c.bf16 %v2140_v2, %v2136_v60 }
 0x3f5   :  { %v2074_v27 = vpop.permute.xlu1 %2073 }
 0x3f6   :  { %2485 = vrot.lane.b32.xlu0 %v5569_v43, %s5095_s21  ;;  %4840 = vmatprep.subr.bf16.mxu1 %v4839_v24  ;;  %v2104_v16 = vsel %vm2093_vm1, %v2066_v17, %v2074_v27 }
 0x3f7   :  { %2491 = vrot.lane.b32.xlu1 %v5452_v23, %s5095_s21  ;;  %4842 = vmatpush1.bf16.msra.mxu1 %v4841_v38  ;;  %v2141_v53 = vmul.f32 %v2116_v54, %v2104_v16 }
 0x3f8   :  { %v2076_v49 = vpop.permute.xlu0 %2075 }
 0x3f9   :  { %v2082_v55 = vpop.permute.xlu1 %2081  ;;  %v2105_v48 = vsel %vm2093_vm1, %v2068_v58, %v2076_v49 }
 0x3fa   :  { %2493 = vrot.lane.b32.xlu0 %v5474_v33, %s5095_s21  ;;  %v2100_v6 = vsel %vm2093_vm1, %v2074_v27, %v2082_v55  ;;  %v2145_v63 = vmul.f32 %v2116_v54, %v2105_v48 }
 0x3fb   :  { %2499 = vrot.lane.b32.xlu1 %v5567_v42, %s5095_s21  ;;  %v2142_v62 = vmul.f32 %v2120_v47, %v2100_v6 }
 0x3fc   :  { %v2084_v1 = vpop.permute.xlu0 %2083  ;;  %v4645_v3 = vpack.c.bf16 %v2145_v63, %v2141_v53 }
 0x3fd   :  { %v2090_v59 = vpop.permute.xlu1 %2089  ;;  %v2101_v5 = vsel %vm2093_vm1, %v2076_v49, %v2084_v1 }
 0x3fe   :  { %v2146_v21 = vmul.f32 %v2120_v47, %v2101_v5  ;;  %v2096_v52 = vsel %vm2093_vm1, %v2082_v55, %v2090_v59  ;;  %2501 = vrot.lane.b32.xlu0 %v5577_v45, %s5095_s21  ;;  %v2108_v29 = vsel %vm2093_vm1, %v2090_v59, %v2066_v17 }
 0x3ff   :  { %2479 = vrot.lane.b32.xlu1 %v8701_v57, %s5095_s21  ;;  %v2143_v50 = vmul.f32 %v2124_v46, %v2096_v52  ;;  %v2144_v7 = vmul.f32 %v2128_v25, %v2108_v29 }
 0x400   :  { %v2092_v61 = vpop.permute.xlu0 %2091  ;;  %v4643_v10 = vpack.c.bf16 %v2146_v21, %v2142_v62 }
 0x401   :  { %v2166_v51 = vpop.permute.xlu1 %2165  ;;  %v2097_v47 = vsel %vm2093_vm1, %v2084_v1, %v2092_v61  ;;  %v2109_v19 = vsel %vm2093_vm1, %v2092_v61, %v2068_v58 }
 0x402   :  { %v2147_v30 = vmul.f32 %v2124_v46, %v2097_v47  ;;  %v2148_v40 = vmul.f32 %v2128_v25, %v2109_v19  ;;  %2481 = vrot.lane.b32.xlu0 %v8798_v13, %s5095_s21  ;;  %4644 = vmatprep.subr.bf16.mxu0 %v4643_v10  ;;  %v4475_v46 = vld [vmem:[%s8381_s4 + $0x27] ss:$8 sm:$0xf] }
 0x403   :  { %2487 = vrot.lane.b32.xlu1 %v8799_v12, %s5095_s21  ;;  %4646 = vmatpush1.bf16.msra.mxu0 %v4645_v3  ;;  %v2224_v37 = vrot.slane %v4475_v46, %v8916_v31  ;;  %v2220_v0 = vrot.slane %v4475_v46, %v8907_v8  ;;  %v2228_v58 = vrot.slane %v4475_v46, %v8917_v11 }
 0x404   :  { %v4845_v54 = vpack.c.bf16 %v2147_v30, %v2143_v50  ;;  %v2168_v36 = vpop.permute.xlu0 %2167  ;;  %v4843_v26 = vpack.c.bf16 %v2148_v40, %v2144_v7  ;;  %v2232_v27 = vrot.slane %v4475_v46, %v8910_v44 }
 0x405   :  { %v2174_v20 = vpop.permute.xlu1 %2173 }
 0x406   :  { %2489 = vrot.lane.b32.xlu0 %v8812_v9, %s5095_s21  ;;  %4844 = vmatprep.subr.bf16.mxu1 %v4843_v26  ;;  %v2206_v56 = vsel %vm2197_vm2, %v2166_v51, %v2174_v20 }
 0x407   :  { %2495 = vrot.lane.b32.xlu1 %v8813_v35, %s5095_s21  ;;  %4846 = vmatpush1.bf16.msra.mxu1 %v4845_v54  ;;  %v2237_v48 = vmul.f32 %v2220_v0, %v2206_v56 }
 0x408   :  { %v2176_v25 = vpop.permute.xlu0 %2175 }
 0x409   :  { %v2182_v17 = vpop.permute.xlu1 %2181  ;;  %v2207_v22 = vsel %vm2197_vm2, %v2168_v36, %v2176_v25 }
 0x40a   :  { %2497 = vrot.lane.b32.xlu0 %v8905_v28, %s5095_s21  ;;  %v2202_v34 = vsel %vm2197_vm2, %v2174_v20, %v2182_v17  ;;  %v2241_v2 = vmul.f32 %v2220_v0, %v2207_v22 }
 0x40b   :  { %2503 = vrot.lane.b32.xlu1 %v8906_v39, %s5095_s21  ;;  %v2238_v24 = vmul.f32 %v2224_v37, %v2202_v34 }
 0x40c   :  { %v2184_v60 = vpop.permute.xlu0 %2183  ;;  %v4649_v63 = vpack.c.bf16 %v2241_v2, %v2237_v48 }
 0x40d   :  { %v2190_v15 = vpop.permute.xlu1 %2189  ;;  %v2203_v38 = vsel %vm2197_vm2, %v2176_v25, %v2184_v60 }
 0x40e   :  { %v2242_v49 = vmul.f32 %v2224_v37, %v2203_v38  ;;  %v2198_v55 = vsel %vm2197_vm2, %v2182_v17, %v2190_v15  ;;  %2505 = vrot.lane.b32.xlu0 %v8911_v41, %s5095_s21  ;;  %v2210_v6 = vsel %vm2197_vm2, %v2190_v15, %v2166_v51 }
 0x40f   :  { %2578 = vrot.lane.b32.xlu1 %v8912_v18, %s5106_s19  ;;  %v2239_v5 = vmul.f32 %v2228_v58, %v2198_v55  ;;  %v2240_v52 = vmul.f32 %v2232_v27, %v2210_v6 }
 0x410   :  { %v2192_v16 = vpop.permute.xlu0 %2191  ;;  %v4647_v59 = vpack.c.bf16 %v2242_v49, %v2238_v24 }
 0x411   :  { %v2170_v1 = vpop.permute.xlu1 %2169  ;;  %v2199_v62 = vsel %vm2197_vm2, %v2184_v60, %v2192_v16  ;;  %v2211_v21 = vsel %vm2197_vm2, %v2192_v16, %v2168_v36 }
 0x412   :  { %v2243_v53 = vmul.f32 %v2228_v58, %v2199_v62  ;;  %v2244_v29 = vmul.f32 %v2232_v27, %v2211_v21  ;;  %2580 = vrot.lane.b32.xlu0 %v8914_v4, %s5106_s19  ;;  %4648 = vmatprep.subr.bf16.mxu0 %v4647_v59 }
 0x413   :  { %2586 = vrot.lane.b32.xlu1 %v8915_v32, %s5106_s19  ;;  %4650 = vmatpush1.bf16.msra.mxu0 %v4649_v63 }
 0x414   :  { %v4849_v61 = vpack.c.bf16 %v2243_v53, %v2239_v5  ;;  %v2172_v51 = vpop.permute.xlu0 %2171  ;;  %v4847_v3 = vpack.c.bf16 %v2244_v29, %v2240_v52 }
 0x415   :  { %v2178_v10 = vpop.permute.xlu1 %2177 }
 0x416   :  { %2588 = vrot.lane.b32.xlu0 %v5569_v43, %s5106_s19  ;;  %4848 = vmatprep.subr.bf16.mxu1 %v4847_v3  ;;  %v2208_v30 = vsel %vm2197_vm2, %v2170_v1, %v2178_v10 }
 0x417   :  { %2594 = vrot.lane.b32.xlu1 %v5452_v23, %s5106_s19  ;;  %4850 = vmatpush1.bf16.msra.mxu1 %v4849_v61  ;;  %v2245_v17 = vmul.f32 %v2220_v0, %v2208_v30 }
 0x418   :  { %v2180_v50 = vpop.permute.xlu0 %2179 }
 0x419   :  { %v2186_v47 = vpop.permute.xlu1 %2185  ;;  %v2209_v19 = vsel %vm2197_vm2, %v2172_v51, %v2180_v50 }
 0x41a   :  { %2596 = vrot.lane.b32.xlu0 %v5474_v33, %s5106_s19  ;;  %v2204_v7 = vsel %vm2197_vm2, %v2178_v10, %v2186_v47  ;;  %v2249_v36 = vmul.f32 %v2220_v0, %v2209_v19 }
 0x41b   :  { %2602 = vrot.lane.b32.xlu1 %v5567_v42, %s5106_s19  ;;  %v2246_v26 = vmul.f32 %v2224_v37, %v2204_v7 }
 0x41c   :  { %v2188_v40 = vpop.permute.xlu0 %2187  ;;  %v4653_v15 = vpack.c.bf16 %v2249_v36, %v2245_v17 }
 0x41d   :  { %v2194_v54 = vpop.permute.xlu1 %2193  ;;  %v2205_v20 = vsel %vm2197_vm2, %v2180_v50, %v2188_v40 }
 0x41e   :  { %v2250_v46 = vmul.f32 %v2224_v37, %v2205_v20  ;;  %v2200_v25 = vsel %vm2197_vm2, %v2186_v47, %v2194_v54  ;;  %2604 = vrot.lane.b32.xlu0 %v5577_v45, %s5106_s19  ;;  %v2212_v22 = vsel %vm2197_vm2, %v2194_v54, %v2170_v1  ;;  %v3204_v1 = vld [vmem:[%s8382_s5 + $0x10] sm:$0xff] }
 0x41f   :  { %2582 = vrot.lane.b32.xlu1 %v8701_v57, %s5106_s19  ;;  %v2247_v2 = vmul.f32 %v2228_v58, %v2200_v25  ;;  %v2248_v24 = vmul.f32 %v2232_v27, %v2212_v22 }
 0x420   :  { %v2196_v34 = vpop.permute.xlu0 %2195  ;;  %v4651_v60 = vpack.c.bf16 %v2250_v46, %v2246_v26 }
 0x421   :  { %v2270_v56 = vpop.permute.xlu1 %2269  ;;  %v2201_v37 = vsel %vm2197_vm2, %v2188_v40, %v2196_v34  ;;  %v2213_v38 = vsel %vm2197_vm2, %v2196_v34, %v2172_v51 }
 0x422   :  { %v2251_v49 = vmul.f32 %v2228_v58, %v2201_v37  ;;  %v2252_v55 = vmul.f32 %v2232_v27, %v2213_v38  ;;  %2584 = vrot.lane.b32.xlu0 %v8798_v13, %s5106_s19  ;;  %4652 = vmatprep.subr.bf16.mxu0 %v4651_v60  ;;  %v4476_v58 = vld [vmem:[%s8381_s4 + $0x40] ss:$8 sm:$0xf] }
 0x423   :  { %2590 = vrot.lane.b32.xlu1 %v8799_v12, %s5106_s19  ;;  %4654 = vmatpush1.bf16.msra.mxu0 %v4653_v15  ;;  %v2327_v5 = vrot.slane %v4476_v58, %v8916_v31  ;;  %v2323_v62 = vrot.slane %v4476_v58, %v8907_v8  ;;  %v2331_v10 = vrot.slane %v4476_v58, %v8917_v11 }
 0x424   :  { %v4853_v0 = vpack.c.bf16 %v2251_v49, %v2247_v2  ;;  %v2272_v48 = vpop.permute.xlu0 %2271  ;;  %v4851_v16 = vpack.c.bf16 %v2252_v55, %v2248_v24  ;;  %v2335_v3 = vrot.slane %v4476_v58, %v8910_v44 }
 0x425   :  { %v2278_v6 = vpop.permute.xlu1 %2277 }
 0x426   :  { %2592 = vrot.lane.b32.xlu0 %v8812_v9, %s5106_s19  ;;  %4852 = vmatprep.subr.bf16.mxu1 %v4851_v16  ;;  %v2309_v52 = vsel %vm313_vm6, %v2270_v56, %v2278_v6 }
 0x427   :  { %2598 = vrot.lane.b32.xlu1 %v8813_v35, %s5106_s19  ;;  %3777 = vmatmul.mubr.f32.vlgmr.msra.gmra.mrb[8].mxu0 %v3204_v1  ;;  %v2340_v7 = vmul.f32 %v2323_v62, %v2309_v52 }
 0x428   :  { %4854 = vmatpush1.bf16.msra.mxu1 %v4853_v0  ;;  %v2280_v27 = vpop.permute.xlu0 %2279 }
 0x429   :  { %v2286_v59 = vpop.permute.xlu1 %2285  ;;  %v2310_v63 = vsel %vm313_vm6, %v2272_v48, %v2280_v27 }
 0x42a   :  { %2600 = vrot.lane.b32.xlu0 %v8905_v28, %s5106_s19  ;;  %v2305_v21 = vsel %vm313_vm6, %v2278_v6, %v2286_v59  ;;  %v2344_v61 = vmul.f32 %v2323_v62, %v2310_v63 }
 0x42b   :  { %2606 = vrot.lane.b32.xlu1 %v8906_v39, %s5106_s19  ;;  %4085 = vmatmul.mubr.f32.vlgmr.msra.gmra.mrb[8].mxu1 %v3204_v1  ;;  %v2341_v50 = vmul.f32 %v2327_v5, %v2305_v21 }
 0x42c   :  { %v2288_v53 = vpop.permute.xlu0 %2287  ;;  %v4657_v20 = vpack.c.bf16 %v2344_v61, %v2340_v7 }
 0x42d   :  { %v2294_v29 = vpop.permute.xlu1 %2293  ;;  %v2306_v51 = vsel %vm313_vm6, %v2280_v27, %v2288_v53 }
 0x42e   :  { %v2345_v47 = vmul.f32 %v2327_v5, %v2306_v51  ;;  %v2301_v19 = vsel %vm313_vm6, %v2286_v59, %v2294_v29  ;;  %2608 = vrot.lane.b32.xlu0 %v8911_v41, %s5106_s19  ;;  %v2313_v30 = vsel %vm313_vm6, %v2294_v29, %v2270_v56 }
 0x42f   :  { %2682 = vrot.lane.b32.xlu1 %v8912_v18, %s5107_s12  ;;  %v2342_v26 = vmul.f32 %v2331_v10, %v2301_v19  ;;  %v2343_v17 = vmul.f32 %v2335_v3, %v2313_v30 }
 0x430   :  { %v2296_v40 = vpop.permute.xlu0 %2295  ;;  %v4655_v36 = vpack.c.bf16 %v2345_v47, %v2341_v50 }
 0x431   :  { %v2274_v54 = vpop.permute.xlu1 %2273  ;;  %v2302_v46 = vsel %vm313_vm6, %v2288_v53, %v2296_v40  ;;  %v2314_v25 = vsel %vm313_vm6, %v2296_v40, %v2272_v48 }
 0x432   :  { %v2346_v22 = vmul.f32 %v2331_v10, %v2302_v46  ;;  %v2347_v34 = vmul.f32 %v2335_v3, %v2314_v25  ;;  %2684 = vrot.lane.b32.xlu0 %v8914_v4, %s5107_s12  ;;  %4656 = vmatprep.subr.bf16.mxu0 %v4655_v36 }
 0x433   :  { %2690 = vrot.lane.b32.xlu1 %v8915_v32, %s5107_s12  ;;  %4658 = vmatpush1.bf16.msra.mxu0 %v4657_v20 }
 0x434   :  { %v4857_v56 = vpack.c.bf16 %v2346_v22, %v2342_v26  ;;  %v2276_v60 = vpop.permute.xlu0 %2275  ;;  %v4855_v2 = vpack.c.bf16 %v2347_v34, %v2343_v17 }
 0x435   :  { %v2282_v15 = vpop.permute.xlu1 %2281 }
 0x436   :  { %2692 = vrot.lane.b32.xlu0 %v5569_v43, %s5107_s12  ;;  %4856 = vmatprep.subr.bf16.mxu1 %v4855_v2  ;;  %v2311_v55 = vsel %vm313_vm6, %v2274_v54, %v2282_v15 }
 0x437   :  { %2698 = vrot.lane.b32.xlu1 %v5452_v23, %s5107_s12  ;;  %4858 = vmatpush1.bf16.msra.mxu1 %v4857_v56  ;;  %v2348_v59 = vmul.f32 %v2323_v62, %v2311_v55 }
 0x438   :  { %v2284_v37 = vpop.permute.xlu0 %2283 }
 0x439   :  { %v2290_v38 = vpop.permute.xlu1 %2289  ;;  %v2312_v24 = vsel %vm313_vm6, %v2276_v60, %v2284_v37 }
 0x43a   :  { %2700 = vrot.lane.b32.xlu0 %v5474_v33, %s5107_s12  ;;  %v2307_v49 = vsel %vm313_vm6, %v2282_v15, %v2290_v38  ;;  %v2352_v6 = vmul.f32 %v2323_v62, %v2312_v24 }
 0x43b   :  { %2706 = vrot.lane.b32.xlu1 %v5567_v42, %s5107_s12  ;;  %v2349_v1 = vmul.f32 %v2327_v5, %v2307_v49 }
 0x43c   :  { %v2292_v0 = vpop.permute.xlu0 %2291  ;;  %v4661_v29 = vpack.c.bf16 %v2352_v6, %v2348_v59 }
 0x43d   :  { %v2298_v48 = vpop.permute.xlu1 %2297  ;;  %v2308_v16 = vsel %vm313_vm6, %v2284_v37, %v2292_v0 }
 0x43e   :  { %v2353_v58 = vmul.f32 %v2327_v5, %v2308_v16  ;;  %v2303_v27 = vsel %vm313_vm6, %v2290_v38, %v2298_v48  ;;  %2708 = vrot.lane.b32.xlu0 %v5577_v45, %s5107_s12  ;;  %v2315_v63 = vsel %vm313_vm6, %v2298_v48, %v2274_v54 }
 0x43f   :  { %2686 = vrot.lane.b32.xlu1 %v8701_v57, %s5107_s12  ;;  %v2350_v61 = vmul.f32 %v2331_v10, %v2303_v27  ;;  %v2351_v50 = vmul.f32 %v2335_v3, %v2315_v63 }
 0x440   :  { %v2300_v21 = vpop.permute.xlu0 %2299  ;;  %v4659_v53 = vpack.c.bf16 %v2353_v58, %v2349_v1 }
 0x441   :  { %v2373_v52 = vpop.permute.xlu1 %2372  ;;  %v2304_v5 = vsel %vm313_vm6, %v2292_v0, %v2300_v21  ;;  %v2316_v51 = vsel %vm313_vm6, %v2300_v21, %v2276_v60  ;;  %vm2922_vm6 = vcmp.lt.s32.totalorder %v5304_v14, 96 }
 0x442   :  { %v2354_v47 = vmul.f32 %v2331_v10, %v2304_v5  ;;  %v2355_v19 = vmul.f32 %v2335_v3, %v2316_v51  ;;  %2688 = vrot.lane.b32.xlu0 %v8798_v13, %s5107_s12  ;;  %4660 = vmatprep.subr.bf16.mxu0 %v4659_v53  ;;  %v4477_v10 = vld [vmem:[%s8381_s4 + $0x41] ss:$8 sm:$0xf] }
 0x443   :  { %2694 = vrot.lane.b32.xlu1 %v8799_v12, %s5107_s12  ;;  %4662 = vmatpush1.bf16.msra.mxu0 %v4661_v29  ;;  %v2430_v20 = vrot.slane %v4477_v10, %v8916_v31  ;;  %v2426_v26 = vrot.slane %v4477_v10, %v8907_v8  ;;  %v2434_v60 = vrot.slane %v4477_v10, %v8917_v11 }
 0x444   :  { %v4861_v62 = vpack.c.bf16 %v2354_v47, %v2350_v61  ;;  %v2375_v7 = vpop.permute.xlu0 %2374  ;;  %v4859_v40 = vpack.c.bf16 %v2355_v19, %v2351_v50  ;;  %v2438_v15 = vrot.slane %v4477_v10, %v8910_v44 }
 0x445   :  { %v2381_v30 = vpop.permute.xlu1 %2380 }
 0x446   :  { %2696 = vrot.lane.b32.xlu0 %v8812_v9, %s5107_s12  ;;  %4860 = vmatprep.subr.bf16.mxu1 %v4859_v40  ;;  %v2412_v25 = vsel %vm353_vm5, %v2373_v52, %v2381_v30 }
 0x447   :  { %2702 = vrot.lane.b32.xlu1 %v8813_v35, %s5107_s12  ;;  %4862 = vmatpush1.bf16.msra.mxu1 %v4861_v62  ;;  %v2443_v24 = vmul.f32 %v2426_v26, %v2412_v25 }
 0x448   :  { %v2383_v3 = vpop.permute.xlu0 %2382 }
 0x449   :  { %v2389_v54 = vpop.permute.xlu1 %2388  ;;  %v2413_v36 = vsel %vm353_vm5, %v2375_v7, %v2383_v3 }
 0x44a   :  { %2704 = vrot.lane.b32.xlu0 %v8905_v28, %s5107_s12  ;;  %v2408_v46 = vsel %vm353_vm5, %v2381_v30, %v2389_v54  ;;  %v2447_v34 = vmul.f32 %v2426_v26, %v2413_v36 }
 0x44b   :  { %2710 = vrot.lane.b32.xlu1 %v8906_v39, %s5107_s12  ;;  %v2444_v2 = vmul.f32 %v2430_v20, %v2408_v46 }
 0x44c   :  { %v2391_v17 = vpop.permute.xlu0 %2390  ;;  %v4665_v6 = vpack.c.bf16 %v2447_v34, %v2443_v24 }
 0x44d   :  { %v2397_v22 = vpop.permute.xlu1 %2396  ;;  %v2409_v56 = vsel %vm353_vm5, %v2383_v3, %v2391_v17 }
 0x44e   :  { %v2448_v37 = vmul.f32 %v2430_v20, %v2409_v56  ;;  %v2404_v38 = vsel %vm353_vm5, %v2389_v54, %v2397_v22  ;;  %2712 = vrot.lane.b32.xlu0 %v8911_v41, %s5107_s12  ;;  %v2416_v49 = vsel %vm353_vm5, %v2397_v22, %v2373_v52 }
 0x44f   :  { %2786 = vrot.lane.b32.xlu1 %v8912_v18, %s5108_s14  ;;  %v2445_v16 = vmul.f32 %v2434_v60, %v2404_v38  ;;  %v2446_v27 = vmul.f32 %v2438_v15, %v2416_v49 }
 0x450   :  { %v2399_v55 = vpop.permute.xlu0 %2398  ;;  %v4663_v48 = vpack.c.bf16 %v2448_v37, %v2444_v2 }
 0x451   :  { %v2377_v0 = vpop.permute.xlu1 %2376  ;;  %v2405_v1 = vsel %vm353_vm5, %v2391_v17, %v2399_v55  ;;  %v2417_v58 = vsel %vm353_vm5, %v2399_v55, %v2375_v7 }
 0x452   :  { %v2449_v59 = vmul.f32 %v2434_v60, %v2405_v1  ;;  %v2450_v63 = vmul.f32 %v2438_v15, %v2417_v58  ;;  %2788 = vrot.lane.b32.xlu0 %v8914_v4, %s5108_s14  ;;  %4664 = vmatprep.subr.bf16.mxu0 %v4663_v48 }
 0x453   :  { %2794 = vrot.lane.b32.xlu1 %v8915_v32, %s5108_s14  ;;  %4666 = vmatpush1.bf16.msra.mxu0 %v4665_v6 }
 0x454   :  { %v4865_v21 = vpack.c.bf16 %v2449_v59, %v2445_v16  ;;  %v2379_v52 = vpop.permute.xlu0 %2378  ;;  %v4863_v29 = vpack.c.bf16 %v2450_v63, %v2446_v27 }
 0x455   :  { %v2385_v53 = vpop.permute.xlu1 %2384 }
 0x456   :  { %2796 = vrot.lane.b32.xlu0 %v5569_v43, %s5108_s14  ;;  %4864 = vmatprep.subr.bf16.mxu1 %v4863_v29  ;;  %v2414_v47 = vsel %vm353_vm5, %v2377_v0, %v2385_v53 }
 0x457   :  { %2802 = vrot.lane.b32.xlu1 %v5452_v23, %s5108_s14  ;;  %4866 = vmatpush1.bf16.msra.mxu1 %v4865_v21  ;;  %v2451_v54 = vmul.f32 %v2426_v26, %v2414_v47 }
 0x458   :  { %v2387_v61 = vpop.permute.xlu0 %2386 }
 0x459   :  { %v2393_v5 = vpop.permute.xlu1 %2392  ;;  %v2415_v51 = vsel %vm353_vm5, %v2379_v52, %v2387_v61 }
 0x45a   :  { %2804 = vrot.lane.b32.xlu0 %v5474_v33, %s5108_s14  ;;  %v2410_v50 = vsel %vm353_vm5, %v2385_v53, %v2393_v5  ;;  %v2455_v7 = vmul.f32 %v2426_v26, %v2415_v51 }
 0x45b   :  { %2810 = vrot.lane.b32.xlu1 %v5567_v42, %s5108_s14  ;;  %v2452_v40 = vmul.f32 %v2430_v20, %v2410_v50 }
 0x45c   :  { %v2395_v19 = vpop.permute.xlu0 %2394  ;;  %v4669_v22 = vpack.c.bf16 %v2455_v7, %v2451_v54 }
 0x45d   :  { %v2401_v62 = vpop.permute.xlu1 %2400  ;;  %v2411_v30 = vsel %vm353_vm5, %v2387_v61, %v2395_v19 }
 0x45e   :  { %v2456_v10 = vmul.f32 %v2430_v20, %v2411_v30  ;;  %v2406_v3 = vsel %vm353_vm5, %v2393_v5, %v2401_v62  ;;  %2812 = vrot.lane.b32.xlu0 %v5577_v45, %s5108_s14  ;;  %v2418_v36 = vsel %vm353_vm5, %v2401_v62, %v2377_v0 }
 0x45f   :  { %2790 = vrot.lane.b32.xlu1 %v8701_v57, %s5108_s14  ;;  %v2453_v34 = vmul.f32 %v2434_v60, %v2406_v3  ;;  %v2454_v2 = vmul.f32 %v2438_v15, %v2418_v36 }
 0x460   :  { %v2403_v46 = vpop.permute.xlu0 %2402  ;;  %v4667_v17 = vpack.c.bf16 %v2456_v10, %v2452_v40 }
 0x461   :  { %v2476_v25 = vpop.permute.xlu1 %2475  ;;  %v2407_v20 = vsel %vm353_vm5, %v2395_v19, %v2403_v46  ;;  %v2419_v56 = vsel %vm353_vm5, %v2403_v46, %v2379_v52  ;;  %vm2818_vm5 = vcmp.lt.s32.totalorder %v5304_v14, 97 }
 0x462   :  { %v2457_v37 = vmul.f32 %v2434_v60, %v2407_v20  ;;  %v2458_v38 = vmul.f32 %v2438_v15, %v2419_v56  ;;  %2792 = vrot.lane.b32.xlu0 %v8798_v13, %s5108_s14  ;;  %4668 = vmatprep.subr.bf16.mxu0 %v4667_v17  ;;  %v4478_v60 = vld [vmem:[%s8381_s4 + $0x42] ss:$8 sm:$0xf] }
 0x463   :  { %2798 = vrot.lane.b32.xlu1 %v8799_v12, %s5108_s14  ;;  %4670 = vmatpush1.bf16.msra.mxu0 %v4669_v22  ;;  %v2533_v6 = vrot.slane %v4478_v60, %v8916_v31  ;;  %v2529_v16 = vrot.slane %v4478_v60, %v8907_v8  ;;  %v2537_v52 = vrot.slane %v4478_v60, %v8917_v11 }
 0x464   :  { %v4869_v26 = vpack.c.bf16 %v2457_v37, %v2453_v34  ;;  %v2478_v24 = vpop.permute.xlu0 %2477  ;;  %v4867_v55 = vpack.c.bf16 %v2458_v38, %v2454_v2  ;;  %v2541_v53 = vrot.slane %v4478_v60, %v8910_v44 }
 0x465   :  { %v2484_v49 = vpop.permute.xlu1 %2483 }
 0x466   :  { %2800 = vrot.lane.b32.xlu0 %v8812_v9, %s5108_s14  ;;  %4868 = vmatprep.subr.bf16.mxu1 %v4867_v55  ;;  %v2515_v58 = vsel %vm393_vm7, %v2476_v25, %v2484_v49 }
 0x467   :  { %2806 = vrot.lane.b32.xlu1 %v8813_v35, %s5108_s14  ;;  %4870 = vmatpush1.bf16.msra.mxu1 %v4869_v26  ;;  %v2546_v51 = vmul.f32 %v2529_v16, %v2515_v58 }
 0x468   :  { %v2486_v15 = vpop.permute.xlu0 %2485 }
 0x469   :  { %v2492_v0 = vpop.permute.xlu1 %2491  ;;  %v2516_v48 = vsel %vm393_vm7, %v2478_v24, %v2486_v15 }
 0x46a   :  { %2808 = vrot.lane.b32.xlu0 %v8905_v28, %s5108_s14  ;;  %v2511_v1 = vsel %vm393_vm7, %v2484_v49, %v2492_v0  ;;  %v2550_v63 = vmul.f32 %v2529_v16, %v2516_v48 }
 0x46b   :  { %2814 = vrot.lane.b32.xlu1 %v8906_v39, %s5108_s14  ;;  %v2547_v29 = vmul.f32 %v2533_v6, %v2511_v1 }
 0x46c   :  { %v2494_v27 = vpop.permute.xlu0 %2493  ;;  %v4673_v7 = vpack.c.bf16 %v2550_v63, %v2546_v51 }
 0x46d   :  { %v2500_v59 = vpop.permute.xlu1 %2499  ;;  %v2512_v21 = vsel %vm393_vm7, %v2486_v15, %v2494_v27 }
 0x46e   :  { %v2551_v61 = vmul.f32 %v2533_v6, %v2512_v21  ;;  %v2507_v5 = vsel %vm393_vm7, %v2492_v0, %v2500_v59  ;;  %2816 = vrot.lane.b32.xlu0 %v8911_v41, %s5108_s14  ;;  %v2519_v50 = vsel %vm393_vm7, %v2500_v59, %v2476_v25 }
 0x46f   :  { %2890 = vrot.lane.b32.xlu1 %v8912_v18, %s5109_s26  ;;  %v2548_v30 = vmul.f32 %v2537_v52, %v2507_v5  ;;  %v2549_v3 = vmul.f32 %v2541_v53, %v2519_v50 }
 0x470   :  { %v2502_v47 = vpop.permute.xlu0 %2501  ;;  %v4671_v62 = vpack.c.bf16 %v2551_v61, %v2547_v29 }
 0x471   :  { %v2480_v19 = vpop.permute.xlu1 %2479  ;;  %v2508_v40 = vsel %vm393_vm7, %v2494_v27, %v2502_v47  ;;  %v2520_v10 = vsel %vm393_vm7, %v2502_v47, %v2478_v24 }
 0x472   :  { %v2552_v54 = vmul.f32 %v2537_v52, %v2508_v40  ;;  %v2553_v36 = vmul.f32 %v2541_v53, %v2520_v10  ;;  %2892 = vrot.lane.b32.xlu0 %v8914_v4, %s5109_s26  ;;  %4672 = vmatprep.subr.bf16.mxu0 %v4671_v62 }
 0x473   :  { %2898 = vrot.lane.b32.xlu1 %v8915_v32, %s5109_s26  ;;  %4674 = vmatpush1.bf16.msra.mxu0 %v4673_v7 }
 0x474   :  { %v4873_v46 = vpack.c.bf16 %v2552_v54, %v2548_v30  ;;  %v2482_v25 = vpop.permute.xlu0 %2481  ;;  %v4871_v22 = vpack.c.bf16 %v2553_v36, %v2549_v3 }
 0x475   :  { %v2488_v17 = vpop.permute.xlu1 %2487 }
 0x476   :  { %2900 = vrot.lane.b32.xlu0 %v5569_v43, %s5109_s26  ;;  %4872 = vmatprep.subr.bf16.mxu1 %v4871_v22  ;;  %v2517_v37 = vsel %vm393_vm7, %v2480_v19, %v2488_v17 }
 0x477   :  { %2906 = vrot.lane.b32.xlu1 %v5452_v23, %s5109_s26  ;;  %4874 = vmatpush1.bf16.msra.mxu1 %v4873_v46  ;;  %v2554_v0 = vmul.f32 %v2529_v16, %v2517_v37 }
 0x478   :  { %v2490_v34 = vpop.permute.xlu0 %2489 }
 0x479   :  { %v2496_v20 = vpop.permute.xlu1 %2495  ;;  %v2518_v56 = vsel %vm393_vm7, %v2482_v25, %v2490_v34 }
 0x47a   :  { %2908 = vrot.lane.b32.xlu0 %v5474_v33, %s5109_s26  ;;  %v2513_v2 = vsel %vm393_vm7, %v2488_v17, %v2496_v20  ;;  %v2558_v24 = vmul.f32 %v2529_v16, %v2518_v56 }
 0x47b   :  { %2914 = vrot.lane.b32.xlu1 %v5567_v42, %s5109_s26  ;;  %v2555_v55 = vmul.f32 %v2533_v6, %v2513_v2 }
 0x47c   :  { %v2498_v38 = vpop.permute.xlu0 %2497  ;;  %v4677_v59 = vpack.c.bf16 %v2558_v24, %v2554_v0 }
 0x47d   :  { %v2504_v26 = vpop.permute.xlu1 %2503  ;;  %v2514_v49 = vsel %vm393_vm7, %v2490_v34, %v2498_v38 }
 0x47e   :  { %v2559_v60 = vmul.f32 %v2533_v6, %v2514_v49  ;;  %v2509_v15 = vsel %vm393_vm7, %v2496_v20, %v2504_v26  ;;  %2916 = vrot.lane.b32.xlu0 %v5577_v45, %s5109_s26  ;;  %v2521_v48 = vsel %vm393_vm7, %v2504_v26, %v2480_v19 }
 0x47f   :  { %2894 = vrot.lane.b32.xlu1 %v8701_v57, %s5109_s26  ;;  %v2556_v63 = vmul.f32 %v2537_v52, %v2509_v15  ;;  %v2557_v29 = vmul.f32 %v2541_v53, %v2521_v48 }
 0x480   :  { %v2506_v1 = vpop.permute.xlu0 %2505  ;;  %v4675_v27 = vpack.c.bf16 %v2559_v60, %v2555_v55 }
 0x481   :  { %v2579_v58 = vpop.permute.xlu1 %2578  ;;  %v2510_v6 = vsel %vm393_vm7, %v2498_v38, %v2506_v1  ;;  %v2522_v21 = vsel %vm393_vm7, %v2506_v1, %v2482_v25  ;;  %vm3026_vm7 = vcmp.lt.s32.totalorder %v5304_v14, 95  ;;  %v3215_v14 = vld [vmem:[%s8382_s5 + $0x68] sm:$0x7f] }
 0x482   :  { %v2560_v61 = vmul.f32 %v2537_v52, %v2510_v6  ;;  %v2561_v5 = vmul.f32 %v2541_v53, %v2522_v21  ;;  %2896 = vrot.lane.b32.xlu0 %v8798_v13, %s5109_s26  ;;  %4676 = vmatprep.subr.bf16.mxu0 %v4675_v27  ;;  %v4479_v52 = vld [vmem:[%s8381_s4 + $0x43] ss:$8 sm:$0xf] }
 0x483   :  { %2902 = vrot.lane.b32.xlu1 %v8799_v12, %s5109_s26  ;;  %4678 = vmatpush1.bf16.msra.mxu0 %v4677_v59  ;;  %v2637_v7 = vrot.slane %v4479_v52, %v8916_v31  ;;  %v2633_v30 = vrot.slane %v4479_v52, %v8907_v8  ;;  %v2641_v25 = vrot.slane %v4479_v52, %v8917_v11 }
 0x484   :  { %v4877_v16 = vpack.c.bf16 %v2560_v61, %v2556_v63  ;;  %v2581_v51 = vpop.permute.xlu0 %2580  ;;  %v4875_v47 = vpack.c.bf16 %v2561_v5, %v2557_v29  ;;  %v2645_v17 = vrot.slane %v4479_v52, %v8910_v44 }
 0x485   :  { %v2587_v50 = vpop.permute.xlu1 %2586 }
 0x486   :  { %2904 = vrot.lane.b32.xlu0 %v8812_v9, %s5109_s26  ;;  %4876 = vmatprep.subr.bf16.mxu1 %v4875_v47  ;;  %v2619_v10 = vsel %vm2610_vm3, %v2579_v58, %v2587_v50 }
 0x487   :  { %2910 = vrot.lane.b32.xlu1 %v8813_v35, %s5109_s26  ;;  %4878 = vmatpush1.bf16.msra.mxu1 %v4877_v16  ;;  %v2650_v56 = vmul.f32 %v2633_v30, %v2619_v10 }
 0x488   :  { %v2589_v53 = vpop.permute.xlu0 %2588 }
 0x489   :  { %v2595_v19 = vpop.permute.xlu1 %2594  ;;  %v2620_v62 = vsel %vm2610_vm3, %v2581_v51, %v2589_v53 }
 0x48a   :  { %2912 = vrot.lane.b32.xlu0 %v8905_v28, %s5109_s26  ;;  %v2615_v40 = vsel %vm2610_vm3, %v2587_v50, %v2595_v19  ;;  %v2654_v36 = vmul.f32 %v2633_v30, %v2620_v62 }
 0x48b   :  { %2918 = vrot.lane.b32.xlu1 %v8906_v39, %s5109_s26  ;;  %v2651_v22 = vmul.f32 %v2637_v7, %v2615_v40 }
 0x48c   :  { %v2597_v3 = vpop.permute.xlu0 %2596  ;;  %v4681_v24 = vpack.c.bf16 %v2654_v36, %v2650_v56 }
 0x48d   :  { %v2603_v54 = vpop.permute.xlu1 %2602  ;;  %v2616_v46 = vsel %vm2610_vm3, %v2589_v53, %v2597_v3 }
 0x48e   :  { %v2655_v34 = vmul.f32 %v2637_v7, %v2616_v46  ;;  %v2611_v20 = vsel %vm2610_vm3, %v2595_v19, %v2603_v54  ;;  %2920 = vrot.lane.b32.xlu0 %v8911_v41, %s5109_s26  ;;  %v2623_v2 = vsel %vm2610_vm3, %v2603_v54, %v2579_v58 }
 0x48f   :  { %2994 = vrot.lane.b32.xlu1 %v8912_v18, %s5110_s24  ;;  %v2652_v49 = vmul.f32 %v2641_v25, %v2611_v20  ;;  %v2653_v15 = vmul.f32 %v2645_v17, %v2623_v2 }
 0x490   :  { %v2605_v37 = vpop.permute.xlu0 %2604  ;;  %v4679_v26 = vpack.c.bf16 %v2655_v34, %v2651_v22 }
 0x491   :  { %v2583_v38 = vpop.permute.xlu1 %2582  ;;  %v2612_v55 = vsel %vm2610_vm3, %v2597_v3, %v2605_v37  ;;  %v2624_v60 = vsel %vm2610_vm3, %v2605_v37, %v2581_v51 }
 0x492   :  { %v2656_v0 = vmul.f32 %v2641_v25, %v2612_v55  ;;  %v2657_v48 = vmul.f32 %v2645_v17, %v2624_v60  ;;  %2996 = vrot.lane.b32.xlu0 %v8914_v4, %s5110_s24  ;;  %4680 = vmatprep.subr.bf16.mxu0 %v4679_v26 }
 0x493   :  { %3002 = vrot.lane.b32.xlu1 %v8915_v32, %s5110_s24  ;;  %4682 = vmatpush1.bf16.msra.mxu0 %v4681_v24 }
 0x494   :  { %v4881_v1 = vpack.c.bf16 %v2656_v0, %v2652_v49  ;;  %v2585_v58 = vpop.permute.xlu0 %2584  ;;  %v4879_v59 = vpack.c.bf16 %v2657_v48, %v2653_v15 }
 0x495   :  { %v2591_v27 = vpop.permute.xlu1 %2590 }
 0x496   :  { %3004 = vrot.lane.b32.xlu0 %v5569_v43, %s5110_s24  ;;  %4880 = vmatprep.subr.bf16.mxu1 %v4879_v59  ;;  %v2621_v61 = vsel %vm2610_vm3, %v2583_v38, %v2591_v27 }
 0x497   :  { %3010 = vrot.lane.b32.xlu1 %v5452_v23, %s5110_s24  ;;  %4882 = vmatpush1.bf16.msra.mxu1 %v4881_v1  ;;  %v2658_v19 = vmul.f32 %v2633_v30, %v2621_v61 }
 0x498   :  { %v2593_v63 = vpop.permute.xlu0 %2592 }
 0x499   :  { %v2599_v6 = vpop.permute.xlu1 %2598  ;;  %v2622_v21 = vsel %vm2610_vm3, %v2585_v58, %v2593_v63 }
 0x49a   :  { %3012 = vrot.lane.b32.xlu0 %v5474_v33, %s5110_s24  ;;  %v2617_v29 = vsel %vm2610_vm3, %v2591_v27, %v2599_v6  ;;  %v2662_v51 = vmul.f32 %v2633_v30, %v2622_v21  ;;  %v3212_v21 = vld [vmem:[%s8382_s5 + $0x50] sm:$0x7f] }
 0x49b   :  { %3018 = vrot.lane.b32.xlu1 %v5567_v42, %s5110_s24  ;;  %v2659_v47 = vmul.f32 %v2637_v7, %v2617_v29  ;;  %v3211_v29 = vld [vmem:[%s8382_s5 + $0x48] sm:$0x7f]  ;;  %3782 = vmatprep.mubr.f32.mxu0 %v3212_v21 }
 0x49c   :  { %v2601_v5 = vpop.permute.xlu0 %2600  ;;  %v4685_v54 = vpack.c.bf16 %v2662_v51, %v2658_v19  ;;  %4090 = vmatprep.mubr.f32.mxu1 %v3212_v21  ;;  %3783 = vmatmul.mubr.f32.gmra.mrb[10].mxu0 %v3211_v29 }
 0x49d   :  { %v2607_v16 = vpop.permute.xlu1 %2606  ;;  %v2618_v50 = vsel %vm2610_vm3, %v2593_v63, %v2601_v5  ;;  %4091 = vmatmul.mubr.f32.gmra.mrb[10].mxu1 %v3211_v29 }
 0x49e   :  { %v2663_v52 = vmul.f32 %v2637_v7, %v2618_v50  ;;  %v2613_v53 = vsel %vm2610_vm3, %v2599_v6, %v2607_v16  ;;  %3020 = vrot.lane.b32.xlu0 %v5577_v45, %s5110_s24  ;;  %v2625_v62 = vsel %vm2610_vm3, %v2607_v16, %v2583_v38 }
 0x49f   :  { %2998 = vrot.lane.b32.xlu1 %v8701_v57, %s5110_s24  ;;  %v2660_v36 = vmul.f32 %v2641_v25, %v2613_v53  ;;  %v2661_v22 = vmul.f32 %v2645_v17, %v2625_v62 }
 0x4a0   :  { %v2609_v40 = vpop.permute.xlu0 %2608  ;;  %v4683_v3 = vpack.c.bf16 %v2663_v52, %v2659_v47 }
 0x4a1   :  { %v2683_v10 = vpop.permute.xlu1 %2682  ;;  %v2614_v7 = vsel %vm2610_vm3, %v2601_v5, %v2609_v40  ;;  %v2626_v46 = vsel %vm2610_vm3, %v2609_v40, %v2585_v58 }
 0x4a2   :  { %v2664_v34 = vmul.f32 %v2641_v25, %v2614_v7  ;;  %v2665_v20 = vmul.f32 %v2645_v17, %v2626_v46  ;;  %3000 = vrot.lane.b32.xlu0 %v8798_v13, %s5110_s24  ;;  %4684 = vmatprep.subr.bf16.mxu0 %v4683_v3  ;;  %v4480_v25 = vld [vmem:[%s8381_s4 + $0x44] ss:$8 sm:$0xf] }
 0x4a3   :  { %3006 = vrot.lane.b32.xlu1 %v8799_v12, %s5110_s24  ;;  %4686 = vmatpush1.bf16.msra.mxu0 %v4685_v54  ;;  %v8068_v24 = vrot.slane %v4480_v25, %v8916_v31  ;;  %v8075_v49 = vrot.slane %v4480_v25, %v8907_v8  ;;  %v8085_v58 = vrot.slane %v4480_v25, %v8917_v11 }
 0x4a4   :  { %v4885_v30 = vpack.c.bf16 %v2664_v34, %v2660_v36  ;;  %v2685_v56 = vpop.permute.xlu0 %2684  ;;  %v4883_v37 = vpack.c.bf16 %v2665_v20, %v2661_v22  ;;  %v8088_v27 = vrot.slane %v4480_v25, %v8910_v44 }
 0x4a5   :  { %v2691_v2 = vpop.permute.xlu1 %2690 }
 0x4a6   :  { %3008 = vrot.lane.b32.xlu0 %v8812_v9, %s5110_s24  ;;  %4884 = vmatprep.subr.bf16.mxu1 %v4883_v37  ;;  %v2723_v60 = vsel %vm2714_vm4, %v2683_v10, %v2691_v2 }
 0x4a7   :  { %3014 = vrot.lane.b32.xlu1 %v8813_v35, %s5110_s24  ;;  %4886 = vmatpush1.bf16.msra.mxu1 %v4885_v30  ;;  %v2754_v61 = vmul.f32 %v8075_v49, %v2723_v60 }
 0x4a8   :  { %v2693_v17 = vpop.permute.xlu0 %2692 }
 0x4a9   :  { %v2699_v38 = vpop.permute.xlu1 %2698  ;;  %v2724_v26 = vsel %vm2714_vm4, %v2685_v56, %v2693_v17 }
 0x4aa   :  { %3016 = vrot.lane.b32.xlu0 %v8905_v28, %s5110_s24  ;;  %v2719_v55 = vsel %vm2714_vm4, %v2691_v2, %v2699_v38  ;;  %v2758_v48 = vmul.f32 %v8075_v49, %v2724_v26 }
 0x4ab   :  { %3022 = vrot.lane.b32.xlu1 %v8906_v39, %s5110_s24  ;;  %v2755_v59 = vmul.f32 %v8068_v24, %v2719_v55 }
 0x4ac   :  { %v2701_v15 = vpop.permute.xlu0 %2700 }
 0x4ad   :  { %v2707_v0 = vpop.permute.xlu1 %2706  ;;  %v2720_v1 = vsel %vm2714_vm4, %v2693_v17, %v2701_v15 }
 0x4ae   :  { %v2759_v63 = vmul.f32 %v8068_v24, %v2720_v1  ;;  %v2715_v6 = vsel %vm2714_vm4, %v2699_v38, %v2707_v0  ;;  %3024 = vrot.lane.b32.xlu0 %v8911_v41, %s5110_s24  ;;  %v2727_v5 = vsel %vm2714_vm4, %v2707_v0, %v2683_v10  ;;  %v3207_v10 = vld [vmem:[%s8382_s5 + $0x28] sm:$0xff] }
 0x4af   :  { %3098 = vrot.lane.b32.xlu1 %v8912_v18, %s5111_s29  ;;  %v4689_v18 = vpack.c.bf16 %v2758_v48, %v2754_v61  ;;  %v2756_v47 = vmul.f32 %v8085_v58, %v2715_v6  ;;  %v2757_v19 = vmul.f32 %v8088_v27, %v2727_v5  ;;  %3853 = vmatprep.mubr.f32.mxu0 %v3207_v10 }
 0x4b0   :  { %v2709_v16 = vpop.permute.xlu0 %2708  ;;  %v4687_v50 = vpack.c.bf16 %v2759_v63, %v2755_v59  ;;  %4161 = vmatprep.mubr.f32.mxu1 %v3207_v10  ;;  %v3616_v63 = vld [vmem:[#allocation7] sm:$0xff] }
 0x4b1   :  { %v2687_v51 = vpop.permute.xlu1 %2686  ;;  %v2716_v52 = vsel %vm2714_vm4, %v2701_v15, %v2709_v16  ;;  %v2728_v53 = vsel %vm2714_vm4, %v2709_v16, %v2685_v56 }
 0x4b2   :  { %v2760_v62 = vmul.f32 %v8085_v58, %v2716_v52  ;;  %v2761_v40 = vmul.f32 %v8088_v27, %v2728_v53  ;;  %3100 = vrot.lane.b32.xlu0 %v8914_v4, %s5111_s29  ;;  %4688 = vmatprep.subr.bf16.mxu0 %v4687_v50  ;;  %v3617_v52 = vld [vmem:[#allocation7 + $0x8] sm:$0x7f]  ;;  %v4260_v53 = vld [vmem:[%s8385_s8] sm:$0xf] }
 0x4b3   :  { %3106 = vrot.lane.b32.xlu1 %v8915_v32, %s5111_s29  ;;  %4690 = vmatpush1.bf16.msra.mxu0 %v4689_v18 }
 0x4b4   :  { %v4889_v3 = vpack.c.bf16 %v2760_v62, %v2756_v47  ;;  %v2689_v54 = vpop.permute.xlu0 %2688  ;;  %v4887_v7 = vpack.c.bf16 %v2761_v40, %v2757_v19 }
 0x4b5   :  { %v2695_v36 = vpop.permute.xlu1 %2694 }
 0x4b6   :  { %3108 = vrot.lane.b32.xlu0 %v5569_v43, %s5111_s29  ;;  %4888 = vmatprep.subr.bf16.mxu1 %v4887_v7  ;;  %v2725_v43 = vsel %vm2714_vm4, %v2687_v51, %v2695_v36 }
 0x4b7   :  { %3114 = vrot.lane.b32.xlu1 %v5452_v23, %s5111_s29  ;;  %4890 = vmatpush1.bf16.msra.mxu1 %v4889_v3  ;;  %v2762_v2 = vmul.f32 %v8075_v49, %v2725_v43 }
 0x4b8   :  { %v2697_v4 = vpop.permute.xlu0 %2696 }
 0x4b9   :  { %v2703_v32 = vpop.permute.xlu1 %2702  ;;  %v2726_v46 = vsel %vm2714_vm4, %v2689_v54, %v2697_v4 }
 0x4ba   :  { %3116 = vrot.lane.b32.xlu0 %v5474_v33, %s5111_s29  ;;  %v2721_v22 = vsel %vm2714_vm4, %v2695_v36, %v2703_v32  ;;  %v2766_v20 = vmul.f32 %v8075_v49, %v2726_v46 }
 0x4bb   :  { %3122 = vrot.lane.b32.xlu1 %v5567_v42, %s5111_s29  ;;  %v2763_v56 = vmul.f32 %v8068_v24, %v2721_v22 }
 0x4bc   :  { %v2705_v23 = vpop.permute.xlu0 %2704  ;;  %v4693_v26 = vpack.c.bf16 %v2766_v20, %v2762_v2 }
 0x4bd   :  { %v2711_v34 = vpop.permute.xlu1 %2710  ;;  %v2722_v30 = vsel %vm2714_vm4, %v2697_v4, %v2705_v23 }
 0x4be   :  { %v2767_v33 = vmul.f32 %v8068_v24, %v2722_v30  ;;  %v2717_v42 = vsel %vm2714_vm4, %v2703_v32, %v2711_v34  ;;  %3124 = vrot.lane.b32.xlu0 %v5577_v45, %s5111_s29  ;;  %v2729_v37 = vsel %vm2714_vm4, %v2711_v34, %v2687_v51 }
 0x4bf   :  { %3102 = vrot.lane.b32.xlu1 %v8701_v57, %s5111_s29  ;;  %v2764_v24 = vmul.f32 %v8085_v58, %v2717_v42  ;;  %v2765_v60 = vmul.f32 %v8088_v27, %v2729_v37 }
 0x4c0   :  { %v2713_v25 = vpop.permute.xlu0 %2712  ;;  %v4691_v38 = vpack.c.bf16 %v2767_v33, %v2763_v56 }
 0x4c1   :  { %v2787_v17 = vpop.permute.xlu1 %2786  ;;  %v2718_v55 = vsel %vm2714_vm4, %v2705_v23, %v2713_v25  ;;  %v2730_v45 = vsel %vm2714_vm4, %v2713_v25, %v2689_v54 }
 0x4c2   :  { %v2768_v57 = vmul.f32 %v8085_v58, %v2718_v55  ;;  %v2769_v49 = vmul.f32 %v8088_v27, %v2730_v45  ;;  %3104 = vrot.lane.b32.xlu0 %v8798_v13, %s5111_s29  ;;  %4692 = vmatprep.subr.bf16.mxu0 %v4691_v38  ;;  %v4481_v13 = vld [vmem:[%s8381_s4 + $0x45] ss:$8 sm:$0xf] }
 0x4c3   :  { %3110 = vrot.lane.b32.xlu1 %v8799_v12, %s5111_s29  ;;  %4694 = vmatpush1.bf16.msra.mxu0 %v4693_v26  ;;  %v2845_v59 = vrot.slane %v4481_v13, %v8916_v31  ;;  %v2853_v16 = vrot.slane %v4481_v13, %v8910_v44 }
 0x4c4   :  { %v4893_v15 = vpack.c.bf16 %v2768_v57, %v2764_v24  ;;  %v2789_v0 = vpop.permute.xlu0 %2788  ;;  %v4891_v1 = vpack.c.bf16 %v2769_v49, %v2765_v60 }
 0x4c5   :  { %v2795_v48 = vpop.permute.xlu1 %2794 }
 0x4c6   :  { %3112 = vrot.lane.b32.xlu0 %v8812_v9, %s5111_s29  ;;  %4892 = vmatprep.subr.bf16.mxu1 %v4891_v1  ;;  %v2841_v9 = vrot.slane %v4481_v13, %v8907_v8  ;;  %v2827_v6 = vsel %vm2818_vm5, %v2787_v17, %v2795_v48 }
 0x4c7   :  { %3118 = vrot.lane.b32.xlu1 %v8813_v35, %s5111_s29  ;;  %4894 = vmatpush1.bf16.msra.mxu1 %v4893_v15 }
 0x4c8   :  { %v2797_v58 = vpop.permute.xlu0 %2796  ;;  %v2858_v18 = vmul.f32 %v2841_v9, %v2827_v6 }
 0x4c9   :  { %v2803_v12 = vpop.permute.xlu1 %2802  ;;  %v2828_v27 = vsel %vm2818_vm5, %v2789_v0, %v2797_v58 }
 0x4ca   :  { %3120 = vrot.lane.b32.xlu0 %v8905_v28, %s5111_s29  ;;  %v2823_v35 = vsel %vm2818_vm5, %v2795_v48, %v2803_v12  ;;  %v2862_v61 = vmul.f32 %v2841_v9, %v2828_v27  ;;  %v2849_v28 = vrot.slane %v4481_v13, %v8917_v11 }
 0x4cb   :  { %3126 = vrot.lane.b32.xlu1 %v8906_v39, %s5111_s29  ;;  %v2859_v39 = vmul.f32 %v2845_v59, %v2823_v35 }
 0x4cc   :  { %v2805_v21 = vpop.permute.xlu0 %2804  ;;  %v4697_v10 = vpack.c.bf16 %v2862_v61, %v2858_v18 }
 0x4cd   :  { %v2811_v29 = vpop.permute.xlu1 %2810  ;;  %v2824_v5 = vsel %vm2818_vm5, %v2797_v58, %v2805_v21 }
 0x4ce   :  { %v2863_v51 = vmul.f32 %v2845_v59, %v2824_v5  ;;  %v2819_v50 = vsel %vm2818_vm5, %v2803_v12, %v2811_v29  ;;  %3128 = vrot.lane.b32.xlu0 %v8911_v41, %s5111_s29  ;;  %v2831_v47 = vsel %vm2818_vm5, %v2811_v29, %v2787_v17 }
 0x4cf   :  { %3620 = vperm.xlu1 %5005, %v3616_v63   ;;  %v2860_v3 = vmul.f32 %v2849_v28, %v2819_v50  ;;  %v2861_v36 = vmul.f32 %v2853_v16, %v2831_v47 }
 0x4d0   :  { %v2813_v19 = vpop.permute.xlu0 %2812  ;;  %v4695_v40 = vpack.c.bf16 %v2863_v51, %v2859_v39 }
 0x4d1   :  { %v2791_v62 = vpop.permute.xlu1 %2790  ;;  %v2820_v54 = vsel %vm2818_vm5, %v2805_v21, %v2813_v19  ;;  %v2832_v41 = vsel %vm2818_vm5, %v2813_v19, %v2789_v0 }
 0x4d2   :  { %v2864_v7 = vmul.f32 %v2849_v28, %v2820_v54  ;;  %v2865_v4 = vmul.f32 %v2853_v16, %v2832_v41  ;;  %3625 = vperm.xlu0 %5004, %v3617_v52   ;;  %4696 = vmatprep.subr.bf16.mxu0 %v4695_v40 }
 0x4d3   :  { %4263 = vperm.xlu1 %5005, %v4260_v53   ;;  %4698 = vmatpush1.bf16.msra.mxu0 %v4697_v10 }
 0x4d4   :  { %v4897_v32 = vpack.c.bf16 %v2864_v7, %v2860_v3  ;;  %v2793_v46 = vpop.permute.xlu0 %2792  ;;  %v4895_v43 = vpack.c.bf16 %v2865_v4, %v2861_v36 }
 0x4d5   :  { %v2799_v22 = vpop.permute.xlu1 %2798 }
 0x4d6   :  { %4896 = vmatprep.subr.bf16.mxu1 %v4895_v43  ;;  %v2829_v56 = vsel %vm2818_vm5, %v2791_v62, %v2799_v22 }
 0x4d7   :  { %4898 = vmatpush1.bf16.msra.mxu1 %v4897_v32  ;;  %v2866_v38 = vmul.f32 %v2841_v9, %v2829_v56 }
 0x4d8   :  { %v2801_v23 = vpop.permute.xlu0 %2800 }
 0x4d9   :  { %v2807_v34 = vpop.permute.xlu1 %2806  ;;  %v2830_v20 = vsel %vm2818_vm5, %v2793_v46, %v2801_v23 }
 0x4da   :  { %v2825_v30 = vsel %vm2818_vm5, %v2799_v22, %v2807_v34  ;;  %v2870_v2 = vmul.f32 %v2841_v9, %v2830_v20  ;;  %v4482_v9 = vld [vmem:[%s8381_s4 + $0x46] ss:$8 sm:$0xf] }
 0x4db   :  { %v2867_v25 = vmul.f32 %v2845_v59, %v2825_v30  ;;  %v2949_v21 = vrot.slane %v4482_v9, %v8916_v31  ;;  %v2945_v29 = vrot.slane %v4482_v9, %v8907_v8  ;;  %v2953_v47 = vrot.slane %v4482_v9, %v8917_v11 }
 0x4dc   :  { %v2809_v33 = vpop.permute.xlu0 %2808  ;;  %v4701_v57 = vpack.c.bf16 %v2870_v2, %v2866_v38  ;;  %v2957_v52 = vrot.slane %v4482_v9, %v8910_v44 }
 0x4dd   :  { %v2815_v42 = vpop.permute.xlu1 %2814  ;;  %v2826_v37 = vsel %vm2818_vm5, %v2801_v23, %v2809_v33 }
 0x4de   :  { %v2871_v17 = vmul.f32 %v2845_v59, %v2826_v37  ;;  %v2821_v26 = vsel %vm2818_vm5, %v2807_v34, %v2815_v42  ;;  %v2833_v24 = vsel %vm2818_vm5, %v2815_v42, %v2791_v62 }
 0x4df   :  { %v2868_v0 = vmul.f32 %v2849_v28, %v2821_v26  ;;  %v2869_v48 = vmul.f32 %v2853_v16, %v2833_v24 }
 0x4e0   :  { %v2817_v55 = vpop.permute.xlu0 %2816  ;;  %v4699_v60 = vpack.c.bf16 %v2871_v17, %v2867_v25 }
 0x4e1   :  { %v2891_v45 = vpop.permute.xlu1 %2890  ;;  %v2822_v49 = vsel %vm2818_vm5, %v2809_v33, %v2817_v55  ;;  %v2834_v15 = vsel %vm2818_vm5, %v2817_v55, %v2793_v46 }
 0x4e2   :  { %v2872_v1 = vmul.f32 %v2849_v28, %v2822_v49  ;;  %v2873_v13 = vmul.f32 %v2853_v16, %v2834_v15  ;;  %4700 = vmatprep.subr.bf16.mxu0 %v4699_v60 }
 0x4e3   :  { %4702 = vmatpush1.bf16.msra.mxu0 %v4701_v57 }
 0x4e4   :  { %v4901_v58 = vpack.c.bf16 %v2872_v1, %v2868_v0  ;;  %v2893_v12 = vpop.permute.xlu0 %2892  ;;  %v4899_v59 = vpack.c.bf16 %v2873_v13, %v2869_v48 }
 0x4e5   :  { %v2899_v27 = vpop.permute.xlu1 %2898 }
 0x4e6   :  { %4900 = vmatprep.subr.bf16.mxu1 %v4899_v59  ;;  %v2931_v5 = vsel %vm2922_vm6, %v2891_v45, %v2899_v27 }
 0x4e7   :  { %4902 = vmatpush1.bf16.msra.mxu1 %v4901_v58  ;;  %v2962_v53 = vmul.f32 %v2945_v29, %v2931_v5 }
 0x4e8   :  { %v2901_v35 = vpop.permute.xlu0 %2900 }
 0x4e9   :  { %v2907_v63 = vpop.permute.xlu1 %2906  ;;  %v2932_v6 = vsel %vm2922_vm6, %v2893_v12, %v2901_v35 }
 0x4ea   :  { %v2927_v61 = vsel %vm2922_vm6, %v2899_v27, %v2907_v63  ;;  %v2966_v39 = vmul.f32 %v2945_v29, %v2932_v6 }
 0x4eb   :  { %v2963_v50 = vmul.f32 %v2949_v21, %v2927_v61 }
 0x4ec   :  { %v2909_v28 = vpop.permute.xlu0 %2908  ;;  %v4705_v54 = vpack.c.bf16 %v2966_v39, %v2962_v53 }
 0x4ed   :  { %v2915_v16 = vpop.permute.xlu1 %2914  ;;  %v2928_v51 = vsel %vm2922_vm6, %v2901_v35, %v2909_v28 }
 0x4ee   :  { %v2967_v18 = vmul.f32 %v2949_v21, %v2928_v51  ;;  %v2923_v19 = vsel %vm2922_vm6, %v2907_v63, %v2915_v16  ;;  %v2935_v62 = vsel %vm2922_vm6, %v2915_v16, %v2891_v45  ;;  %v4483_v63 = vld [vmem:[%s8381_s4 + $0x47] ss:$8 sm:$0xf] }
 0x4ef   :  { %v2964_v7 = vmul.f32 %v2953_v47, %v2923_v19  ;;  %v2965_v4 = vmul.f32 %v2957_v52, %v2935_v62  ;;  %v3053_v61 = vrot.slane %v4483_v63, %v8916_v31  ;;  %v3049_v5 = vrot.slane %v4483_v63, %v8907_v8 }
 0x4f0   :  { %v2917_v40 = vpop.permute.xlu0 %2916  ;;  %v4703_v3 = vpack.c.bf16 %v2967_v18, %v2963_v50  ;;  %v3057_v53 = vrot.slane %v4483_v63, %v8917_v11  ;;  %v3061_v19 = vrot.slane %v4483_v63, %v8910_v44 }
 0x4f1   :  { %v2895_v10 = vpop.permute.xlu1 %2894  ;;  %v2924_v41 = vsel %vm2922_vm6, %v2909_v28, %v2917_v40  ;;  %v2936_v36 = vsel %vm2922_vm6, %v2917_v40, %v2893_v12 }
 0x4f2   :  { %v2968_v32 = vmul.f32 %v2953_v47, %v2924_v41  ;;  %v2969_v46 = vmul.f32 %v2957_v52, %v2936_v36  ;;  %4704 = vmatprep.subr.bf16.mxu0 %v4703_v3 }
 0x4f3   :  { %4706 = vmatpush1.bf16.msra.mxu0 %v4705_v54 }
 0x4f4   :  { %v4905_v22 = vpack.c.bf16 %v2968_v32, %v2964_v7  ;;  %v2897_v43 = vpop.permute.xlu0 %2896  ;;  %v4903_v34 = vpack.c.bf16 %v2969_v46, %v2965_v4 }
 0x4f5   :  { %v2903_v23 = vpop.permute.xlu1 %2902 }
 0x4f6   :  { %4904 = vmatprep.subr.bf16.mxu1 %v4903_v34  ;;  %v2933_v42 = vsel %vm2922_vm6, %v2895_v10, %v2903_v23 }
 0x4f7   :  { %4906 = vmatpush1.bf16.msra.mxu1 %v4905_v22  ;;  %v2970_v24 = vmul.f32 %v2945_v29, %v2933_v42 }
 0x4f8   :  { %v2905_v20 = vpop.permute.xlu0 %2904 }
 0x4f9   :  { %v2911_v30 = vpop.permute.xlu1 %2910  ;;  %v2934_v56 = vsel %vm2922_vm6, %v2897_v43, %v2905_v20 }
 0x4fa   :  { %v2929_v33 = vsel %vm2922_vm6, %v2903_v23, %v2911_v30  ;;  %v2974_v25 = vmul.f32 %v2945_v29, %v2934_v56 }
 0x4fb   :  { %v2971_v38 = vmul.f32 %v2949_v21, %v2929_v33 }
 0x4fc   :  { %v2913_v2 = vpop.permute.xlu0 %2912  ;;  %v4709_v15 = vpack.c.bf16 %v2974_v25, %v2970_v24 }
 0x4fd   :  { %v2919_v37 = vpop.permute.xlu1 %2918  ;;  %v2930_v17 = vsel %vm2922_vm6, %v2905_v20, %v2913_v2 }
 0x4fe   :  { %v2975_v26 = vmul.f32 %v2949_v21, %v2930_v17  ;;  %v2925_v55 = vsel %vm2922_vm6, %v2911_v30, %v2919_v37  ;;  %v2937_v45 = vsel %vm2922_vm6, %v2919_v37, %v2895_v10 }
 0x4ff   :  { %v2972_v1 = vmul.f32 %v2953_v47, %v2925_v55  ;;  %v2973_v13 = vmul.f32 %v2957_v52, %v2937_v45 }
 0x500   :  { %v2921_v60 = vpop.permute.xlu0 %2920  ;;  %v4707_v49 = vpack.c.bf16 %v2975_v26, %v2971_v38 }
 0x501   :  { %v2995_v57 = vpop.permute.xlu1 %2994  ;;  %v2926_v0 = vsel %vm2922_vm6, %v2913_v2, %v2921_v60  ;;  %v2938_v48 = vsel %vm2922_vm6, %v2921_v60, %v2897_v43 }
 0x502   :  { %v2976_v58 = vmul.f32 %v2953_v47, %v2926_v0  ;;  %v2977_v12 = vmul.f32 %v2957_v52, %v2938_v48  ;;  %4708 = vmatprep.subr.bf16.mxu0 %v4707_v49 }
 0x503   :  { %4710 = vmatpush1.bf16.msra.mxu0 %v4709_v15 }
 0x504   :  { %v4909_v27 = vpack.c.bf16 %v2976_v58, %v2972_v1  ;;  %v2997_v59 = vpop.permute.xlu0 %2996  ;;  %v4907_v35 = vpack.c.bf16 %v2977_v12, %v2973_v13 }
 0x505   :  { %v3003_v9 = vpop.permute.xlu1 %3002 }
 0x506   :  { %4908 = vmatprep.subr.bf16.mxu1 %v4907_v35  ;;  %v3035_v16 = vsel %vm3026_vm7, %v2995_v57, %v3003_v9 }
 0x507   :  { %4910 = vmatpush1.bf16.msra.mxu1 %v4909_v27  ;;  %v3066_v62 = vmul.f32 %v3049_v5, %v3035_v16 }
 0x508   :  { %v3005_v6 = vpop.permute.xlu0 %3004 }
 0x509   :  { %v3011_v21 = vpop.permute.xlu1 %3010  ;;  %v3036_v29 = vsel %vm3026_vm7, %v2997_v59, %v3005_v6 }
 0x50a   :  { %v3031_v28 = vsel %vm3026_vm7, %v3003_v9, %v3011_v21  ;;  %v3070_v50 = vmul.f32 %v3049_v5, %v3036_v29  ;;  %v3206_v9 = vld [vmem:[%s8382_s5 + $0x20] sm:$0xff] }
 0x50b   :  { %v3067_v47 = vmul.f32 %v3053_v61, %v3031_v28  ;;  %v3214_v29 = vld [vmem:[%s8382_s5 + $0x60] sm:$0x7f] }
 0x50c   :  { %v3013_v39 = vpop.permute.xlu0 %3012  ;;  %v4713_v36 = vpack.c.bf16 %v3070_v50, %v3066_v62 }
 0x50d   :  { %v3019_v51 = vpop.permute.xlu1 %3018  ;;  %v3032_v18 = vsel %vm3026_vm7, %v3005_v6, %v3013_v39 }
 0x50e   :  { %v3071_v52 = vmul.f32 %v3053_v61, %v3032_v18  ;;  %v3027_v40 = vsel %vm3026_vm7, %v3011_v21, %v3019_v51  ;;  %v3039_v10 = vsel %vm3026_vm7, %v3019_v51, %v2995_v57 }
 0x50f   :  { %v3068_v32 = vmul.f32 %v3057_v53, %v3027_v40  ;;  %v3069_v46 = vmul.f32 %v3061_v19, %v3039_v10 }
 0x510   :  { %v3021_v3 = vpop.permute.xlu0 %3020  ;;  %v4711_v41 = vpack.c.bf16 %v3071_v52, %v3067_v47  ;;  %v8918_v47 = vmov 0.0  }
 0x511   :  { %v2999_v54 = vpop.permute.xlu1 %2998  ;;  %v3028_v7 = vsel %vm3026_vm7, %v3013_v39, %v3021_v3  ;;  %v3040_v4 = vsel %vm3026_vm7, %v3021_v3, %v2997_v59 }
 0x512   :  { %v3072_v22 = vmul.f32 %v3057_v53, %v3028_v7  ;;  %v3073_v43 = vmul.f32 %v3061_v19, %v3040_v4  ;;  %4712 = vmatprep.subr.bf16.mxu0 %v4711_v41 }
 0x513   :  { %4714 = vmatpush1.bf16.msra.mxu0 %v4713_v36 }
 0x514   :  { %v4913_v23 = vpack.c.bf16 %v3072_v22, %v3068_v32  ;;  %v3001_v34 = vpop.permute.xlu0 %3000  ;;  %v4911_v30 = vpack.c.bf16 %v3073_v43, %v3069_v46 }
 0x515   :  { %v3007_v20 = vpop.permute.xlu1 %3006 }
 0x516   :  { %4912 = vmatprep.subr.bf16.mxu1 %v4911_v30  ;;  %v3037_v37 = vsel %vm3026_vm7, %v2999_v54, %v3007_v20 }
 0x517   :  { %4914 = vmatpush1.bf16.msra.mxu1 %v4913_v23  ;;  %v3074_v45 = vmul.f32 %v3049_v5, %v3037_v37 }
 0x518   :  { %v3009_v56 = vpop.permute.xlu0 %3008 }
 0x519   :  { %v3015_v33 = vpop.permute.xlu1 %3014  ;;  %v3038_v42 = vsel %vm3026_vm7, %v3001_v34, %v3009_v56 }
 0x51a   :  { %v3033_v2 = vsel %vm3026_vm7, %v3007_v20, %v3015_v33  ;;  %v3078_v38 = vmul.f32 %v3049_v5, %v3038_v42  ;;  %v4484_v5 = vld [vmem:[%s8381_s4 + $0x60] ss:$8 sm:$0xf] }
 0x51b   :  { %v3075_v24 = vmul.f32 %v3053_v61, %v3033_v2  ;;  %v3157_v51 = vrot.slane %v4484_v5, %v8916_v31  ;;  %v3153_v50 = vrot.slane %v4484_v5, %v8907_v8  ;;  %v3161_v3 = vrot.slane %v4484_v5, %v8917_v11 }
 0x51c   :  { %v3017_v25 = vpop.permute.xlu0 %3016  ;;  %v4717_v48 = vpack.c.bf16 %v3078_v38, %v3074_v45  ;;  %v3165_v8 = vrot.slane %v4484_v5, %v8910_v44 }
 0x51d   :  { %v3023_v17 = vpop.permute.xlu1 %3022  ;;  %v3034_v26 = vsel %vm3026_vm7, %v3009_v56, %v3017_v25 }
 0x51e   :  { %v3079_v55 = vmul.f32 %v3053_v61, %v3034_v26  ;;  %v3029_v60 = vsel %vm3026_vm7, %v3015_v33, %v3023_v17  ;;  %v3041_v57 = vsel %vm3026_vm7, %v3023_v17, %v2999_v54  ;;  %v3213_v61 = vld [vmem:[%s8382_s5 + $0x58] sm:$0x7f] }
 0x51f   :  { %v3076_v58 = vmul.f32 %v3057_v53, %v3029_v60  ;;  %v3077_v12 = vmul.f32 %v3061_v19, %v3041_v57 }
 0x520   :  { %v3025_v49 = vpop.permute.xlu0 %3024  ;;  %v4715_v0 = vpack.c.bf16 %v3079_v55, %v3075_v24 }
 0x521   :  { %v3099_v15 = vpop.permute.xlu1 %3098  ;;  %v3030_v1 = vsel %vm3026_vm7, %v3017_v25, %v3025_v49  ;;  %v3042_v13 = vsel %vm3026_vm7, %v3025_v49, %v3001_v34 }
 0x522   :  { %v3080_v27 = vmul.f32 %v3057_v53, %v3030_v1  ;;  %v3081_v59 = vmul.f32 %v3061_v19, %v3042_v13  ;;  %4716 = vmatprep.subr.bf16.mxu0 %v4715_v0 }
 0x523   :  { %4718 = vmatpush1.bf16.msra.mxu0 %v4717_v48 }
 0x524   :  { %v4917_v35 = vpack.c.bf16 %v3080_v27, %v3076_v58  ;;  %v3101_v63 = vpop.permute.xlu0 %3100  ;;  %v4915_v21 = vpack.c.bf16 %v3081_v59, %v3077_v12 }
 0x525   :  { %v3107_v6 = vpop.permute.xlu1 %3106 }
 0x526   :  { %4916 = vmatprep.subr.bf16.mxu1 %v4915_v21  ;;  %3854 = vmatmul.mubr.f32.vlgmr.msra.gmra.mrb[8].mxu0 %v3206_v9  ;;  %v3139_v52 = vsel %vm3130_vm8, %v3099_v15, %v3107_v6 }
 0x527   :  { %4918 = vmatpush1.bf16.msra.mxu1 %v4917_v35  ;;  %3859 = vmatprep.mubr.f32.mxu0 %v3214_v29  ;;  %v3170_v54 = vmul.f32 %v3153_v50, %v3139_v52  ;;  %v3208_v35 = vld [vmem:[%s8382_s5 + $0x30] sm:$0xff] }
 0x528   :  { %v3109_v28 = vpop.permute.xlu0 %3108 }
 0x529   :  { %v3115_v16 = vpop.permute.xlu1 %3114  ;;  %v3140_v39 = vsel %vm3130_vm8, %v3101_v63, %v3109_v28 }
 0x52a   :  { %4162 = vmatmul.mubr.f32.vlgmr.msra.gmra.mrb[8].mxu1 %v3206_v9  ;;  %3860 = vmatmul.mubr.f32.gmra.mrb[10].mxu0 %v3213_v61  ;;  %v3135_v18 = vsel %vm3130_vm8, %v3107_v6, %v3115_v16  ;;  %v3174_v62 = vmul.f32 %v3153_v50, %v3140_v39 }
 0x52b   :  { %3930 = vmatprep.mubr.f32.mxu0 %v8918_v47  ;;  %4167 = vmatprep.mubr.f32.mxu1 %v3214_v29  ;;  %v3171_v31 = vmul.f32 %v3157_v51, %v3135_v18 }
 0x52c   :  { %v3117_v53 = vpop.permute.xlu0 %3116  ;;  %v4721_v46 = vpack.c.bf16 %v3174_v62, %v3170_v54 }
 0x52d   :  { %v3123_v19 = vpop.permute.xlu1 %3122  ;;  %v3136_v40 = vsel %vm3130_vm8, %v3109_v28, %v3117_v53 }
 0x52e   :  { %v3175_v10 = vmul.f32 %v3157_v51, %v3136_v40  ;;  %4168 = vmatmul.mubr.f32.gmra.mrb[10].mxu1 %v3213_v61  ;;  %v3131_v41 = vsel %vm3130_vm8, %v3115_v16, %v3123_v19  ;;  %v3143_v36 = vsel %vm3130_vm8, %v3123_v19, %v3099_v15 }
 0x52f   :  { %4238 = vmatprep.mubr.f32.mxu1 %v8918_v47  ;;  %v3172_v11 = vmul.f32 %v3161_v3, %v3131_v41  ;;  %v3173_v43 = vmul.f32 %v3165_v8, %v3143_v36 }
 0x530   :  { %v3125_v7 = vpop.permute.xlu0 %3124  ;;  %v4719_v32 = vpack.c.bf16 %v3175_v10, %v3171_v31 }
 0x531   :  { %v3103_v4 = vpop.permute.xlu1 %3102  ;;  %v3132_v22 = vsel %vm3130_vm8, %v3117_v53, %v3125_v7  ;;  %v3144_v44 = vsel %vm3130_vm8, %v3125_v7, %v3101_v63 }
 0x532   :  { %v3176_v23 = vmul.f32 %v3161_v3, %v3132_v22  ;;  %v3177_v34 = vmul.f32 %v3165_v8, %v3144_v44  ;;  %4720 = vmatprep.subr.bf16.mxu0 %v4719_v32 }
 0x533   :  { %4722 = vmatpush1.bf16.msra.mxu0 %v4721_v46 }
 0x534   :  { %v4921_v20 = vpack.c.bf16 %v3176_v23, %v3172_v11  ;;  %v3105_v30 = vpop.permute.xlu0 %3104  ;;  %v4919_v33 = vpack.c.bf16 %v3177_v34, %v3173_v43  ;;  %v4259_v11 = vld [vmem:[%s8384_s7] sm:$0xf] }
 0x535   :  { %v3111_v56 = vpop.permute.xlu1 %3110 }
 0x536   :  { %4920 = vmatprep.subr.bf16.mxu1 %v4919_v33  ;;  %v3141_v17 = vsel %vm3130_vm8, %v3103_v4, %v3111_v56 }
 0x537   :  { %4922 = vmatpush1.bf16.msra.mxu1 %v4921_v20  ;;  %v3178_v57 = vmul.f32 %v3153_v50, %v3141_v17 }
 0x538   :  { %v3113_v42 = vpop.permute.xlu0 %3112 }
 0x539   :  { %v3119_v2 = vpop.permute.xlu1 %3118  ;;  %v3142_v37 = vsel %vm3130_vm8, %v3105_v30, %v3113_v42 }
 0x53a   :  { %v3137_v25 = vsel %vm3130_vm8, %v3111_v56, %v3119_v2  ;;  %v3182_v24 = vmul.f32 %v3153_v50, %v3142_v37  ;;  %v5006_v37 = vld [vmem:[%s8377_s0] sm:$0xff] }
 0x53b   :  { %v3179_v45 = vmul.f32 %v3157_v51, %v3137_v25 }
 0x53c   :  { %v3121_v38 = vpop.permute.xlu0 %3120  ;;  %v4725_v1 = vpack.c.bf16 %v3182_v24, %v3178_v57 }
 0x53d   :  { %v3127_v26 = vpop.permute.xlu1 %3126  ;;  %v3138_v55 = vsel %vm3130_vm8, %v3113_v42, %v3121_v38 }
 0x53e   :  { %v3183_v60 = vmul.f32 %v3157_v51, %v3138_v55  ;;  %v3133_v49 = vsel %vm3130_vm8, %v3119_v2, %v3127_v26  ;;  %v3145_v15 = vsel %vm3130_vm8, %v3127_v26, %v3103_v4  ;;  %v5007_v26 = vld [vmem:[%s8377_s0 + $0x8] sm:$0xff] }
 0x53f   :  { %v3180_v12 = vmul.f32 %v3161_v3, %v3133_v49  ;;  %v3181_v27 = vmul.f32 %v3165_v8, %v3145_v15  ;;  %v5008_v15 = vld [vmem:[%s8377_s0 + $0x10] sm:$0xff] }
 0x540   :  { %v3129_v0 = vpop.permute.xlu0 %3128  ;;  %v4723_v48 = vpack.c.bf16 %v3183_v60, %v3179_v45 }
 0x541   :  { %v3134_v13 = vsel %vm3130_vm8, %v3121_v38, %v3129_v0  ;;  %v3146_v58 = vsel %vm3130_vm8, %v3129_v0, %v3105_v30 }
 0x542   :  { %v3184_v59 = vmul.f32 %v3161_v3, %v3134_v13  ;;  %v3185_v9 = vmul.f32 %v3165_v8, %v3146_v58  ;;  %4724 = vmatprep.subr.bf16.mxu0 %v4723_v48 }
 0x543   :  { %4726 = vmatpush1.bf16.msra.mxu0 %v4725_v1  ;;  %v5009_v1 = vld [vmem:[%s8377_s0 + $0x18] sm:$0xff] }
 0x544   :  { %v4925_v63 = vpack.c.bf16 %v3184_v59, %v3180_v12  ;;  %v4923_v6 = vpack.c.bf16 %v3185_v9, %v3181_v27 }
 0x546   :  { %4485 = vmatmul.mubr.msk.f32.vlgmr.msra.gmra.mrb[8].mxu0 %vm3628_vm9, %v3208_v35  ;;  %4924 = vmatprep.subr.bf16.mxu1 %v4923_v6 }
 0x547   :  { %4926 = vmatpush1.bf16.msra.mxu1 %v4925_v63  ;;  %3936 = vmatprep.mubr.f32.mxu0 %v8918_v47 }
 0x54a   :  { %4486 = vmatmul.mubr.msk.f32.gmra.mrb[10].mxu0 %vm3628_vm9, %v3215_v14  ;;  %4487 = vmatmul.mubr.msk.f32.vlgmr.msra.gmra.mrb[8].mxu1 %vm3628_vm9, %v3208_v35 }
 0x54b   :  { %4244 = vmatprep.mubr.f32.mxu1 %v8918_v47  ;;  %4347 = vmatprep.mubr.f32.mxu0 %v8918_v47 }
 0x54e   :  { %4488 = vmatmul.mubr.msk.f32.gmra.mrb[10].mxu1 %vm3628_vm9, %v3215_v14  ;;  %v3621_v61 = vpop.permute.xlu1 %3620 }
 0x54f   :  { %4418 = vmatprep.mubr.f32.mxu1 %v8918_v47 }
 0x551   :  { %v3626_v5 = vpop.permute.xlu0 %3625 }
 0x552   :  { %v4264_v23 = vpop.permute.xlu1 %4263 }
 0x619   :  { %v3932_v21 = vpop.f32.mrb[8].mxu0 }
 0x61a   :  { %v3934_v29 = vpop.f32.mrb[9].mxu0  ;;  %v4939_v28 = vadd.f32 %v3932_v21, %v3621_v61 }
 0x61b   :  { %v4940_v16 = vadd.f32 %v3934_v29, %v3621_v61 }
 0x61c   :  { %v4251_v19 = vmax.f32 %v4939_v28, 0.0 }
 0x61d   :  { %v3938_v39 = vpop.f32.mrb[10].mxu0  ;;  %v4240_v51 = vpop.f32.mrb[8].mxu1  ;;  %v4252_v31 = vmax.f32 %v4940_v16, 0.0 }
 0x61e   :  { %v4941_v50 = vadd.f32 %v3938_v39, %v3626_v5  ;;  %v3940_v18 = vpop.f32.mrb[11].mxu0  ;;  %v4242_v52 = vpop.f32.mrb[9].mxu1  ;;  %v4943_v40 = vadd.f32 %v4240_v51, %v3621_v61 }
 0x61f   :  { %v4942_v53 = vadd.f32 %v3940_v18, %v3626_v5  ;;  %v4944_v3 = vadd.f32 %v4242_v52, %v3621_v61 }
 0x620   :  { %v4255_v62 = vmax.f32 %v4941_v50, 0.0  ;;  %v4253_v4 = vmax.f32 %v4943_v40, 0.0 }
 0x621   :  { %v4256_v10 = vmax.f32 %v4942_v53, 0.0  ;;  %v4246_v47 = vpop.f32.mrb[10].mxu1  ;;  %v4254_v46 = vmax.f32 %v4944_v3, 0.0 }
 0x622   :  { %v4930_v8 = vpack.c.bf16 %v4255_v62, %v4251_v19  ;;  %v4945_v54 = vadd.f32 %v4246_v47, %v3626_v5  ;;  %v4248_v41 = vpop.f32.mrb[11].mxu1 }
 0x623   :  { %v4927_v36 = vpack.c.bf16 %v4256_v10, %v4252_v31  ;;  %v4946_v7 = vadd.f32 %v4248_v41, %v3626_v5 }
 0x624   :  { %v4257_v32 = vmax.f32 %v4945_v54, 0.0 }
 0x625   :  { %v4258_v22 = vmax.f32 %v4946_v7, 0.0  ;;  %4929 = vmatprep.subr.msk.bf16.mxu0 %vm4928_vm12, %v4927_v36 }
 0x626   :  { %v4936_v44 = vpack.c.bf16 %v4257_v32, %v4253_v4  ;;  %4932 = vmatpush1.bf16.msk.msra.mxu0 %vm4928_vm12, %v4930_v8 }
 0x627   :  { %v4933_v43 = vpack.c.bf16 %v4258_v22, %v4254_v46 }
 0x629   :  { %4491 = vmatmul.mubr.msk.f32.vlgmr.msra.gmra.mrb[12].mxu0 %vm4266_vm13, %v4259_v11  ;;  %4935 = vmatprep.subr.msk.bf16.mxu1 %vm4928_vm12, %v4933_v43 }
 0x62a   :  { %4938 = vmatpush1.bf16.msk.msra.mxu1 %vm4928_vm12, %v4936_v44 }
 0x62d   :  { %4494 = vmatmul.mubr.msk.f32.vlgmr.msra.gmra.mrb[12].mxu1 %vm4266_vm13, %v4259_v11 }
 0x6fc   :  { %v4349_v34 = vpop.f32.mrb[12].mxu0 }
 0x6fd   :  { %v4350_v20 = vadd.f32 %v4349_v34, %v4264_v23  ;;  %v4351_v30 = vpop.f32.mrb[13].mxu0 }
 0x6fe   :  { %v4352_v56 = vadd.f32 %v4351_v30, %v4264_v23 }
 0x6ff   :  { %v4425_v33 = vmax.f32 %v4350_v20, 0.0 }
 0x700   :  { %v4426_v42 = vmax.f32 %v4352_v56, 0.0  ;;  %v4420_v2 = vpop.f32.mrb[12].mxu1 }
 0x701   :  { %v4429_v25 = vadd.f32 %v5006_v37, %v4425_v33  ;;  %v4421_v17 = vadd.f32 %v4420_v2, %v4264_v23  ;;  %v4422_v38 = vpop.f32.mrb[13].mxu1 }
 0x702   :  { %v4430_v24 = vadd.f32 %v5007_v26, %v4426_v42  ;;  %v4423_v55 = vadd.f32 %v4422_v38, %v4264_v23 }
 0x703   :  { %v4433_v45 = vmax.f32 %v4429_v25, 0.0  ;;  %v4427_v60 = vmax.f32 %v4421_v17, 0.0 }
 0x704   :  { %v4434_v57 = vmax.f32 %v4430_v24, 0.0  ;;  %v4428_v49 = vmax.f32 %v4423_v55, 0.0 }
 0x705   :  { %v4431_v0 = vadd.f32 %v5008_v15, %v4427_v60 }
 0x706   :  { %v4441_v48 = vcombine.low %v4433_v45, %v4434_v57  ;;  %v4432_v13 = vadd.f32 %v5009_v1, %v4428_v49 }
 0x707   :  { %v4435_v58 = vmax.f32 %v4431_v0, 0.0 }
 0x708   :  { %4445 = vst [vmem:[%s8386_s9] sm:$0xff] %v4441_v48  ;;  %v4436_v12 = vmax.f32 %v4432_v13, 0.0 }
 0x70a   :  { %v4442_v27 = vcombine.low %v4435_v58, %v4436_v12 }
 0x70c   :  { %4446 = vst [vmem:[%s8386_s9 + $0x8] sm:$0xff] %v4442_v27 }
 0x70d   :  { %4451 = vsyncpa [#allocation4], 1 }
 0x70e   :  { %4452 = vsyncpa [#allocation6], 1 }

</bundles_post_ra>
